<compile_context>
chip_gen: v6e
topology: v6e:2x2x1
jax: 0.10.0
libtpu: 0.0.40
codegen_flags: <defaults>
</compile_context>

<pallas_src>
import functools

import numpy as np
import jax
import jax.numpy as jnp
from jax.experimental import pallas as pl
from jax.experimental.pallas import tpu as pltpu


# ----------------------------------------------------------------------------
# Small helpers
# ----------------------------------------------------------------------------
def _round_up(x, m):
    return ((x + m - 1) // m) * m


def _choose_tile_b(b_sz):
    """Batch rows per grid step: MXU-filling (<=256) but grid >= 2 if possible."""
    b8 = _round_up(max(int(b_sz), 1), 8)
    if b8 <= 8:
        return 8
    tile = min(256, _round_up(-(-b8 // 2), 8))  # ~half the batch -> >=2 grid steps
    return max(8, tile)


# ----------------------------------------------------------------------------
# Fused Pallas kernel: a chain of lane-dense MXU matmuls (+bias, +ReLU)
# ----------------------------------------------------------------------------
def _fno_fused_kernel(*refs, relu_flags):
    x_ref = refs[0]
    o_ref = refs[-1]
    w = refs[1:-1]  # alternating (weight bf16, bias f32) pairs, resident in VMEM

    h = x_ref[...]
    for i, relu in enumerate(relu_flags):
        w_ref, b_ref = w[2 * i], w[2 * i + 1]
        # bf16 MXU operands, f32 accumulation; bias/ReLU stay in f32 (VPU).
        h = jnp.dot(h.astype(w_ref.dtype), w_ref[...],
                    preferred_element_type=jnp.float32) + b_ref[...]
        if relu:
            h = jnp.maximum(h, 0.0)
    o_ref[...] = h.astype(o_ref.dtype)


def fno_forward_fused(x, fused):
    """x: (B, S, in_dim) -> (B, S, out_dim) via one fused pallas_call."""
    b_sz, s, in_dim = x.shape
    mats = fused["mats"]
    relu_flags = fused["relu_flags"]
    out_dim = fused["out_dim"]
    out_cols = fused["padded_out_cols"]   # lane-dense (multiple of 128)
    in_cols = s * in_dim

    tile_b = _choose_tile_b(b_sz)
    b_pad = _round_up(b_sz, tile_b)
    xf = x.reshape(b_sz, in_cols)
    if b_pad != b_sz:
        xf = jnp.pad(xf, ((0, b_pad - b_sz), (0, 0)))

    # Generation-aware scoped-VMEM budget.
    try:
        phys = int(pltpu.get_tpu_info().vmem_capacity_bytes)
    except Exception:
        phys = 64 << 20  # conservative (v7x per-TC)
    weight_bytes = sum(int(a.size) * a.dtype.itemsize for a in mats)
    act_cols = max(int(w.shape[1]) for w in mats[0::2])
    io_bytes = 2 * tile_b * (in_cols + out_cols) * 4          # double-buffered I/O
    act_bytes = 4 * tile_b * act_cols * 4                     # f32 activation slabs
    vmem_limit = int(min(max(2 * weight_bytes + io_bytes + act_bytes, 32 << 20),
                         int(phys * 0.85)))

    flops = 2 * b_pad * sum(int(w.shape[0]) * int(w.shape[1]) for w in mats[0::2])
    bytes_accessed = int(xf.size * xf.dtype.itemsize
                         + b_pad * out_cols * 4 + weight_bytes)

    def call(single_buffer_weights):
        in_specs = [pl.BlockSpec((tile_b, in_cols), lambda i: (i, 0))]
        for a in mats:
            kwargs = {}
            if single_buffer_weights:
                # Constant block index across the grid -> no double buffer needed.
                kwargs["pipeline_mode"] = pl.Buffered(1)
            in_specs.append(pl.BlockSpec(tuple(a.shape), lambda i: (0, 0), **kwargs))

        return pl.pallas_call(
            functools.partial(_fno_fused_kernel, relu_flags=relu_flags),
            out_shape=jax.ShapeDtypeStruct((b_pad, out_cols), x.dtype),
            grid=(b_pad // tile_b,),
            in_specs=in_specs,
            out_specs=pl.BlockSpec((tile_b, out_cols), lambda i: (i, 0)),
            compiler_params=pltpu.CompilerParams(
                dimension_semantics=("parallel",),
                vmem_limit_bytes=vmem_limit,
            ),
            cost_estimate=pl.CostEstimate(
                flops=flops, transcendentals=0, bytes_accessed=bytes_accessed),
        )(xf, *mats)

    try:
        out = call(True)            # single-buffered resident weights
    except Exception:
        out = call(False)           # fall back to default (double) buffering

    return out[:b_sz, : s * out_dim].reshape(b_sz, s, out_dim)


# ----------------------------------------------------------------------------
# Host-side weight preparation (done once, in float64, outside the kernel)
# ----------------------------------------------------------------------------
def _make_dft_mats_np(s, modes):
    """Truncated rfft / irfft matrices matching torch.fft semantics (float64)."""
    k = np.arange(modes, dtype=np.float64)[:, None]   # (M, 1)
    n = np.arange(s, dtype=np.float64)[None, :]       # (1, S)
    ang = 2.0 * np.pi * k * n / s
    fr = np.cos(ang)        # rfft real part
    fi = -np.sin(ang)       # rfft imag part
    once = (k[:, 0] == 0) | ((s % 2 == 0) & (k[:, 0] == s // 2))
    scale = np.where(once, 1.0, 2.0)     # bins stored once get weight 1, else 2
    imag_w = np.where(once, 0.0, 1.0)    # imaginary part of DC/Nyquist is dropped
    crt = (np.cos(ang) * scale[:, None] / s).T                      # (S, M)
    cit = (-np.sin(ang) * scale[:, None] * imag_w[:, None] / s).T   # (S, M)
    return fr, fi, crt, cit


def prepare_fused_weights(p, modes_list, s, compute_dtype=jnp.bfloat16):
    """Build per-layer composite operators acting on the flattened (S*C,) row,
    then fold adjacent activation-free affine pairs (fc0->layer0, last->fc1)."""
    n_layers = len(modes_list)
    eye_s = np.eye(s, dtype=np.float64)

    def kron_eye(w_t):                    # (Cin, Cout) -> (S*Cin, S*Cout)
        return np.kron(eye_s, w_t)

    def tile_bias(b):                     # (Cout,) -> (1, S*Cout)
        return np.tile(np.asarray(b, np.float64), s)[None, :]

    stages = []  # [W (K,N), b (1,N), relu_after]
    w0 = np.asarray(p["fc0_w"], np.float64)                  # (width, in_dim)
    stages.append([kron_eye(w0.T), tile_bias(p["fc0_b"]), False])

    for i, m in enumerate(modes_list):
        assert m <= s // 2 + 1, "spectral modes must satisfy modes <= S//2 + 1"
        fr, fi, crt, cit = _make_dft_mats_np(s, m)
        wr = np.asarray(p[f"spec_wr_{i}"], np.float64)       # (Cin, Cout, M)
        wi = np.asarray(p[f"spec_wi_{i}"], np.float64)
        cin, cout = wr.shape[0], wr.shape[1]
        arr = np.einsum("sm,mn->snm", crt, fr) + np.einsum("sm,mn->snm", cit, fi)
        ari = np.einsum("sm,mn->snm", cit, fr) - np.einsum("sm,mn->snm", crt, fi)
        kspec = (np.einsum("snm,com->ncso", arr, wr)
                 + np.einsum("snm,com->ncso", ari, wi)).reshape(s * cin, s * cout)
        wc = np.asarray(p[f"conv_w_{i}"], np.float64)        # (Cout, Cin) 1x1 conv
        stages.append([kspec + kron_eye(wc.T), tile_bias(p[f"conv_b_{i}"]),
                       i != n_layers - 1])

    w1 = np.asarray(p["fc1_w"], np.float64)                  # (fc_dim, width)
    stages.append([kron_eye(w1.T), tile_bias(p["fc1_b"]), True])

    w2 = np.asarray(p["fc2_w"], np.float64)                  # (out_dim, fc_dim)
    out_dim = int(w2.shape[0])
    out_cols = s * out_dim
    padded_out_cols = _round_up(out_cols, 128)               # lane-dense output
    W2 = kron_eye(w2.T)
    b2 = tile_bias(p["fc2_b"])
    W2p = np.zeros((W2.shape[0], padded_out_cols), np.float64)
    W2p[:, :out_cols] = W2
    b2p = np.zeros((1, padded_out_cols), np.float64)
    b2p[:, :out_cols] = b2
    stages.append([W2p, b2p, False])

    # Fold consecutive affines with no activation in between (exact).
    merged = [stages[0]]
    for W, b, relu in stages[1:]:
        Wp, bp, relup = merged[-1]
        if not relup:
            merged[-1] = [Wp @ W, bp @ W + b, relu]
        else:
            merged.append([W, b, relu])

    mats, relu_flags = [], []
    for W, b, relu in merged:
        mats.append(jnp.asarray(W, compute_dtype))   # bf16 MXU operand
        mats.append(jnp.asarray(b, jnp.float32))     # bias stays f32
        relu_flags.append(bool(relu))

    return {"mats": mats, "relu_flags": tuple(relu_flags), "out_dim": out_dim,
            "s": s, "padded_out_cols": padded_out_cols}


# ----------------------------------------------------------------------------
# Parameters + references
# ----------------------------------------------------------------------------
def init_params(key, modes_list, width, fc_dim, in_dim, out_dim):
    layers = [width] * (len(modes_list) + 1)
    keys = iter(jax.random.split(key, 64))

    def u(shape, scale):
        return scale * jax.random.uniform(next(keys), shape, dtype=jnp.float32,
                                          minval=-1.0, maxval=1.0)

    p = {}
    p["fc0_w"] = u((layers[0], in_dim), 1.0 / np.sqrt(in_dim))
    p["fc0_b"] = u((layers[0],), 1.0 / np.sqrt(in_dim))
    for i, (cin, cout, m) in enumerate(zip(layers, layers[1:], modes_list)):
        spec_scale = 1.0 / (cin * cout)
        p[f"spec_wr_{i}"] = u((cin, cout, m), spec_scale)
        p[f"spec_wi_{i}"] = u((cin, cout, m), spec_scale)
        p[f"conv_w_{i}"] = u((cout, cin), 1.0 / np.sqrt(cin))
        p[f"conv_b_{i}"] = u((cout,), 1.0 / np.sqrt(cin))
    p["fc1_w"] = u((fc_dim, layers[-1]), 1.0 / np.sqrt(layers[-1]))
    p["fc1_b"] = u((fc_dim,), 1.0 / np.sqrt(layers[-1]))
    p["fc2_w"] = u((out_dim, fc_dim), 1.0 / np.sqrt(fc_dim))
    p["fc2_b"] = u((out_dim,), 1.0 / np.sqrt(fc_dim))
    return p


def fused_reference(x, fused):
    """Same fused bf16-operand / f32-accumulate math, in plain JAX (no Pallas)."""
    b_sz, s, in_dim = x.shape
    h = x.reshape(b_sz, s * in_dim)
    mats = fused["mats"]
    for i, relu in enumerate(fused["relu_flags"]):
        w, b = mats[2 * i], mats[2 * i + 1]
        h = jnp.dot(h.astype(w.dtype), w, preferred_element_type=jnp.float32) + b
        if relu:
            h = jnp.maximum(h, 0.0)
    return h[:, : s * fused["out_dim"]].reshape(b_sz, s, fused["out_dim"])


def reference_forward(x, p, modes_list, s):
    """Pure-JAX f32 reference mirroring the PyTorch forward (NCW + torch.fft)."""
    act = lambda z: jnp.maximum(z, 0.0)
    h = x @ p["fc0_w"].T + p["fc0_b"]
    h = jnp.transpose(h, (0, 2, 1))  # (B, C, S)
    n_layers = len(modes_list)
    for i in range(n_layers):
        m = modes_list[i]
        w = p[f"spec_wr_{i}"] + 1j * p[f"spec_wi_{i}"]       # (Cin, Cout, M)
        h_ft = jnp.fft.rfft(h, axis=-1)                      # (B, Cin, S//2+1)
        out_ft = jnp.zeros((h.shape[0], w.shape[1], s // 2 + 1), dtype=h_ft.dtype)
        out_ft = out_ft.at[:, :, :m].set(
            jnp.einsum("bim,iom->bom", h_ft[:, :, :m], w))
        x1 = jnp.fft.irfft(out_ft, n=s, axis=-1)
        x2 = jnp.einsum("oi,bis->bos", p[f"conv_w_{i}"], h) + p[f"conv_b_{i}"][None, :, None]
        h = x1 + x2
        if i != n_layers - 1:
            h = act(h)
    h = jnp.transpose(h, (0, 2, 1))
    h = act(h @ p["fc1_w"].T + p["fc1_b"])
    h = h @ p["fc2_w"].T + p["fc2_b"]
    return h


if __name__ == "__main__":
    B, S, IN_DIM, OUT_DIM = 2, 16, 2, 1
    WIDTH, FC_DIM = 32, 64
    MODES = (8, 8, 8)  # 3 Fourier layers (layers = [width]*4)

    key = jax.random.PRNGKey(0)
    pkey, xkey = jax.random.split(key)
    params = init_params(pkey, MODES, WIDTH, FC_DIM, IN_DIM, OUT_DIM)
    x = jax.random.normal(xkey, (B, S, IN_DIM), dtype=jnp.float32)

    fused = prepare_fused_weights(params, MODES, S)
    out = jax.block_until_ready(fno_forward_fused(x, fused))
    assert out.shape == (B, S, OUT_DIM), out.shape

    # (1) Tight check: Pallas kernel vs identical bf16/f32-accumulate math in XLA.
    ref_fused = jax.block_until_ready(fused_reference(x, fused))
    kerr = float(jnp.max(jnp.abs(out - ref_fused)))
    if not kerr < 2e-3:
        raise AssertionError(f"kernel vs fused-math reference: max abs err {kerr}")

    # (2) End-to-end check vs the f32 FFT-based reference (mirrors PyTorch);
    #     tolerance accounts for bf16 MXU operands (f32 accumulation).
    ref = jax.block_until_ready(reference_forward(x, params, MODES, S))
    scale = float(jnp.max(jnp.abs(ref))) + 1e-6
    err = float(jnp.max(jnp.abs(out - ref)))
    if not err <= 5e-2 * scale + 1e-3:
        raise AssertionError(f"vs FFT reference: max abs err {err} (scale {scale})")

    print("KERNEL_OK")
</pallas_src>

<mosaic_0001>
module attributes {stable_mosaic.version = 11 : i64} {
  func.func @_fno_fused_kernel(%arg0: i32, %arg1: memref<8x32xf32, #tpu.memory_space<vmem>>, %arg2: memref<32x512xbf16, #tpu.memory_space<vmem>>, %arg3: memref<1x512xf32, #tpu.memory_space<vmem>>, %arg4: memref<512x512xbf16, #tpu.memory_space<vmem>>, %arg5: memref<1x512xf32, #tpu.memory_space<vmem>>, %arg6: memref<512x1024xbf16, #tpu.memory_space<vmem>>, %arg7: memref<1x1024xf32, #tpu.memory_space<vmem>>, %arg8: memref<1024x128xbf16, #tpu.memory_space<vmem>>, %arg9: memref<1x128xf32, #tpu.memory_space<vmem>>, %arg10: memref<8x128xf32, #tpu.memory_space<vmem>>) attributes {dimension_semantics = [#tpu.dimension_semantics<parallel>], iteration_bounds = array<i64: 1>, scalar_prefetch = 0 : i64, scratch_operands = 0 : i64, tpu.core_type = #tpu.core_type<tc>, window_params = [{transform_indices = @transform_0, window_bounds = array<i64: 8, 32>}, {pipeline_mode = #tpu.pipeline_mode<synchronous>, transform_indices = @transform_1, window_bounds = array<i64: 32, 512>}, {pipeline_mode = #tpu.pipeline_mode<synchronous>, transform_indices = @transform_2, window_bounds = array<i64: 1, 512>}, {pipeline_mode = #tpu.pipeline_mode<synchronous>, transform_indices = @transform_3, window_bounds = array<i64: 512, 512>}, {pipeline_mode = #tpu.pipeline_mode<synchronous>, transform_indices = @transform_4, window_bounds = array<i64: 1, 512>}, {pipeline_mode = #tpu.pipeline_mode<synchronous>, transform_indices = @transform_5, window_bounds = array<i64: 512, 1024>}, {pipeline_mode = #tpu.pipeline_mode<synchronous>, transform_indices = @transform_6, window_bounds = array<i64: 1, 1024>}, {pipeline_mode = #tpu.pipeline_mode<synchronous>, transform_indices = @transform_7, window_bounds = array<i64: 1024, 128>}, {pipeline_mode = #tpu.pipeline_mode<synchronous>, transform_indices = @transform_8, window_bounds = array<i64: 1, 128>}, {transform_indices = @transform_9, window_bounds = array<i64: 8, 128>}]} {
    %c0 = arith.constant 0 : index
    %c0_0 = arith.constant 0 : index
    %0 = vector.load %arg1[%c0, %c0_0] : memref<8x32xf32, #tpu.memory_space<vmem>>, vector<8x32xf32>
    %1 = arith.truncf %0 : vector<8x32xf32> to vector<8x32xbf16>
    %c0_1 = arith.constant 0 : index
    %c0_2 = arith.constant 0 : index
    %2 = vector.load %arg2[%c0_1, %c0_2] : memref<32x512xbf16, #tpu.memory_space<vmem>>, vector<32x512xbf16>
    %cst = arith.constant dense<0.000000e+00> : vector<8x512xf32>
    %3 = tpu.matmul %1, %2, %cst {dimension_numbers = #tpu.dot_dimension_numbers<[1], [0], [0], [1], [0, 0, 1, 1], [], []>} : vector<8x32xbf16>, vector<32x512xbf16>, vector<8x512xf32> -> vector<8x512xf32>
    %c0_3 = arith.constant 0 : index
    %c0_4 = arith.constant 0 : index
    %4 = vector.load %arg3[%c0_3, %c0_4] : memref<1x512xf32, #tpu.memory_space<vmem>>, vector<1x512xf32>
    %5 = vector.broadcast %4 : vector<1x512xf32> to vector<8x512xf32>
    %6 = arith.addf %3, %5 : vector<8x512xf32>
    %cst_5 = arith.constant 0.000000e+00 : f32
    %7 = vector.broadcast %cst_5 : f32 to vector<8x512xf32>
    %8 = arith.maximumf %6, %7 : vector<8x512xf32>
    %9 = arith.truncf %8 : vector<8x512xf32> to vector<8x512xbf16>
    %c0_6 = arith.constant 0 : index
    %c0_7 = arith.constant 0 : index
    %10 = vector.load %arg4[%c0_6, %c0_7] : memref<512x512xbf16, #tpu.memory_space<vmem>>, vector<512x512xbf16>
    %cst_8 = arith.constant dense<0.000000e+00> : vector<8x512xf32>
    %11 = tpu.matmul %9, %10, %cst_8 {dimension_numbers = #tpu.dot_dimension_numbers<[1], [0], [0], [1], [0, 0, 1, 1], [], []>} : vector<8x512xbf16>, vector<512x512xbf16>, vector<8x512xf32> -> vector<8x512xf32>
    %c0_9 = arith.constant 0 : index
    %c0_10 = arith.constant 0 : index
    %12 = vector.load %arg5[%c0_9, %c0_10] : memref<1x512xf32, #tpu.memory_space<vmem>>, vector<1x512xf32>
    %13 = vector.broadcast %12 : vector<1x512xf32> to vector<8x512xf32>
    %14 = arith.addf %11, %13 : vector<8x512xf32>
    %cst_11 = arith.constant 0.000000e+00 : f32
    %15 = vector.broadcast %cst_11 : f32 to vector<8x512xf32>
    %16 = arith.maximumf %14, %15 : vector<8x512xf32>
    %17 = arith.truncf %16 : vector<8x512xf32> to vector<8x512xbf16>
    %c0_12 = arith.constant 0 : index
    %c0_13 = arith.constant 0 : index
    %18 = vector.load %arg6[%c0_12, %c0_13] : memref<512x1024xbf16, #tpu.memory_space<vmem>>, vector<512x1024xbf16>
    %cst_14 = arith.constant dense<0.000000e+00> : vector<8x1024xf32>
    %19 = tpu.matmul %17, %18, %cst_14 {dimension_numbers = #tpu.dot_dimension_numbers<[1], [0], [0], [1], [0, 0, 1, 1], [], []>} : vector<8x512xbf16>, vector<512x1024xbf16>, vector<8x1024xf32> -> vector<8x1024xf32>
    %c0_15 = arith.constant 0 : index
    %c0_16 = arith.constant 0 : index
    %20 = vector.load %arg7[%c0_15, %c0_16] : memref<1x1024xf32, #tpu.memory_space<vmem>>, vector<1x1024xf32>
    %21 = vector.broadcast %20 : vector<1x1024xf32> to vector<8x1024xf32>
    %22 = arith.addf %19, %21 : vector<8x1024xf32>
    %cst_17 = arith.constant 0.000000e+00 : f32
    %23 = vector.broadcast %cst_17 : f32 to vector<8x1024xf32>
    %24 = arith.maximumf %22, %23 : vector<8x1024xf32>
    %25 = arith.truncf %24 : vector<8x1024xf32> to vector<8x1024xbf16>
    %c0_18 = arith.constant 0 : index
    %c0_19 = arith.constant 0 : index
    %26 = vector.load %arg8[%c0_18, %c0_19] : memref<1024x128xbf16, #tpu.memory_space<vmem>>, vector<1024x128xbf16>
    %cst_20 = arith.constant dense<0.000000e+00> : vector<8x128xf32>
    %27 = tpu.matmul %25, %26, %cst_20 {dimension_numbers = #tpu.dot_dimension_numbers<[1], [0], [0], [1], [0, 0, 1, 1], [], []>} : vector<8x1024xbf16>, vector<1024x128xbf16>, vector<8x128xf32> -> vector<8x128xf32>
    %c0_21 = arith.constant 0 : index
    %c0_22 = arith.constant 0 : index
    %28 = vector.load %arg9[%c0_21, %c0_22] : memref<1x128xf32, #tpu.memory_space<vmem>>, vector<1x128xf32>
    %29 = vector.broadcast %28 : vector<1x128xf32> to vector<8x128xf32>
    %30 = arith.addf %27, %29 : vector<8x128xf32>
    %c0_23 = arith.constant 0 : index
    %c0_24 = arith.constant 0 : index
    %31 = vector.load %arg10[%c0_23, %c0_24] : memref<8x128xf32, #tpu.memory_space<vmem>>, vector<8x128xf32>
    tpu.vector_store %arg10[%c0_23, %c0_24], %30 {strides = array<i32>} : memref<8x128xf32, #tpu.memory_space<vmem>>, vector<8x128xf32>,
    return
  }
  func.func @transform_0(%arg0: i32) -> (i32, i32) {
    %c0_i32 = arith.constant 0 : i32
    %c0_i32_0 = arith.constant 0 : i32
    return %arg0, %c0_i32 : i32, i32
  }
  func.func @transform_1(%arg0: i32) -> (i32, i32) {
    %c0_i32 = arith.constant 0 : i32
    %c0_i32_0 = arith.constant 0 : i32
    %c0_i32_1 = arith.constant 0 : i32
    return %c0_i32, %c0_i32_0 : i32, i32
  }
  func.func @transform_2(%arg0: i32) -> (i32, i32) {
    %c0_i32 = arith.constant 0 : i32
    %c0_i32_0 = arith.constant 0 : i32
    %c0_i32_1 = arith.constant 0 : i32
    return %c0_i32, %c0_i32_0 : i32, i32
  }
  func.func @transform_3(%arg0: i32) -> (i32, i32) {
    %c0_i32 = arith.constant 0 : i32
    %c0_i32_0 = arith.constant 0 : i32
    %c0_i32_1 = arith.constant 0 : i32
    return %c0_i32, %c0_i32_0 : i32, i32
  }
  func.func @transform_4(%arg0: i32) -> (i32, i32) {
    %c0_i32 = arith.constant 0 : i32
    %c0_i32_0 = arith.constant 0 : i32
    %c0_i32_1 = arith.constant 0 : i32
    return %c0_i32, %c0_i32_0 : i32, i32
  }
  func.func @transform_5(%arg0: i32) -> (i32, i32) {
    %c0_i32 = arith.constant 0 : i32
    %c0_i32_0 = arith.constant 0 : i32
    %c0_i32_1 = arith.constant 0 : i32
    return %c0_i32, %c0_i32_0 : i32, i32
  }
  func.func @transform_6(%arg0: i32) -> (i32, i32) {
    %c0_i32 = arith.constant 0 : i32
    %c0_i32_0 = arith.constant 0 : i32
    %c0_i32_1 = arith.constant 0 : i32
    return %c0_i32, %c0_i32_0 : i32, i32
  }
  func.func @transform_7(%arg0: i32) -> (i32, i32) {
    %c0_i32 = arith.constant 0 : i32
    %c0_i32_0 = arith.constant 0 : i32
    %c0_i32_1 = arith.constant 0 : i32
    return %c0_i32, %c0_i32_0 : i32, i32
  }
  func.func @transform_8(%arg0: i32) -> (i32, i32) {
    %c0_i32 = arith.constant 0 : i32
    %c0_i32_0 = arith.constant 0 : i32
    %c0_i32_1 = arith.constant 0 : i32
    return %c0_i32, %c0_i32_0 : i32, i32
  }
  func.func @transform_9(%arg0: i32) -> (i32, i32) {
    %c0_i32 = arith.constant 0 : i32
    %c0_i32_0 = arith.constant 0 : i32
    return %arg0, %c0_i32 : i32, i32
  }
}

module attributes {stable_mosaic.version = 11 : i64} {
  func.func @_fno_fused_kernel(%arg0: i32, %arg1: memref<8x32xf32, #tpu.memory_space<vmem>>, %arg2: memref<32x512xbf16, #tpu.memory_space<vmem>>, %arg3: memref<1x512xf32, #tpu.memory_space<vmem>>, %arg4: memref<512x512xbf16, #tpu.memory_space<vmem>>, %arg5: memref<1x512xf32, #tpu.memory_space<vmem>>, %arg6: memref<512x1024xbf16, #tpu.memory_space<vmem>>, %arg7: memref<1x1024xf32, #tpu.memory_space<vmem>>, %arg8: memref<1024x128xbf16, #tpu.memory_space<vmem>>, %arg9: memref<1x128xf32, #tpu.memory_space<vmem>>, %arg10: memref<8x128xf32, #tpu.memory_space<vmem>>) attributes {dimension_semantics = [#tpu.dimension_semantics<parallel>], iteration_bounds = array<i64: 1>, scalar_prefetch = 0 : i64, scratch_operands = 0 : i64, tpu.core_type = #tpu.core_type<tc>, window_params = [{transform_indices = @transform_0, window_bounds = array<i64: 8, 32>}, {pipeline_mode = #tpu.pipeline_mode<synchronous>, transform_indices = @transform_1, window_bounds = array<i64: 32, 512>}, {pipeline_mode = #tpu.pipeline_mode<synchronous>, transform_indices = @transform_2, window_bounds = array<i64: 1, 512>}, {pipeline_mode = #tpu.pipeline_mode<synchronous>, transform_indices = @transform_3, window_bounds = array<i64: 512, 512>}, {pipeline_mode = #tpu.pipeline_mode<synchronous>, transform_indices = @transform_4, window_bounds = array<i64: 1, 512>}, {pipeline_mode = #tpu.pipeline_mode<synchronous>, transform_indices = @transform_5, window_bounds = array<i64: 512, 1024>}, {pipeline_mode = #tpu.pipeline_mode<synchronous>, transform_indices = @transform_6, window_bounds = array<i64: 1, 1024>}, {pipeline_mode = #tpu.pipeline_mode<synchronous>, transform_indices = @transform_7, window_bounds = array<i64: 1024, 128>}, {pipeline_mode = #tpu.pipeline_mode<synchronous>, transform_indices = @transform_8, window_bounds = array<i64: 1, 128>}, {transform_indices = @transform_9, window_bounds = array<i64: 8, 128>}]} {
    %c0 = arith.constant 0 : index
    %c0_0 = arith.constant 0 : index
    %0 = vector.load %arg1[%c0, %c0_0] : memref<8x32xf32, #tpu.memory_space<vmem>>, vector<8x32xf32>
    %1 = arith.truncf %0 : vector<8x32xf32> to vector<8x32xbf16>
    %c0_1 = arith.constant 0 : index
    %c0_2 = arith.constant 0 : index
    %2 = vector.load %arg2[%c0_1, %c0_2] : memref<32x512xbf16, #tpu.memory_space<vmem>>, vector<32x512xbf16>
    %cst = arith.constant dense<0.000000e+00> : vector<8x512xf32>
    %3 = tpu.matmul %1, %2, %cst {dimension_numbers = #tpu.dot_dimension_numbers<[1], [0], [0], [1], [0, 0, 1, 1], [], []>} : vector<8x32xbf16>, vector<32x512xbf16>, vector<8x512xf32> -> vector<8x512xf32>
    %c0_3 = arith.constant 0 : index
    %c0_4 = arith.constant 0 : index
    %4 = vector.load %arg3[%c0_3, %c0_4] : memref<1x512xf32, #tpu.memory_space<vmem>>, vector<1x512xf32>
    %5 = vector.broadcast %4 : vector<1x512xf32> to vector<8x512xf32>
    %6 = arith.addf %3, %5 : vector<8x512xf32>
    %cst_5 = arith.constant 0.000000e+00 : f32
    %7 = vector.broadcast %cst_5 : f32 to vector<8x512xf32>
    %8 = arith.maximumf %6, %7 : vector<8x512xf32>
    %9 = arith.truncf %8 : vector<8x512xf32> to vector<8x512xbf16>
    %c0_6 = arith.constant 0 : index
    %c0_7 = arith.constant 0 : index
    %10 = vector.load %arg4[%c0_6, %c0_7] : memref<512x512xbf16, #tpu.memory_space<vmem>>, vector<512x512xbf16>
    %cst_8 = arith.constant dense<0.000000e+00> : vector<8x512xf32>
    %11 = tpu.matmul %9, %10, %cst_8 {dimension_numbers = #tpu.dot_dimension_numbers<[1], [0], [0], [1], [0, 0, 1, 1], [], []>} : vector<8x512xbf16>, vector<512x512xbf16>, vector<8x512xf32> -> vector<8x512xf32>
    %c0_9 = arith.constant 0 : index
    %c0_10 = arith.constant 0 : index
    %12 = vector.load %arg5[%c0_9, %c0_10] : memref<1x512xf32, #tpu.memory_space<vmem>>, vector<1x512xf32>
    %13 = vector.broadcast %12 : vector<1x512xf32> to vector<8x512xf32>
    %14 = arith.addf %11, %13 : vector<8x512xf32>
    %cst_11 = arith.constant 0.000000e+00 : f32
    %15 = vector.broadcast %cst_11 : f32 to vector<8x512xf32>
    %16 = arith.maximumf %14, %15 : vector<8x512xf32>
    %17 = arith.truncf %16 : vector<8x512xf32> to vector<8x512xbf16>
    %c0_12 = arith.constant 0 : index
    %c0_13 = arith.constant 0 : index
    %18 = vector.load %arg6[%c0_12, %c0_13] : memref<512x1024xbf16, #tpu.memory_space<vmem>>, vector<512x1024xbf16>
    %cst_14 = arith.constant dense<0.000000e+00> : vector<8x1024xf32>
    %19 = tpu.matmul %17, %18, %cst_14 {dimension_numbers = #tpu.dot_dimension_numbers<[1], [0], [0], [1], [0, 0, 1, 1], [], []>} : vector<8x512xbf16>, vector<512x1024xbf16>, vector<8x1024xf32> -> vector<8x1024xf32>
    %c0_15 = arith.constant 0 : index
    %c0_16 = arith.constant 0 : index
    %20 = vector.load %arg7[%c0_15, %c0_16] : memref<1x1024xf32, #tpu.memory_space<vmem>>, vector<1x1024xf32>
    %21 = vector.broadcast %20 : vector<1x1024xf32> to vector<8x1024xf32>
    %22 = arith.addf %19, %21 : vector<8x1024xf32>
    %cst_17 = arith.constant 0.000000e+00 : f32
    %23 = vector.broadcast %cst_17 : f32 to vector<8x1024xf32>
    %24 = arith.maximumf %22, %23 : vector<8x1024xf32>
    %25 = arith.truncf %24 : vector<8x1024xf32> to vector<8x1024xbf16>
    %c0_18 = arith.constant 0 : index
    %c0_19 = arith.constant 0 : index
    %26 = vector.load %arg8[%c0_18, %c0_19] : memref<1024x128xbf16, #tpu.memory_space<vmem>>, vector<1024x128xbf16>
    %cst_20 = arith.constant dense<0.000000e+00> : vector<8x128xf32>
    %27 = tpu.matmul %25, %26, %cst_20 {dimension_numbers = #tpu.dot_dimension_numbers<[1], [0], [0], [1], [0, 0, 1, 1], [], []>} : vector<8x1024xbf16>, vector<1024x128xbf16>, vector<8x128xf32> -> vector<8x128xf32>
    %c0_21 = arith.constant 0 : index
    %c0_22 = arith.constant 0 : index
    %28 = vector.load %arg9[%c0_21, %c0_22] : memref<1x128xf32, #tpu.memory_space<vmem>>, vector<1x128xf32>
    %29 = vector.broadcast %28 : vector<1x128xf32> to vector<8x128xf32>
    %30 = arith.addf %27, %29 : vector<8x128xf32>
    %c0_23 = arith.constant 0 : index
    %c0_24 = arith.constant 0 : index
    %31 = vector.load %arg10[%c0_23, %c0_24] : memref<8x128xf32, #tpu.memory_space<vmem>>, vector<8x128xf32>
    tpu.vector_store %arg10[%c0_23, %c0_24], %30 {strides = array<i32>} : memref<8x128xf32, #tpu.memory_space<vmem>>, vector<8x128xf32>,
    return
  }
  func.func @transform_0(%arg0: i32) -> (i32, i32) {
    %c0_i32 = arith.constant 0 : i32
    %c0_i32_0 = arith.constant 0 : i32
    return %arg0, %c0_i32 : i32, i32
  }
  func.func @transform_1(%arg0: i32) -> (i32, i32) {
    %c0_i32 = arith.constant 0 : i32
    %c0_i32_0 = arith.constant 0 : i32
    %c0_i32_1 = arith.constant 0 : i32
    return %c0_i32, %c0_i32_0 : i32, i32
  }
  func.func @transform_2(%arg0: i32) -> (i32, i32) {
    %c0_i32 = arith.constant 0 : i32
    %c0_i32_0 = arith.constant 0 : i32
    %c0_i32_1 = arith.constant 0 : i32
    return %c0_i32, %c0_i32_0 : i32, i32
  }
  func.func @transform_3(%arg0: i32) -> (i32, i32) {
    %c0_i32 = arith.constant 0 : i32
    %c0_i32_0 = arith.constant 0 : i32
    %c0_i32_1 = arith.constant 0 : i32
    return %c0_i32, %c0_i32_0 : i32, i32
  }
  func.func @transform_4(%arg0: i32) -> (i32, i32) {
    %c0_i32 = arith.constant 0 : i32
    %c0_i32_0 = arith.constant 0 : i32
    %c0_i32_1 = arith.constant 0 : i32
    return %c0_i32, %c0_i32_0 : i32, i32
  }
  func.func @transform_5(%arg0: i32) -> (i32, i32) {
    %c0_i32 = arith.constant 0 : i32
    %c0_i32_0 = arith.constant 0 : i32
    %c0_i32_1 = arith.constant 0 : i32
    return %c0_i32, %c0_i32_0 : i32, i32
  }
  func.func @transform_6(%arg0: i32) -> (i32, i32) {
    %c0_i32 = arith.constant 0 : i32
    %c0_i32_0 = arith.constant 0 : i32
    %c0_i32_1 = arith.constant 0 : i32
    return %c0_i32, %c0_i32_0 : i32, i32
  }
  func.func @transform_7(%arg0: i32) -> (i32, i32) {
    %c0_i32 = arith.constant 0 : i32
    %c0_i32_0 = arith.constant 0 : i32
    %c0_i32_1 = arith.constant 0 : i32
    return %c0_i32, %c0_i32_0 : i32, i32
  }
  func.func @transform_8(%arg0: i32) -> (i32, i32) {
    %c0_i32 = arith.constant 0 : i32
    %c0_i32_0 = arith.constant 0 : i32
    %c0_i32_1 = arith.constant 0 : i32
    return %c0_i32, %c0_i32_0 : i32, i32
  }
  func.func @transform_9(%arg0: i32) -> (i32, i32) {
    %c0_i32 = arith.constant 0 : i32
    %c0_i32_0 = arith.constant 0 : i32
    return %arg0, %c0_i32 : i32, i32
  }
}

</mosaic_0001>

<bundles_post_ra>
// kernel: tpu_custom_call.1
= control target key start
LH: loop header
LB: loop body
LE: loop exit
PB: predicated region body
PF: predicated region fallthrough
CT: control target
= control target key end

     0   :  { %14 = vsyncpa [#allocation3], 0  ;;  %s5078_s0 = inlined_call_operand.hbm [shape: f32[8,32], index: 0, kind: input, shape index: {}]   ;;  %s5079_s1 = inlined_call_operand.hbm [shape: bf16[32,512], index: 1, kind: input, shape index: {}]   ;;  %s5080_s2 = inlined_call_operand.hbm [shape: f32[1,512], index: 2, kind: input, shape index: {}]   ;;  %s5081_s3 = inlined_call_operand.hbm [shape: bf16[512,512], index: 3, kind: input, shape index: {}]   ;;  %s5082_s4 = inlined_call_operand.hbm [shape: f32[1,512], index: 4, kind: input, shape index: {}]   ;;  %s5083_s5 = inlined_call_operand.hbm [shape: bf16[512,1024], index: 5, kind: input, shape index: {}]   ;;  %s5084_s6 = inlined_call_operand.vmem [shape: f32[1,1024], index: 6, kind: input, shape index: {}]   ;;  %s5085_s7 = inlined_call_operand.hbm [shape: bf16[1024,128], index: 7, kind: input, shape index: {}]   ;;  %s5086_s8 = inlined_call_operand.vmem [shape: f32[1,128], index: 8, kind: input, shape index: {}]   ;;  %s5087_s9 = inlined_call_operand.hbm [shape: f32[8,128], index: 9, kind: output, shape index: {}]  }
   0x1   :  { %15 = vsyncpa [#allocation6], 0 }
   0x2   :  { %16 = vsyncpa [#allocation9], 0 }
   0x3   :  { %17 = vsyncpa [#allocation12], 0 }
   0x4   :  { %18 = vsyncpa [#allocation4], 0  ;;  %s4871_s30 = smov [#allocation5]  }
   0x5   :  { %s34_s10 = sshll.u32 %s4871_s30, 4  ;;  %s35_s10 = int_to_ptr.vmem [resolvable:$true] %s34_s10 }
   0x6   :  { %s4709_s11 = scalar_lea.vmem %s35_s10, 1024  ;;  %p4714_p1 = scmp.lt.s32.totalorder %s35_s10, %s35_s10 }
   0x7   :  { %p4710_p0 = scmp.ne.s32.totalorder %s35_s10, %s4709_s11  ;;  %p4715_p2 = scmp.lt.s32.totalorder %s4709_s11, %s4709_s11 }
   0x9   :  { %p4716_p3 = por %p4715_p2, %p4714_p1 }
   0xb   :  { %p4717_p4 = pnand %p4716_p3, %p4710_p0 }
   0xd   :  { %4720 = shalt.err (!%p4717_p4)
}
   0xe   :  { %s4872_s12 = smov 256   ;;  %s4873_s13 = smov 16  }
   0xf   :  { %40 = dma.hbm_to_vmem [thread:$0]  %s5079_s1, 1024, %s35_s10, [#allocation6], %s4872_s12, %s4872_s12, %s4873_s13  }
  0x10   :  { %s4874_s16 = smov [#allocation8]   ;;  %s4875_s18 = smov [#allocation11]  }
  0x11   :  { %s56_s17 = sshll.u32 %s4874_s16, 4  ;;  %s78_s19 = sshll.u32 %s4875_s18, 4  ;;  %s57_s17 = int_to_ptr.vmem [resolvable:$true] %s56_s17  ;;  %s79_s19 = int_to_ptr.vmem [resolvable:$true] %s78_s19 }
  0x12   :  { %s4729_s20 = scalar_lea.vmem %s57_s17, 16384  ;;  %p4734_p6 = scmp.lt.s32.totalorder %s57_s17, %s57_s17 }
  0x13   :  { %p4730_p5 = scmp.ne.s32.totalorder %s57_s17, %s4729_s20  ;;  %p4735_p7 = scmp.lt.s32.totalorder %s4729_s20, %s4729_s20 }
  0x15   :  { %p4736_p8 = por %p4735_p7, %p4734_p6 }
  0x17   :  { %p4737_p9 = pnand %p4736_p8, %p4730_p5 }
  0x19   :  { %4740 = shalt.err (!%p4737_p9)
}
  0x1a   :  { %62 = dma.hbm_to_vmem [thread:$0]  %s5081_s3, 16384, %s57_s17, [#allocation9], %s4872_s12, %s4872_s12, %s4873_s13  }
  0x1b   :  { %s4749_s23 = scalar_lea.vmem %s79_s19, 32768  ;;  %p4754_p11 = scmp.lt.s32.totalorder %s79_s19, %s79_s19 }
  0x1c   :  { %p4750_p10 = scmp.ne.s32.totalorder %s79_s19, %s4749_s23  ;;  %p4755_p12 = scmp.lt.s32.totalorder %s4749_s23, %s4749_s23 }
  0x1e   :  { %p4756_p13 = por %p4755_p12, %p4754_p11 }
  0x20   :  { %p4757_p0 = pnand %p4756_p13, %p4750_p10 }
  0x22   :  { %4760 = shalt.err (!%p4757_p0)
}
  0x23   :  { %s4876_s1 = smov 512   ;;  %s4877_s24 = smov 32  }
  0x24   :  { %84 = dma.hbm_to_vmem [thread:$0]  %s5083_s5, 32768, %s79_s19, [#allocation12], %s4876_s1, %s4876_s1, %s4877_s24  }
  0x25   :  { %s4878_s27 = smov [#allocation2]   ;;  %s4879_s29 = smov [#allocation7]  }
  0x26   :  { %s25_s28 = sshll.u32 %s4878_s27, 4  ;;  %s47_s30 = sshll.u32 %s4879_s29, 4  ;;  %s26_s28 = int_to_ptr.vmem [resolvable:$true] %s25_s28  ;;  %s48_s30 = int_to_ptr.vmem [resolvable:$true] %s47_s30 }
  0x27   :  { %s4769_s3 = scalar_lea.vmem %s26_s28, 128  ;;  %p4774_p2 = scmp.lt.s32.totalorder %s26_s28, %s26_s28 }
  0x28   :  { %p4770_p1 = scmp.ne.s32.totalorder %s26_s28, %s4769_s3  ;;  %p4775_p3 = scmp.lt.s32.totalorder %s4769_s3, %s4769_s3 }
  0x2a   :  { %p4776_p4 = por %p4775_p3, %p4774_p2 }
  0x2c   :  { %p4777_p5 = pnand %p4776_p4, %p4770_p1 }
  0x2e   :  { %4780 = shalt.err (!%p4777_p5)
}
  0x2f   :  { %28 = dma.hbm_to_vmem [thread:$0]  %s5078_s0, 128, %s26_s28, [#allocation3]  }
  0x30   :  { %s4789_s12 = scalar_lea.vmem %s48_s30, 64  ;;  %p4794_p7 = scmp.lt.s32.totalorder %s48_s30, %s48_s30 }
  0x31   :  { %p4790_p6 = scmp.ne.s32.totalorder %s48_s30, %s4789_s12  ;;  %p4795_p8 = scmp.lt.s32.totalorder %s4789_s12, %s4789_s12 }
  0x33   :  { %p4796_p9 = por %p4795_p8, %p4794_p7 }
  0x35   :  { %p4797_p10 = pnand %p4796_p9, %p4790_p6 }
  0x37   :  { %4800 = shalt.err (!%p4797_p10)
}
  0x38   :  { %50 = dma.hbm_to_vmem [thread:$0]  %s5080_s2, 64, %s48_s30, [#allocation6]  }
  0x39   :  { %s4880_s14 = smov [#allocation10]   ;;  %s4881_s16 = smov [#allocation13]  }
  0x3a   :  { %s69_s15 = sshll.u32 %s4880_s14, 4  ;;  %s92_s17 = sshll.u32 %s4881_s16, 4  ;;  %s70_s15 = int_to_ptr.vmem [resolvable:$true] %s69_s15  ;;  %s93_s17 = int_to_ptr.vmem [resolvable:$true] %s92_s17 }
  0x3b   :  { %s4809_s18 = scalar_lea.vmem %s70_s15, 64  ;;  %p4814_p12 = scmp.lt.s32.totalorder %s70_s15, %s70_s15 }
  0x3c   :  { %p4810_p11 = scmp.ne.s32.totalorder %s70_s15, %s4809_s18  ;;  %p4815_p13 = scmp.lt.s32.totalorder %s4809_s18, %s4809_s18 }
  0x3e   :  { %p4816_p0 = por %p4815_p13, %p4814_p12 }
  0x40   :  { %p4817_p1 = pnand %p4816_p0, %p4810_p11 }
  0x42   :  { %4820 = shalt.err (!%p4817_p1)
}
  0x43   :  { %72 = dma.hbm_to_vmem [thread:$0]  %s5082_s4, 64, %s70_s15, [#allocation9]  }
  0x44   :  { %s4829_s20 = scalar_lea.vmem %s93_s17, 8192  ;;  %p4834_p3 = scmp.lt.s32.totalorder %s93_s17, %s93_s17 }
  0x45   :  { %p4830_p2 = scmp.ne.s32.totalorder %s93_s17, %s4829_s20  ;;  %p4835_p4 = scmp.lt.s32.totalorder %s4829_s20, %s4829_s20 }
  0x47   :  { %p4836_p5 = por %p4835_p4, %p4834_p3 }
  0x49   :  { %p4837_p6 = pnand %p4836_p5, %p4830_p2 }
  0x4b   :  { %4840 = shalt.err (!%p4837_p6)
}
  0x4c   :  { %s4882_s2 = smov 64   ;;  %s4883_s21 = smov 4  }
  0x4d   :  { %98 = dma.hbm_to_vmem [thread:$0]  %s5085_s7, 8192, %s93_s17, [#allocation12], %s4882_s2, %s4882_s2, %s4883_s21  }
  0x4e   :  { %4861 = dma.done.wait [#allocation3], 128  }
  0x4f   :  { %4862 = vsyncadd [#allocation3], 4294967168 }
  0x50   :  { %4863 = dma.done.wait [#allocation6], 1088  }
  0x51   :  { %4864 = vsyncadd [#allocation6], 4294966208 }
  0x52   :  { %4865 = dma.done.wait [#allocation9], 16448  }
  0x53   :  { %4866 = vsyncadd [#allocation9], 4294950848 }
  0x54   :  { %4867 = dma.done.wait [#allocation12], 40960  }
  0x55   :  { %4868 = vsyncadd [#allocation12], 4294926336  ;;  %v4884_v0 = vmov 0   ;;  %v4433_v1 = vld [vmem:[#allocation5 + $0x24] ss:$16 sps:$4 sm:$0xff]   ;;  %v123_v9 = vld [vmem:[#allocation2] sm:$0xff] }
  0x56   :  { %231 = vmatprep.mubr.bf16.mxu0 %v4884_v0  ;;  %272 = vmatprep.mubr.bf16.mxu1 %v4884_v0  ;;  %v4435_v2 = vld [vmem:[#allocation5 + $0x2c] ss:$16 sps:$4 sm:$0xff]   ;;  %v4437_v3 = vld [vmem:[#allocation5 + $0x20] ss:$16 sps:$4 sm:$0xff]   ;;  %v4438_v4 = vld [vmem:[#allocation5 + $0x28] ss:$16 sps:$4 sm:$0xff]   ;;  %v124_v12 = vpack.c.bf16 %v123_v9, %v123_v9 }
  0x57   :  { %211 = vmatprep.subr.bf16.mxu0 %v4433_v1  ;;  %252 = vmatprep.subr.bf16.mxu1 %v4435_v2  ;;  %v4439_v5 = vld [vmem:[#allocation5 + $0x4] ss:$16 sps:$4 sm:$0xff]   ;;  %v4441_v6 = vld [vmem:[#allocation5 + $0xc] ss:$16 sps:$4 sm:$0xff]   ;;  %v4443_v7 = vld [vmem:[#allocation5] ss:$16 sps:$4 sm:$0xff]  }
  0x58   :  { %212 = vmatpush1.bf16.msra.mxu0 %v4437_v3  ;;  %253 = vmatpush1.bf16.msra.mxu1 %v4438_v4  ;;  %v4444_v8 = vld [vmem:[#allocation5 + $0x8] ss:$16 sps:$4 sm:$0xff]   ;;  %v4445_v10 = vld [vmem:[#allocation8 + $0xe0] ss:$16 sps:$4 sm:$0xff]   ;;  %vm195_vm0 = vcmask 261120   ;;  %s4885_s24 = smov [#allocation14]  }
  0x59   :  { %213 = vmatprep.subr.bf16.mxu0 %v4439_v5  ;;  %254 = vmatprep.subr.bf16.mxu1 %v4441_v6  ;;  %v4447_v11 = vld [vmem:[#allocation8 + $0xe4] ss:$16 sps:$4 sm:$0xff]   ;;  %v4448_v13 = vld [vmem:[#allocation8 + $0x2e0] ss:$16 sps:$4 sm:$0xff]   ;;  %s3859_s25 = sshll.u32 %s4885_s24, 4  ;;  %s3860_s25 = int_to_ptr.vmem [resolvable:$true] %s3859_s25 }
  0x5a   :  { %v4450_v14 = vld [vmem:[#allocation8 + $0x2e4] ss:$16 sps:$4 sm:$0xff]   ;;  %v4451_v17 = vld [vmem:[#allocation8 + $0xc0] ss:$16 sps:$4 sm:$0xff]   ;;  %p4846_p8 = scmp.lt.s32.totalorder %s3860_s25, %s3860_s25 }
  0x5b   :  { %v4453_v15 = vld [vmem:[#allocation8 + $0xc4] ss:$16 sps:$4 sm:$0xff]   ;;  %v4454_v18 = vld [vmem:[#allocation8 + $0x2c0] ss:$16 sps:$4 sm:$0xff]  }
  0x5c   :  { %214 = vmatpush1.bf16.msra.mxu0 %v4443_v7  ;;  %255 = vmatpush1.bf16.msra.mxu1 %v4444_v8  ;;  %v4456_v16 = vld [vmem:[#allocation8 + $0x2c4] ss:$16 sps:$4 sm:$0xff]   ;;  %v4457_v21 = vld [vmem:[#allocation8 + $0xa0] ss:$16 sps:$4 sm:$0xff]  }
  0x5d   :  { %1079 = vmatprep.subr.bf16.mxu0 %v4447_v11  ;;  %1120 = vmatprep.subr.bf16.mxu1 %v4450_v14  ;;  %v4459_v19 = vld [vmem:[#allocation8 + $0xa4] ss:$16 sps:$4 sm:$0xff]   ;;  %v4460_v22 = vld [vmem:[#allocation8 + $0x2a0] ss:$16 sps:$4 sm:$0xff]   ;;  %v4543_v11 = vld [vmem:[#allocation8 + $0xec] ss:$16 sps:$4 sm:$0xff]  }
  0x5e   :  { %v4462_v20 = vld [vmem:[#allocation8 + $0x2a4] ss:$16 sps:$4 sm:$0xff]   ;;  %v4463_v25 = vld [vmem:[#allocation8 + $0x80] ss:$16 sps:$4 sm:$0xff]  }
  0x5f   :  { %3879 = vmatmul.mubr.msk.bf16.vlgmr.msra.gmra.mxu0 %vm195_vm0, %v124_v12  ;;  %3880 = vmatmul.mubr.msk.bf16.vlgmr.msra.gmra.mxu1 %vm195_vm0, %v124_v12  ;;  %v4465_v23 = vld [vmem:[#allocation8 + $0x84] ss:$16 sps:$4 sm:$0xff]   ;;  %v4466_v26 = vld [vmem:[#allocation8 + $0x280] ss:$16 sps:$4 sm:$0xff]   ;;  %v4546_v12 = vld [vmem:[#allocation8 + $0x2ec] ss:$16 sps:$4 sm:$0xff]  }
  0x60   :  { %1080 = vmatpush1.bf16.msra.mxu0 %v4445_v10  ;;  %1121 = vmatpush1.bf16.msra.mxu1 %v4448_v13  ;;  %v4468_v24 = vld [vmem:[#allocation8 + $0x284] ss:$16 sps:$4 sm:$0xff]   ;;  %v4469_v29 = vld [vmem:[#allocation8 + $0x60] ss:$16 sps:$4 sm:$0xff]   ;;  %v135_v13 = vlaneseq }
  0x61   :  { %1081 = vmatprep.subr.bf16.mxu0 %v4453_v15  ;;  %1122 = vmatprep.subr.bf16.mxu1 %v4456_v16  ;;  %v4471_v27 = vld [vmem:[#allocation8 + $0x64] ss:$16 sps:$4 sm:$0xff]   ;;  %v4472_v30 = vld [vmem:[#allocation8 + $0x260] ss:$16 sps:$4 sm:$0xff]  }
  0x62   :  { %v4474_v28 = vld [vmem:[#allocation8 + $0x264] ss:$16 sps:$4 sm:$0xff]   ;;  %v4475_v33 = vld [vmem:[#allocation8 + $0x40] ss:$16 sps:$4 sm:$0xff]   ;;  %v4957_v14 = vshrl.u32 %v135_v13, 7 }
  0x63   :  { %v4477_v31 = vld [vmem:[#allocation8 + $0x44] ss:$16 sps:$4 sm:$0xff]   ;;  %v4478_v34 = vld [vmem:[#allocation8 + $0x240] ss:$16 sps:$4 sm:$0xff]   ;;  %v4592_v13 = vld [vmem:[#allocation8 + $0x3e8] ss:$16 sps:$4 sm:$0xff]  }
  0x64   :  { %1082 = vmatpush1.bf16.msra.mxu0 %v4451_v17  ;;  %1123 = vmatpush1.bf16.msra.mxu1 %v4454_v18  ;;  %v4480_v32 = vld [vmem:[#allocation8 + $0x244] ss:$16 sps:$4 sm:$0xff]   ;;  %v4481_v37 = vld [vmem:[#allocation8 + $0x20] ss:$16 sps:$4 sm:$0xff]   ;;  %v4960_v15 = vsub.s32 0, %v4957_v14  ;;  %v4963_v16 = vsub.s32 2, %v4957_v14 }
  0x65   :  { %1083 = vmatprep.subr.bf16.mxu0 %v4459_v19  ;;  %1124 = vmatprep.subr.bf16.mxu1 %v4462_v20  ;;  %v4483_v35 = vld [vmem:[#allocation8 + $0x24] ss:$16 sps:$4 sm:$0xff]   ;;  %v4484_v38 = vld [vmem:[#allocation8 + $0x220] ss:$16 sps:$4 sm:$0xff]   ;;  %v133_v17 = vld [vmem:[#allocation7] sm:$0xf] }
  0x66   :  { %v4486_v36 = vld [vmem:[#allocation8 + $0x224] ss:$16 sps:$4 sm:$0xff]   ;;  %v4487_v41 = vld [vmem:[#allocation8] ss:$16 sps:$4 sm:$0xff]   ;;  %v4966_v18 = vsub.s32 1, %v4957_v14  ;;  %v4969_v19 = vsub.s32 3, %v4957_v14  ;;  %v138_v20 = vrot.slane %v133_v17, %v4960_v15 }
  0x67   :  { %v4489_v39 = vld [vmem:[#allocation8 + $0x4] ss:$16 sps:$4 sm:$0xff]   ;;  %v4490_v42 = vld [vmem:[#allocation8 + $0x200] ss:$16 sps:$4 sm:$0xff]  }
  0x68   :  { %1084 = vmatpush1.bf16.msra.mxu0 %v4457_v21  ;;  %1125 = vmatpush1.bf16.msra.mxu1 %v4460_v22  ;;  %v4492_v40 = vld [vmem:[#allocation8 + $0x204] ss:$16 sps:$4 sm:$0xff]   ;;  %v4493_v45 = vld [vmem:[#allocation8 + $0x1e0] ss:$16 sps:$4 sm:$0xff]   ;;  %v146_v21 = vrot.slane %v133_v17, %v4963_v16  ;;  %v142_v22 = vrot.slane %v133_v17, %v4966_v18 }
  0x69   :  { %1085 = vmatprep.subr.bf16.mxu0 %v4465_v23  ;;  %1126 = vmatprep.subr.bf16.mxu1 %v4468_v24  ;;  %v4495_v43 = vld [vmem:[#allocation8 + $0x1e4] ss:$16 sps:$4 sm:$0xff]   ;;  %v4496_v46 = vld [vmem:[#allocation8 + $0x3e0] ss:$16 sps:$4 sm:$0xff]   ;;  %v150_v23 = vrot.slane %v133_v17, %v4969_v19  ;;  %v4597_v17 = vld [vmem:[#allocation8 + $0x1cc] ss:$16 sps:$4 sm:$0xff]  }
  0x6a   :  { %v4498_v44 = vld [vmem:[#allocation8 + $0x3e4] ss:$16 sps:$4 sm:$0xff]   ;;  %v4499_v49 = vld [vmem:[#allocation8 + $0x1c0] ss:$16 sps:$4 sm:$0xff]  }
  0x6b   :  { %v4501_v47 = vld [vmem:[#allocation8 + $0x1c4] ss:$16 sps:$4 sm:$0xff]   ;;  %v4502_v50 = vld [vmem:[#allocation8 + $0x3c0] ss:$16 sps:$4 sm:$0xff]  }
  0x6c   :  { %1086 = vmatpush1.bf16.msra.mxu0 %v4463_v25  ;;  %1127 = vmatpush1.bf16.msra.mxu1 %v4466_v26  ;;  %v4504_v48 = vld [vmem:[#allocation8 + $0x3c4] ss:$16 sps:$4 sm:$0xff]   ;;  %v4505_v53 = vld [vmem:[#allocation8 + $0x1a0] ss:$16 sps:$4 sm:$0xff]  }
  0x6d   :  { %1087 = vmatprep.subr.bf16.mxu0 %v4471_v27  ;;  %1128 = vmatprep.subr.bf16.mxu1 %v4474_v28  ;;  %v4507_v51 = vld [vmem:[#allocation8 + $0x1a4] ss:$16 sps:$4 sm:$0xff]   ;;  %v4508_v54 = vld [vmem:[#allocation8 + $0x3a0] ss:$16 sps:$4 sm:$0xff]  }
  0x6e   :  { %v4510_v52 = vld [vmem:[#allocation8 + $0x3a4] ss:$16 sps:$4 sm:$0xff]   ;;  %v4511_v57 = vld [vmem:[#allocation8 + $0x180] ss:$16 sps:$4 sm:$0xff]  }
  0x6f   :  { %v4513_v55 = vld [vmem:[#allocation8 + $0x184] ss:$16 sps:$4 sm:$0xff]   ;;  %v4514_v58 = vld [vmem:[#allocation8 + $0x380] ss:$16 sps:$4 sm:$0xff]  }
  0x70   :  { %1088 = vmatpush1.bf16.msra.mxu0 %v4469_v29  ;;  %1129 = vmatpush1.bf16.msra.mxu1 %v4472_v30  ;;  %v4516_v56 = vld [vmem:[#allocation8 + $0x384] ss:$16 sps:$4 sm:$0xff]   ;;  %v4517_v61 = vld [vmem:[#allocation8 + $0x160] ss:$16 sps:$4 sm:$0xff]  }
  0x71   :  { %1089 = vmatprep.subr.bf16.mxu0 %v4477_v31  ;;  %1130 = vmatprep.subr.bf16.mxu1 %v4480_v32  ;;  %v4519_v59 = vld [vmem:[#allocation8 + $0x164] ss:$16 sps:$4 sm:$0xff]   ;;  %v4520_v62 = vld [vmem:[#allocation8 + $0x360] ss:$16 sps:$4 sm:$0xff]  }
  0x72   :  { %v4522_v60 = vld [vmem:[#allocation8 + $0x364] ss:$16 sps:$4 sm:$0xff]   ;;  %v4523_v1 = vld [vmem:[#allocation8 + $0x140] ss:$16 sps:$4 sm:$0xff]  }
  0x73   :  { %v4525_v63 = vld [vmem:[#allocation8 + $0x144] ss:$16 sps:$4 sm:$0xff]   ;;  %v4526_v2 = vld [vmem:[#allocation8 + $0x340] ss:$16 sps:$4 sm:$0xff]  }
  0x74   :  { %1090 = vmatpush1.bf16.msra.mxu0 %v4475_v33  ;;  %1131 = vmatpush1.bf16.msra.mxu1 %v4478_v34  ;;  %v4528_v0 = vld [vmem:[#allocation8 + $0x344] ss:$16 sps:$4 sm:$0xff]   ;;  %v4529_v5 = vld [vmem:[#allocation8 + $0x120] ss:$16 sps:$4 sm:$0xff]  }
  0x75   :  { %1091 = vmatprep.subr.bf16.mxu0 %v4483_v35  ;;  %1132 = vmatprep.subr.bf16.mxu1 %v4486_v36  ;;  %v4531_v3 = vld [vmem:[#allocation8 + $0x124] ss:$16 sps:$4 sm:$0xff]   ;;  %v4532_v6 = vld [vmem:[#allocation8 + $0x320] ss:$16 sps:$4 sm:$0xff]  }
  0x76   :  { %v4534_v4 = vld [vmem:[#allocation8 + $0x324] ss:$16 sps:$4 sm:$0xff]   ;;  %v4535_v9 = vld [vmem:[#allocation8 + $0x100] ss:$16 sps:$4 sm:$0xff]  }
  0x77   :  { %v4537_v7 = vld [vmem:[#allocation8 + $0x104] ss:$16 sps:$4 sm:$0xff]   ;;  %v4538_v10 = vld [vmem:[#allocation8 + $0x300] ss:$16 sps:$4 sm:$0xff]  }
  0x78   :  { %1092 = vmatpush1.bf16.msra.mxu0 %v4481_v37  ;;  %1133 = vmatpush1.bf16.msra.mxu1 %v4484_v38  ;;  %v4540_v8 = vld [vmem:[#allocation8 + $0x304] ss:$16 sps:$4 sm:$0xff]  }
  0x79   :  { %1093 = vmatprep.subr.bf16.mxu0 %v4489_v39  ;;  %1134 = vmatprep.subr.bf16.mxu1 %v4492_v40 }
  0x7c   :  { %1094 = vmatpush1.bf16.msra.mxu0 %v4487_v41  ;;  %1135 = vmatpush1.bf16.msra.mxu1 %v4490_v42 }
  0x7d   :  { %1095 = vmatprep.subr.bf16.mxu0 %v4495_v43  ;;  %1136 = vmatprep.subr.bf16.mxu1 %v4498_v44  ;;  %v4541_v43 = vld [vmem:[#allocation8 + $0xe8] ss:$16 sps:$4 sm:$0xff]  }
  0x7e   :  { %v4544_v44 = vld [vmem:[#allocation8 + $0x2e8] ss:$16 sps:$4 sm:$0xff]  }
  0x80   :  { %1096 = vmatpush2.bf16.msra.mxu0 %v4493_v45  ;;  %1137 = vmatpush2.bf16.msra.mxu1 %v4496_v46  ;;  %v4549_v46 = vld [vmem:[#allocation8 + $0xcc] ss:$16 sps:$4 sm:$0xff]  }
  0x81   :  { %1097 = vmatprep.subr.bf16.mxu0 %v4501_v47  ;;  %1138 = vmatprep.subr.bf16.mxu1 %v4504_v48  ;;  %v4552_v47 = vld [vmem:[#allocation8 + $0x2cc] ss:$16 sps:$4 sm:$0xff]   ;;  %v4547_v48 = vld [vmem:[#allocation8 + $0xc8] ss:$16 sps:$4 sm:$0xff]  }
  0x84   :  { %1098 = vmatpush2.bf16.msra.mxu0 %v4499_v49  ;;  %1139 = vmatpush2.bf16.msra.mxu1 %v4502_v50  ;;  %v4550_v49 = vld [vmem:[#allocation8 + $0x2c8] ss:$16 sps:$4 sm:$0xff]   ;;  %v4555_v50 = vld [vmem:[#allocation8 + $0xac] ss:$16 sps:$4 sm:$0xff]  }
  0x85   :  { %1099 = vmatprep.subr.bf16.mxu0 %v4507_v51  ;;  %1140 = vmatprep.subr.bf16.mxu1 %v4510_v52  ;;  %v4558_v51 = vld [vmem:[#allocation8 + $0x2ac] ss:$16 sps:$4 sm:$0xff]   ;;  %v4553_v52 = vld [vmem:[#allocation8 + $0xa8] ss:$16 sps:$4 sm:$0xff]  }
  0x88   :  { %1100 = vmatpush2.bf16.msra.mxu0 %v4505_v53  ;;  %1141 = vmatpush2.bf16.msra.mxu1 %v4508_v54  ;;  %v4556_v53 = vld [vmem:[#allocation8 + $0x2a8] ss:$16 sps:$4 sm:$0xff]   ;;  %v4561_v54 = vld [vmem:[#allocation8 + $0x8c] ss:$16 sps:$4 sm:$0xff]  }
  0x89   :  { %1101 = vmatprep.subr.bf16.mxu0 %v4513_v55  ;;  %1142 = vmatprep.subr.bf16.mxu1 %v4516_v56  ;;  %v4564_v55 = vld [vmem:[#allocation8 + $0x28c] ss:$16 sps:$4 sm:$0xff]   ;;  %v4559_v56 = vld [vmem:[#allocation8 + $0x88] ss:$16 sps:$4 sm:$0xff]  }
  0x8c   :  { %1102 = vmatpush2.bf16.msra.mxu0 %v4511_v57  ;;  %1143 = vmatpush2.bf16.msra.mxu1 %v4514_v58  ;;  %v4562_v57 = vld [vmem:[#allocation8 + $0x288] ss:$16 sps:$4 sm:$0xff]   ;;  %v4567_v58 = vld [vmem:[#allocation8 + $0x6c] ss:$16 sps:$4 sm:$0xff]  }
  0x8d   :  { %1103 = vmatprep.subr.bf16.mxu0 %v4519_v59  ;;  %1144 = vmatprep.subr.bf16.mxu1 %v4522_v60  ;;  %v4570_v59 = vld [vmem:[#allocation8 + $0x26c] ss:$16 sps:$4 sm:$0xff]   ;;  %v4565_v60 = vld [vmem:[#allocation8 + $0x68] ss:$16 sps:$4 sm:$0xff]  }
  0x90   :  { %1104 = vmatpush2.bf16.msra.mxu0 %v4517_v61  ;;  %1145 = vmatpush2.bf16.msra.mxu1 %v4520_v62  ;;  %v4568_v61 = vld [vmem:[#allocation8 + $0x268] ss:$16 sps:$4 sm:$0xff]   ;;  %v4573_v62 = vld [vmem:[#allocation8 + $0x4c] ss:$16 sps:$4 sm:$0xff]  }
  0x91   :  { %1105 = vmatprep.subr.bf16.mxu0 %v4525_v63  ;;  %1146 = vmatprep.subr.bf16.mxu1 %v4528_v0  ;;  %v4576_v63 = vld [vmem:[#allocation8 + $0x24c] ss:$16 sps:$4 sm:$0xff]   ;;  %v4571_v0 = vld [vmem:[#allocation8 + $0x48] ss:$16 sps:$4 sm:$0xff]  }
  0x94   :  { %1106 = vmatpush2.bf16.msra.mxu0 %v4523_v1  ;;  %1147 = vmatpush2.bf16.msra.mxu1 %v4526_v2  ;;  %v4574_v1 = vld [vmem:[#allocation8 + $0x248] ss:$16 sps:$4 sm:$0xff]   ;;  %v4579_v2 = vld [vmem:[#allocation8 + $0x2c] ss:$16 sps:$4 sm:$0xff]  }
  0x95   :  { %1107 = vmatprep.subr.bf16.mxu0 %v4531_v3  ;;  %1148 = vmatprep.subr.bf16.mxu1 %v4534_v4  ;;  %v4582_v3 = vld [vmem:[#allocation8 + $0x22c] ss:$16 sps:$4 sm:$0xff]   ;;  %v4577_v4 = vld [vmem:[#allocation8 + $0x28] ss:$16 sps:$4 sm:$0xff]  }
  0x98   :  { %1108 = vmatpush2.bf16.msra.mxu0 %v4529_v5  ;;  %1149 = vmatpush2.bf16.msra.mxu1 %v4532_v6  ;;  %v4580_v5 = vld [vmem:[#allocation8 + $0x228] ss:$16 sps:$4 sm:$0xff]   ;;  %v4585_v6 = vld [vmem:[#allocation8 + $0xc] ss:$16 sps:$4 sm:$0xff]  }
  0x99   :  { %1109 = vmatprep.subr.bf16.mxu0 %v4537_v7  ;;  %1150 = vmatprep.subr.bf16.mxu1 %v4540_v8  ;;  %v4588_v7 = vld [vmem:[#allocation8 + $0x20c] ss:$16 sps:$4 sm:$0xff]   ;;  %v4583_v8 = vld [vmem:[#allocation8 + $0x8] ss:$16 sps:$4 sm:$0xff]  }
  0x9c   :  { %1110 = vmatpush2.bf16.msra.mxu0 %v4535_v9  ;;  %1151 = vmatpush2.bf16.msra.mxu1 %v4538_v10  ;;  %v4586_v9 = vld [vmem:[#allocation8 + $0x208] ss:$16 sps:$4 sm:$0xff]   ;;  %v4591_v10 = vld [vmem:[#allocation8 + $0x1ec] ss:$16 sps:$4 sm:$0xff]  }
  0x9d   :  { %1161 = vmatprep.subr.bf16.mxu0 %v4543_v11  ;;  %1202 = vmatprep.subr.bf16.mxu1 %v4546_v12  ;;  %v4594_v11 = vld [vmem:[#allocation8 + $0x3ec] ss:$16 sps:$4 sm:$0xff]   ;;  %v4589_v12 = vld [vmem:[#allocation8 + $0x1e8] ss:$16 sps:$4 sm:$0xff]  }
 0x11f   :  { %v233_v24 = vpop.f32.mrf.mxu0  ;;  %v274_v25 = vpop.f32.mrf.mxu1 }
 0x120   :  { %v234_v26 = vadd.f32 %v233_v24, %v138_v20  ;;  %v275_v27 = vadd.f32 %v274_v25, %v146_v21  ;;  %v4600_v20 = vld [vmem:[#allocation8 + $0x3cc] ss:$16 sps:$4 sm:$0xff]   ;;  %v4595_v21 = vld [vmem:[#allocation8 + $0x1c8] ss:$16 sps:$4 sm:$0xff]  }
 0x121   :  { %v235_v28 = vpop.f32.mrf.mxu0  ;;  %v276_v29 = vpop.f32.mrf.mxu1  ;;  %v4606_v24 = vld [vmem:[#allocation8 + $0x3ac] ss:$16 sps:$4 sm:$0xff]   ;;  %v4601_v25 = vld [vmem:[#allocation8 + $0x1a8] ss:$16 sps:$4 sm:$0xff]  }
 0x122   :  { %v283_v30 = vmax.f32 %v275_v27, 0.0  ;;  %v236_v31 = vadd.f32 %v235_v28, %v142_v22  ;;  %v277_v32 = vadd.f32 %v276_v29, %v150_v23  ;;  %v281_v33 = vmax.f32 %v234_v26, 0.0  ;;  %v4598_v22 = vld [vmem:[#allocation8 + $0x3c8] ss:$16 sps:$4 sm:$0xff]   ;;  %v4603_v23 = vld [vmem:[#allocation8 + $0x1ac] ss:$16 sps:$4 sm:$0xff]  }
 0x123   :  { %v237_v34 = vpop.f32.mrf.mxu0  ;;  %v278_v35 = vpop.f32.mrf.mxu1  ;;  %v4604_v26 = vld [vmem:[#allocation8 + $0x3a8] ss:$16 sps:$4 sm:$0xff]   ;;  %v4609_v27 = vld [vmem:[#allocation8 + $0x18c] ss:$16 sps:$4 sm:$0xff]  }
 0x124   :  { %v282_v36 = vmax.f32 %v236_v31, 0.0  ;;  %v284_v37 = vmax.f32 %v277_v32, 0.0  ;;  %v4975_v38 = vpack.c.bf16 %v283_v30, %v283_v30  ;;  %v4977_v45 = vpack.c.bf16 %v281_v33, %v281_v33  ;;  %v4612_v28 = vld [vmem:[#allocation8 + $0x38c] ss:$16 sps:$4 sm:$0xff]   ;;  %v4607_v29 = vld [vmem:[#allocation8 + $0x188] ss:$16 sps:$4 sm:$0xff]  }
 0x125   :  { %v238_v39 = vpop.f32.mrf.mxu0  ;;  %v279_v40 = vpop.f32.mrf.mxu1  ;;  %v4610_v30 = vld [vmem:[#allocation8 + $0x388] ss:$16 sps:$4 sm:$0xff]   ;;  %v4615_v31 = vld [vmem:[#allocation8 + $0x16c] ss:$16 sps:$4 sm:$0xff]  }
 0x126   :  { %v286_v41 = vpack.c.bf16 %v282_v36, %v282_v36  ;;  %v288_v42 = vpack.c.bf16 %v284_v37, %v284_v37  ;;  %v4618_v32 = vld [vmem:[#allocation8 + $0x36c] ss:$16 sps:$4 sm:$0xff]   ;;  %v4613_v33 = vld [vmem:[#allocation8 + $0x168] ss:$16 sps:$4 sm:$0xff]  }
 0x127   :  { %v4616_v34 = vld [vmem:[#allocation8 + $0x368] ss:$16 sps:$4 sm:$0xff]   ;;  %v4621_v35 = vld [vmem:[#allocation8 + $0x14c] ss:$16 sps:$4 sm:$0xff]  }
 0x128   :  { %1111 = vmatprep.mubr.bf16.mxu0 %v286_v41  ;;  %1152 = vmatprep.mubr.bf16.mxu1 %v288_v42  ;;  %v4624_v36 = vld [vmem:[#allocation8 + $0x34c] ss:$16 sps:$4 sm:$0xff]   ;;  %v4619_v37 = vld [vmem:[#allocation8 + $0x148] ss:$16 sps:$4 sm:$0xff]  }
 0x129   :  { %1112 = vmatmul.mubr.bf16.vlgmr.msra.gmra.mxu0 %v4977_v45  ;;  %1153 = vmatmul.mubr.bf16.vlgmr.msra.gmra.mxu1 %v4975_v38  ;;  %v4622_v39 = vld [vmem:[#allocation8 + $0x348] ss:$16 sps:$4 sm:$0xff]   ;;  %v4627_v40 = vld [vmem:[#allocation8 + $0x12c] ss:$16 sps:$4 sm:$0xff]  }
 0x12a   :  { %1162 = vmatpush1.bf16.msra.mxu0 %v4541_v43  ;;  %1203 = vmatpush1.bf16.msra.mxu1 %v4544_v44  ;;  %v4628_v43 = vld [vmem:[#allocation8 + $0x328] ss:$16 sps:$4 sm:$0xff]   ;;  %v4633_v44 = vld [vmem:[#allocation8 + $0x10c] ss:$16 sps:$4 sm:$0xff]  }
 0x12b   :  { %1193 = vmatprep.mubr.bf16.mxu0 %v286_v41  ;;  %1234 = vmatprep.mubr.bf16.mxu1 %v288_v42  ;;  %v4630_v41 = vld [vmem:[#allocation8 + $0x32c] ss:$16 sps:$4 sm:$0xff]   ;;  %v4625_v42 = vld [vmem:[#allocation8 + $0x128] ss:$16 sps:$4 sm:$0xff]  }
 0x12c   :  { %1163 = vmatprep.subr.bf16.mxu0 %v4549_v46  ;;  %1204 = vmatprep.subr.bf16.mxu1 %v4552_v47  ;;  %v4636_v46 = vld [vmem:[#allocation8 + $0x30c] ss:$16 sps:$4 sm:$0xff]   ;;  %v1307_v47 = vld [vmem:[#allocation11 + $0x1c0] sm:$0xff] }
 0x12e   :  { %1164 = vmatpush1.bf16.msra.mxu0 %v4547_v48  ;;  %1205 = vmatpush1.bf16.msra.mxu1 %v4550_v49  ;;  %v1311_v48 = vld [vmem:[#allocation11 + $0x1e0] sm:$0xff] }
 0x12f   :  { %1165 = vmatprep.subr.bf16.mxu0 %v4555_v50  ;;  %1206 = vmatprep.subr.bf16.mxu1 %v4558_v51  ;;  %v4631_v49 = vld [vmem:[#allocation8 + $0x108] ss:$16 sps:$4 sm:$0xff]   ;;  %v4066_v51 = vcombine.high %v1307_v47, %v1311_v48 }
 0x130   :  { %v4634_v50 = vld [vmem:[#allocation8 + $0x308] ss:$16 sps:$4 sm:$0xff]  }
 0x132   :  { %1166 = vmatpush1.bf16.msra.mxu0 %v4553_v52  ;;  %1207 = vmatpush1.bf16.msra.mxu1 %v4556_v53  ;;  %v1299_v52 = vld [vmem:[#allocation11 + $0x180] sm:$0xff] }
 0x133   :  { %1167 = vmatprep.subr.bf16.mxu0 %v4561_v54  ;;  %1208 = vmatprep.subr.bf16.mxu1 %v4564_v55  ;;  %v1303_v53 = vld [vmem:[#allocation11 + $0x1a0] sm:$0xff]  ;;  %v4065_v54 = vcombine.low %v1307_v47, %v1311_v48 }
 0x134   :  { %v4058_v55 = vcombine.high %v1299_v52, %v1303_v53  ;;  %v1363_v48 = vld [vmem:[#allocation11 + $0x380] sm:$0xff] }
 0x136   :  { %1168 = vmatpush1.bf16.msra.mxu0 %v4559_v56  ;;  %1209 = vmatpush1.bf16.msra.mxu1 %v4562_v57  ;;  %v1291_v56 = vld [vmem:[#allocation11 + $0x140] sm:$0xff] }
 0x137   :  { %1169 = vmatprep.subr.bf16.mxu0 %v4567_v58  ;;  %1210 = vmatprep.subr.bf16.mxu1 %v4570_v59  ;;  %v1295_v57 = vld [vmem:[#allocation11 + $0x160] sm:$0xff]  ;;  %v4057_v58 = vcombine.low %v1299_v52, %v1303_v53 }
 0x138   :  { %v4050_v59 = vcombine.high %v1291_v56, %v1295_v57 }
 0x13a   :  { %1170 = vmatpush1.bf16.msra.mxu0 %v4565_v60  ;;  %1211 = vmatpush1.bf16.msra.mxu1 %v4568_v61  ;;  %v1283_v60 = vld [vmem:[#allocation11 + $0x100] sm:$0xff] }
 0x13b   :  { %1171 = vmatprep.subr.bf16.mxu0 %v4573_v62  ;;  %1212 = vmatprep.subr.bf16.mxu1 %v4576_v63  ;;  %v1287_v61 = vld [vmem:[#allocation11 + $0x120] sm:$0xff]  ;;  %v4049_v62 = vcombine.low %v1291_v56, %v1295_v57 }
 0x13c   :  { %v4042_v63 = vcombine.high %v1283_v60, %v1287_v61  ;;  %v1355_v56 = vld [vmem:[#allocation11 + $0x340] sm:$0xff] }
 0x13d   :  { %v1359_v57 = vld [vmem:[#allocation11 + $0x360] sm:$0xff] }
 0x13e   :  { %1172 = vmatpush1.bf16.msra.mxu0 %v4571_v0  ;;  %1213 = vmatpush1.bf16.msra.mxu1 %v4574_v1  ;;  %v1275_v0 = vld [vmem:[#allocation11 + $0xc0] sm:$0xff] }
 0x13f   :  { %1173 = vmatprep.subr.bf16.mxu0 %v4579_v2  ;;  %1214 = vmatprep.subr.bf16.mxu1 %v4582_v3  ;;  %v1279_v1 = vld [vmem:[#allocation11 + $0xe0] sm:$0xff] }
 0x140   :  { %v1435_v2 = vld [vmem:[#allocation11 + $0x5c0] sm:$0xff] }
 0x141   :  { %v1439_v3 = vld [vmem:[#allocation11 + $0x5e0] sm:$0xff] }
 0x142   :  { %1174 = vmatpush1.bf16.msra.mxu0 %v4577_v4  ;;  %1215 = vmatpush1.bf16.msra.mxu1 %v4580_v5  ;;  %v4041_v4 = vcombine.low %v1283_v60, %v1287_v61  ;;  %v4193_v5 = vcombine.low %v1435_v2, %v1439_v3 }
 0x143   :  { %1175 = vmatprep.subr.bf16.mxu0 %v4585_v6  ;;  %1216 = vmatprep.subr.bf16.mxu1 %v4588_v7  ;;  %v4983_v6 = vld [vmem:[#allocation11 + $0x1c8] sm:$0xff]  ;;  %v4034_v7 = vcombine.high %v1275_v0, %v1279_v1 }
 0x146   :  { %1176 = vmatpush1.bf16.msra.mxu0 %v4583_v8  ;;  %1217 = vmatpush1.bf16.msra.mxu1 %v4586_v9  ;;  %v1267_v8 = vld [vmem:[#allocation11 + $0x80] sm:$0xff] }
 0x147   :  { %1177 = vmatprep.subr.bf16.mxu0 %v4591_v10  ;;  %1218 = vmatprep.subr.bf16.mxu1 %v4594_v11  ;;  %v1271_v9 = vld [vmem:[#allocation11 + $0xa0] sm:$0xff] }
 0x148   :  { %v1427_v11 = vld [vmem:[#allocation11 + $0x580] sm:$0xff] }
 0x14a   :  { %1178 = vmatpush2.bf16.msra.mxu0 %v4589_v12  ;;  %1219 = vmatpush2.bf16.msra.mxu1 %v4592_v13  ;;  %v1431_v12 = vld [vmem:[#allocation11 + $0x5a0] sm:$0xff]  ;;  %v4033_v13 = vcombine.low %v1275_v0, %v1279_v1 }
 0x14b   :  { %1179 = vmatprep.subr.bf16.mxu0 %v4597_v17  ;;  %1220 = vmatprep.subr.bf16.mxu1 %v4600_v20  ;;  %v4185_v17 = vcombine.low %v1427_v11, %v1431_v12  ;;  %v4186_v20 = vcombine.high %v1427_v11, %v1431_v12  ;;  %v1347_v0 = vld [vmem:[#allocation11 + $0x300] sm:$0xff] }
 0x14c   :  { %v1351_v1 = vld [vmem:[#allocation11 + $0x320] sm:$0xff] }
 0x14d   :  { %v1499_v11 = vld [vmem:[#allocation11 + $0x7c0] sm:$0xff] }
 0x14e   :  { %1180 = vmatpush2.bf16.msra.mxu0 %v4595_v21  ;;  %1221 = vmatpush2.bf16.msra.mxu1 %v4598_v22  ;;  %v4026_v21 = vcombine.high %v1267_v8, %v1271_v9  ;;  %v1259_v22 = vld [vmem:[#allocation11 + $0x40] sm:$0xff] }
 0x14f   :  { %1181 = vmatprep.subr.bf16.mxu0 %v4603_v23  ;;  %1222 = vmatprep.subr.bf16.mxu1 %v4606_v24  ;;  %v1263_v23 = vld [vmem:[#allocation11 + $0x60] sm:$0xff] }
 0x150   :  { %v1419_v24 = vld [vmem:[#allocation11 + $0x540] sm:$0xff] }
 0x151   :  { %v1503_v12 = vld [vmem:[#allocation11 + $0x7e0] sm:$0xff] }
 0x152   :  { %1182 = vmatpush2.bf16.msra.mxu0 %v4601_v25  ;;  %1223 = vmatpush2.bf16.msra.mxu1 %v4604_v26  ;;  %v1423_v25 = vld [vmem:[#allocation11 + $0x560] sm:$0xff]  ;;  %v4025_v26 = vcombine.low %v1267_v8, %v1271_v9 }
 0x153   :  { %1183 = vmatprep.subr.bf16.mxu0 %v4609_v27  ;;  %1224 = vmatprep.subr.bf16.mxu1 %v4612_v28  ;;  %v4177_v27 = vcombine.low %v1419_v24, %v1423_v25  ;;  %v4178_v28 = vcombine.high %v1419_v24, %v1423_v25  ;;  %v1339_v8 = vld [vmem:[#allocation11 + $0x2c0] sm:$0xff] }
 0x154   :  { %v1343_v9 = vld [vmem:[#allocation11 + $0x2e0] sm:$0xff] }
 0x155   :  { %v1491_v24 = vld [vmem:[#allocation11 + $0x780] sm:$0xff] }
 0x156   :  { %1184 = vmatpush2.bf16.msra.mxu0 %v4607_v29  ;;  %1225 = vmatpush2.bf16.msra.mxu1 %v4610_v30  ;;  %v4018_v29 = vcombine.high %v1259_v22, %v1263_v23  ;;  %v1251_v30 = vld [vmem:[#allocation11] sm:$0xff] }
 0x157   :  { %1185 = vmatprep.subr.bf16.mxu0 %v4615_v31  ;;  %1226 = vmatprep.subr.bf16.mxu1 %v4618_v32  ;;  %v1255_v31 = vld [vmem:[#allocation11 + $0x20] sm:$0xff] }
 0x158   :  { %v1411_v32 = vld [vmem:[#allocation11 + $0x500] sm:$0xff] }
 0x159   :  { %v1495_v25 = vld [vmem:[#allocation11 + $0x7a0] sm:$0xff] }
 0x15a   :  { %1186 = vmatpush2.bf16.msra.mxu0 %v4613_v33  ;;  %1227 = vmatpush2.bf16.msra.mxu1 %v4616_v34  ;;  %v1415_v33 = vld [vmem:[#allocation11 + $0x520] sm:$0xff]  ;;  %v4017_v34 = vcombine.low %v1259_v22, %v1263_v23 }
 0x15b   :  { %1187 = vmatprep.subr.bf16.mxu0 %v4621_v35  ;;  %1228 = vmatprep.subr.bf16.mxu1 %v4624_v36  ;;  %v4169_v35 = vcombine.low %v1411_v32, %v1415_v33  ;;  %v4170_v36 = vcombine.high %v1411_v32, %v1415_v33  ;;  %v1331_v22 = vld [vmem:[#allocation11 + $0x280] sm:$0xff] }
 0x15c   :  { %v1335_v23 = vld [vmem:[#allocation11 + $0x2a0] sm:$0xff] }
 0x15d   :  { %v1483_v32 = vld [vmem:[#allocation11 + $0x740] sm:$0xff] }
 0x15e   :  { %1188 = vmatpush2.bf16.msra.mxu0 %v4619_v37  ;;  %1229 = vmatpush2.bf16.msra.mxu1 %v4622_v39  ;;  %v4010_v37 = vcombine.high %v1251_v30, %v1255_v31  ;;  %v1371_v39 = vld [vmem:[#allocation11 + $0x3c0] sm:$0xff] }
 0x15f   :  { %1189 = vmatprep.subr.bf16.mxu0 %v4627_v40  ;;  %1230 = vmatprep.subr.bf16.mxu1 %v4630_v41  ;;  %v1375_v40 = vld [vmem:[#allocation11 + $0x3e0] sm:$0xff] }
 0x160   :  { %v1403_v41 = vld [vmem:[#allocation11 + $0x4c0] sm:$0xff]  ;;  %v4130_v47 = vcombine.high %v1371_v39, %v1375_v40  ;;  %v4129_v52 = vcombine.low %v1371_v39, %v1375_v40 }
 0x161   :  { %v1487_v33 = vld [vmem:[#allocation11 + $0x760] sm:$0xff] }
 0x162   :  { %1190 = vmatpush2.bf16.msra.mxu0 %v4625_v42  ;;  %1231 = vmatpush2.bf16.msra.mxu1 %v4628_v43  ;;  %v1407_v42 = vld [vmem:[#allocation11 + $0x4e0] sm:$0xff]  ;;  %v4009_v43 = vcombine.low %v1251_v30, %v1255_v31 }
 0x163   :  { %1191 = vmatprep.subr.bf16.mxu0 %v4633_v44  ;;  %1232 = vmatprep.subr.bf16.mxu1 %v4636_v46  ;;  %v4161_v44 = vcombine.low %v1403_v41, %v1407_v42  ;;  %v4162_v46 = vcombine.high %v1403_v41, %v1407_v42  ;;  %v1323_v30 = vld [vmem:[#allocation11 + $0x240] sm:$0xff] }
 0x164   :  { %v1327_v31 = vld [vmem:[#allocation11 + $0x260] sm:$0xff] }
 0x165   :  { %v1315_v39 = vld [vmem:[#allocation11 + $0x200] sm:$0xff] }
 0x166   :  { %1192 = vmatpush2.bf16.msra.mxu0 %v4631_v49  ;;  %1233 = vmatpush2.bf16.msra.mxu1 %v4634_v50  ;;  %v1367_v49 = vld [vmem:[#allocation11 + $0x3a0] sm:$0xff] }
 0x167   :  { %2829 = vmatprep.subr.bf16.mxu0 %v4066_v51  ;;  %v1395_v50 = vld [vmem:[#allocation11 + $0x480] sm:$0xff]  ;;  %v4121_v60 = vcombine.low %v1363_v48, %v1367_v49 }
 0x168   :  { %v1399_v51 = vld [vmem:[#allocation11 + $0x4a0] sm:$0xff] }
 0x169   :  { %1194 = vmatmul.mubr.bf16.vlgmr.msra.gmra.mxu0 %v4977_v45  ;;  %1235 = vmatmul.mubr.bf16.vlgmr.msra.gmra.mxu1 %v4975_v38  ;;  %v4194_v45 = vcombine.high %v1435_v2, %v1439_v3  ;;  %v4985_v38 = vld [vmem:[#allocation11 + $0x1e8] sm:$0xff]  ;;  %v4153_v53 = vcombine.low %v1395_v50, %v1399_v51  ;;  %v1379_v2 = vld [vmem:[#allocation11 + $0x400] sm:$0xff] }
 0x16a   :  { %2830 = vmatpush1.bf16.msra.mxu0 %v4065_v54  ;;  %v4067_v10 = vcombine.low %v4983_v6, %v4985_v38  ;;  %v4154_v54 = vcombine.high %v1395_v50, %v1399_v51  ;;  %v1383_v3 = vld [vmem:[#allocation11 + $0x420] sm:$0xff] }
 0x16b   :  { %2831 = vmatprep.subr.bf16.mxu0 %v4058_v55  ;;  %2870 = vmatprep.subr.bf16.mxu1 %v4194_v45  ;;  %v4122_v55 = vcombine.high %v1363_v48, %v1367_v49  ;;  %v4138_v45 = vcombine.high %v1379_v2, %v1383_v3  ;;  %v1319_v40 = vld [vmem:[#allocation11 + $0x220] sm:$0xff] }
 0x16c   :  { %2871 = vmatpush1.bf16.msra.mxu1 %v4193_v5  ;;  %v4137_v5 = vcombine.low %v1379_v2, %v1383_v3  ;;  %v1475_v41 = vld [vmem:[#allocation11 + $0x700] sm:$0xff]  ;;  %v4073_v50 = vcombine.low %v1315_v39, %v1319_v40  ;;  %v4991_v2 = vld [vmem:[#allocation11 + $0x5c8] sm:$0xff] }
 0x16d   :  { %2872 = vmatprep.subr.bf16.mxu1 %v4186_v20  ;;  %v4258_v20 = vcombine.high %v1499_v11, %v1503_v12  ;;  %v1479_v42 = vld [vmem:[#allocation11 + $0x720] sm:$0xff]  ;;  %v4993_v3 = vld [vmem:[#allocation11 + $0x5e8] sm:$0xff] }
 0x16e   :  { %2832 = vmatpush1.bf16.msra.mxu0 %v4057_v58  ;;  %v1387_v58 = vld [vmem:[#allocation11 + $0x440] sm:$0xff] }
 0x16f   :  { %2833 = vmatprep.subr.bf16.mxu0 %v4050_v59  ;;  %v1391_v59 = vld [vmem:[#allocation11 + $0x460] sm:$0xff] }
 0x170   :  { %2873 = vmatpush1.bf16.msra.mxu1 %v4185_v17  ;;  %v4145_v61 = vcombine.low %v1387_v58, %v1391_v59  ;;  %v4257_v17 = vcombine.low %v1499_v11, %v1503_v12  ;;  %v1467_v48 = vld [vmem:[#allocation11 + $0x6c0] sm:$0xff] }
 0x171   :  { %2874 = vmatprep.subr.bf16.mxu1 %v4178_v28  ;;  %v4250_v28 = vcombine.high %v1491_v24, %v1495_v25  ;;  %v1471_v49 = vld [vmem:[#allocation11 + $0x6e0] sm:$0xff] }
 0x172   :  { %2834 = vmatpush1.bf16.msra.mxu0 %v4049_v62  ;;  %v4146_v62 = vcombine.high %v1387_v58, %v1391_v59  ;;  %v4225_v51 = vcombine.low %v1467_v48, %v1471_v49  ;;  %v1451_v58 = vld [vmem:[#allocation11 + $0x640] sm:$0xff] }
 0x173   :  { %2835 = vmatprep.subr.bf16.mxu0 %v4042_v63  ;;  %v4114_v63 = vcombine.high %v1355_v56, %v1359_v57  ;;  %v1455_v59 = vld [vmem:[#allocation11 + $0x660] sm:$0xff] }
 0x174   :  { %2875 = vmatpush1.bf16.msra.mxu1 %v4177_v27  ;;  %v4249_v27 = vcombine.low %v1491_v24, %v1495_v25 }
 0x175   :  { %2876 = vmatprep.subr.bf16.mxu1 %v4170_v36  ;;  %v4242_v36 = vcombine.high %v1483_v32, %v1487_v33 }
 0x176   :  { %2836 = vmatpush1.bf16.msra.mxu0 %v4041_v4  ;;  %v4113_v4 = vcombine.low %v1355_v56, %v1359_v57 }
 0x177   :  { %2837 = vmatprep.subr.bf16.mxu0 %v4034_v7  ;;  %v4106_v7 = vcombine.high %v1347_v0, %v1351_v1 }
 0x178   :  { %2877 = vmatpush1.bf16.msra.mxu1 %v4169_v35  ;;  %v4241_v35 = vcombine.low %v1483_v32, %v1487_v33 }
 0x179   :  { %2878 = vmatprep.subr.bf16.mxu1 %v4162_v46  ;;  %v4234_v46 = vcombine.high %v1475_v41, %v1479_v42 }
 0x17a   :  { %2838 = vmatpush1.bf16.msra.mxu0 %v4033_v13  ;;  %v4105_v13 = vcombine.low %v1347_v0, %v1351_v1 }
 0x17b   :  { %2839 = vmatprep.subr.bf16.mxu0 %v4026_v21  ;;  %v4098_v21 = vcombine.high %v1339_v8, %v1343_v9 }
 0x17c   :  { %2879 = vmatpush1.bf16.msra.mxu1 %v4161_v44  ;;  %v4233_v44 = vcombine.low %v1475_v41, %v1479_v42 }
 0x17d   :  { %2880 = vmatprep.subr.bf16.mxu1 %v4154_v54  ;;  %v1459_v54 = vld [vmem:[#allocation11 + $0x680] sm:$0xff] }
 0x17e   :  { %2840 = vmatpush1.bf16.msra.mxu0 %v4025_v26  ;;  %v4097_v26 = vcombine.low %v1339_v8, %v1343_v9 }
 0x17f   :  { %2841 = vmatprep.subr.bf16.mxu0 %v4018_v29  ;;  %v4090_v29 = vcombine.high %v1331_v22, %v1335_v23 }
 0x180   :  { %2881 = vmatpush1.bf16.msra.mxu1 %v4153_v53  ;;  %v4068_v53 = vcombine.high %v4983_v6, %v4985_v38  ;;  %v1272_v6 = vld [vmem:[#allocation11 + $0xa8] sm:$0xff] }
 0x181   :  { %2882 = vmatprep.subr.bf16.mxu1 %v4146_v62  ;;  %v1443_v62 = vld [vmem:[#allocation11 + $0x600] sm:$0xff] }
 0x182   :  { %2842 = vmatpush1.bf16.msra.mxu0 %v4017_v34  ;;  %v4089_v34 = vcombine.low %v1331_v22, %v1335_v23 }
 0x183   :  { %2843 = vmatprep.subr.bf16.mxu0 %v4010_v37  ;;  %v4082_v37 = vcombine.high %v1323_v30, %v1327_v31 }
 0x184   :  { %2883 = vmatpush1.bf16.msra.mxu1 %v4145_v61  ;;  %v4209_v61 = vcombine.low %v1451_v58, %v1455_v59 }
 0x185   :  { %2884 = vmatprep.subr.bf16.mxu1 %v4138_v45  ;;  %v4999_v45 = vld [vmem:[#allocation10] sm:$0xf] }
 0x186   :  { %2844 = vmatpush1.bf16.msra.mxu0 %v4009_v43  ;;  %v4081_v43 = vcombine.low %v1323_v30, %v1327_v31  ;;  %v426_v8 = vrot.slane %v4999_v45, %v4966_v18  ;;  %v1304_v30 = vld [vmem:[#allocation11 + $0x1a8] sm:$0xff] }
 0x187   :  { %2845 = vmatprep.subr.bf16.mxu0 %v4130_v47  ;;  %v4074_v47 = vcombine.high %v1315_v39, %v1319_v40  ;;  %v1284_v39 = vld [vmem:[#allocation11 + $0x108] sm:$0xff] }
 0x188   :  { %2885 = vmatpush1.bf16.msra.mxu1 %v4137_v5  ;;  %v4195_v5 = vcombine.low %v4991_v2, %v4993_v3  ;;  %v1288_v40 = vld [vmem:[#allocation11 + $0x128] sm:$0xff] }
 0x189   :  { %2886 = vmatprep.subr.bf16.mxu1 %v4258_v20  ;;  %v4044_v42 = vcombine.high %v1284_v39, %v1288_v40 }
 0x18a   :  { %2846 = vmatpush2.bf16.msra.mxu0 %v4129_v52  ;;  %v4226_v52 = vcombine.high %v1467_v48, %v1471_v49  ;;  %v1268_v48 = vld [vmem:[#allocation11 + $0x88] sm:$0xff] }
 0x18b   :  { %2847 = vmatprep.subr.bf16.mxu0 %v4122_v55  ;;  %v1463_v55 = vld [vmem:[#allocation11 + $0x6a0] sm:$0xff]  ;;  %v1260_v49 = vld [vmem:[#allocation11 + $0x48] sm:$0xff] }
 0x18c   :  { %2887 = vmatpush2.bf16.msra.mxu1 %v4257_v17  ;;  %v4217_v56 = vcombine.low %v1459_v54, %v1463_v55  ;;  %v4218_v57 = vcombine.high %v1459_v54, %v1463_v55  ;;  %v1256_v54 = vld [vmem:[#allocation11 + $0x28] sm:$0xff] }
 0x18d   :  { %2888 = vmatprep.subr.bf16.mxu1 %v4250_v28 }
 0x18e   :  { %2848 = vmatpush2.bf16.msra.mxu0 %v4121_v60  ;;  %v4210_v60 = vcombine.high %v1451_v58, %v1455_v59  ;;  %v1376_v58 = vld [vmem:[#allocation11 + $0x3e8] sm:$0xff] }
 0x18f   :  { %2849 = vmatprep.subr.bf16.mxu0 %v4114_v63  ;;  %v1447_v63 = vld [vmem:[#allocation11 + $0x620] sm:$0xff] }
 0x190   :  { %2889 = vmatpush2.bf16.msra.mxu1 %v4249_v27  ;;  %v4202_v0 = vcombine.high %v1443_v62, %v1447_v63  ;;  %v4201_v1 = vcombine.low %v1443_v62, %v1447_v63  ;;  %v1368_v62 = vld [vmem:[#allocation11 + $0x3a8] sm:$0xff] }
 0x191   :  { %2890 = vmatprep.subr.bf16.mxu1 %v4242_v36 }
 0x192   :  { %2850 = vmatpush2.bf16.msra.mxu0 %v4113_v4  ;;  %v4196_v4 = vcombine.high %v4991_v2, %v4993_v3 }
 0x193   :  { %2851 = vmatprep.subr.bf16.mxu0 %v4106_v7  ;;  %v422_v7 = vrot.slane %v4999_v45, %v4960_v15 }
 0x194   :  { %2891 = vmatpush2.bf16.msra.mxu1 %v4241_v35  ;;  %v1296_v35 = vld [vmem:[#allocation11 + $0x168] sm:$0xff] }
 0x195   :  { %2892 = vmatprep.subr.bf16.mxu1 %v4234_v46  ;;  %v4043_v46 = vcombine.low %v1284_v39, %v1288_v40 }
 0x196   :  { %2852 = vmatpush2.bf16.msra.mxu0 %v4105_v13 }
 0x197   :  { %2853 = vmatprep.subr.bf16.mxu0 %v4098_v21 }
 0x198   :  { %2893 = vmatpush2.bf16.msra.mxu1 %v4233_v44  ;;  %v1280_v44 = vld [vmem:[#allocation11 + $0xe8] sm:$0xff] }
 0x199   :  { %2894 = vmatprep.subr.bf16.mxu1 %v4226_v52 }
 0x19a   :  { %2854 = vmatpush2.bf16.msra.mxu0 %v4097_v26 }
 0x19b   :  { %2855 = vmatprep.subr.bf16.mxu0 %v4090_v29  ;;  %v1300_v29 = vld [vmem:[#allocation11 + $0x188] sm:$0xff] }
 0x19c   :  { %2895 = vmatpush2.bf16.msra.mxu1 %v4225_v51  ;;  %v4060_v33 = vcombine.high %v1300_v29, %v1304_v30  ;;  %v4059_v36 = vcombine.low %v1300_v29, %v1304_v30  ;;  %v4027_v51 = vcombine.low %v1268_v48, %v1272_v6  ;;  %v430_v29 = vrot.slane %v4999_v45, %v4963_v16 }
 0x19d   :  { %2896 = vmatprep.subr.bf16.mxu1 %v4218_v57  ;;  %v1372_v57 = vld [vmem:[#allocation11 + $0x3c8] sm:$0xff] }
 0x19e   :  { %2856 = vmatpush2.bf16.msra.mxu0 %v4089_v34  ;;  %v1292_v34 = vld [vmem:[#allocation11 + $0x148] sm:$0xff]  ;;  %v4131_v63 = vcombine.low %v1372_v57, %v1376_v58 }
 0x19f   :  { %2857 = vmatprep.subr.bf16.mxu0 %v4082_v37  ;;  %v4052_v37 = vcombine.high %v1292_v34, %v1296_v35  ;;  %v4051_v41 = vcombine.low %v1292_v34, %v1296_v35  ;;  %v434_v34 = vrot.slane %v4999_v45, %v4969_v19  ;;  %v1316_v35 = vld [vmem:[#allocation11 + $0x208] sm:$0xff] }
 0x1a0   :  { %2897 = vmatpush2.bf16.msra.mxu1 %v4217_v56 }
 0x1a1   :  { %2898 = vmatprep.subr.bf16.mxu1 %v4210_v60  ;;  %v4132_v60 = vcombine.high %v1372_v57, %v1376_v58  ;;  %v1301_v57 = vld [vmem:[#allocation11 + $0x190] sm:$0xff] }
 0x1a2   :  { %2858 = vmatpush2.bf16.msra.mxu0 %v4081_v43  ;;  %v1276_v43 = vld [vmem:[#allocation11 + $0xc8] sm:$0xff]  ;;  %v1305_v58 = vld [vmem:[#allocation11 + $0x1b0] sm:$0xff] }
 0x1a3   :  { %2859 = vmatprep.subr.bf16.mxu0 %v4074_v47  ;;  %v4036_v47 = vcombine.high %v1276_v43, %v1280_v44  ;;  %v4035_v38 = vcombine.low %v1276_v43, %v1280_v44 }
 0x1a4   :  { %2899 = vmatpush2.bf16.msra.mxu1 %v4209_v61  ;;  %v1364_v61 = vld [vmem:[#allocation11 + $0x388] sm:$0xff] }
 0x1a5   :  { %2900 = vmatprep.subr.bf16.mxu1 %v4202_v0  ;;  %v4124_v0 = vcombine.high %v1364_v61, %v1368_v62 }
 0x1a6   :  { %2860 = vmatpush2.bf16.msra.mxu0 %v4073_v50  ;;  %v1264_v50 = vld [vmem:[#allocation11 + $0x68] sm:$0xff] }
 0x1a7   :  { %2911 = vmatprep.subr.bf16.mxu0 %v4068_v53  ;;  %v4020_v52 = vcombine.high %v1260_v49, %v1264_v50  ;;  %v1252_v53 = vld [vmem:[#allocation11 + $0x8] sm:$0xff]  ;;  %v4019_v55 = vcombine.low %v1260_v49, %v1264_v50 }
 0x1a8   :  { %2901 = vmatpush2.bf16.msra.mxu1 %v4201_v1  ;;  %v4012_v56 = vcombine.high %v1252_v53, %v1256_v54  ;;  %v4011_v59 = vcombine.low %v1252_v53, %v1256_v54  ;;  %v1356_v1 = vld [vmem:[#allocation11 + $0x348] sm:$0xff] }
 0x1a9   :  { %2952 = vmatprep.subr.bf16.mxu1 %v4196_v4  ;;  %v1360_v4 = vld [vmem:[#allocation11 + $0x368] sm:$0xff] }
 0x1e9   :  { %v1113_v9 = vpop.f32.mrf.mxu0  ;;  %v1154_v11 = vpop.f32.mrf.mxu1 }
 0x1ea   :  { %v1114_v12 = vadd.f32 %v1113_v9, %v422_v7  ;;  %v4123_v7 = vcombine.low %v1364_v61, %v1368_v62  ;;  %v1348_v9 = vld [vmem:[#allocation11 + $0x308] sm:$0xff] }
 0x1eb   :  { %v1115_v13 = vpop.f32.mrf.mxu0  ;;  %v1156_v17 = vpop.f32.mrf.mxu1 }
 0x1ec   :  { %v1155_v20 = vadd.f32 %v1154_v11, %v1114_v12  ;;  %v1116_v21 = vadd.f32 %v1115_v13, %v426_v8  ;;  %v4116_v8 = vcombine.high %v1356_v1, %v1360_v4  ;;  %v1352_v11 = vld [vmem:[#allocation11 + $0x328] sm:$0xff]  ;;  %v4115_v12 = vcombine.low %v1356_v1, %v1360_v4  ;;  %v1293_v4 = vld [vmem:[#allocation11 + $0x150] sm:$0xff] }
 0x1ed   :  { %v1117_v22 = vpop.f32.mrf.mxu0  ;;  %v1158_v23 = vpop.f32.mrf.mxu1  ;;  %v4108_v13 = vcombine.high %v1348_v9, %v1352_v11  ;;  %v1424_v1 = vld [vmem:[#allocation11 + $0x568] sm:$0xff] }
 0x1ee   :  { %v1157_v24 = vadd.f32 %v1156_v17, %v1116_v21  ;;  %v1243_v25 = vmax.f32 %v1155_v20, 0.0  ;;  %v1340_v17 = vld [vmem:[#allocation11 + $0x2c8] sm:$0xff]  ;;  %v4107_v21 = vcombine.low %v1348_v9, %v1352_v11  ;;  %v4061_v9 = vcombine.low %v1301_v57, %v1305_v58 }
 0x1ef   :  { %v1118_v26 = vpop.f32.mrf.mxu0  ;;  %v1159_v27 = vpop.f32.mrf.mxu1  ;;  %v1344_v20 = vld [vmem:[#allocation11 + $0x2e8] sm:$0xff] }
 0x1f0   :  { %v1244_v28 = vmax.f32 %v1157_v24, 0.0  ;;  %v5007_v32 = vpack.c.bf16 %v1243_v25, %v1243_v25  ;;  %v4100_v22 = vcombine.high %v1340_v17, %v1344_v20  ;;  %v1332_v23 = vld [vmem:[#allocation11 + $0x288] sm:$0xff]  ;;  %v4099_v25 = vcombine.low %v1340_v17, %v1344_v20  ;;  %v1285_v20 = vld [vmem:[#allocation11 + $0x110] sm:$0xff] }
 0x1f1   :  { %v1336_v24 = vld [vmem:[#allocation11 + $0x2a8] sm:$0xff] }
 0x1f2   :  { %v5005_v31 = vpack.c.bf16 %v1244_v28, %v1244_v28  ;;  %v4092_v26 = vcombine.high %v1332_v23, %v1336_v24  ;;  %v1324_v27 = vld [vmem:[#allocation11 + $0x248] sm:$0xff]  ;;  %v4091_v30 = vcombine.low %v1332_v23, %v1336_v24 }
 0x1f3   :  { %v1328_v28 = vld [vmem:[#allocation11 + $0x268] sm:$0xff] }
 0x1f4   :  { %2861 = vmatprep.mubr.bf16.mxu0 %v5005_v31  ;;  %v1416_v17 = vld [vmem:[#allocation11 + $0x528] sm:$0xff] }
 0x1f5   :  { %2862 = vmatmul.mubr.bf16.vlgmr.msra.gmra.mxu0 %v5007_v32  ;;  %v1404_v23 = vld [vmem:[#allocation11 + $0x4c8] sm:$0xff] }
 0x1f6   :  { %2912 = vmatpush1.bf16.msra.mxu0 %v4067_v10  ;;  %2943 = vmatprep.mubr.bf16.mxu0 %v5005_v31  ;;  %v4028_v10 = vcombine.high %v1268_v48, %v1272_v6  ;;  %v1309_v48 = vld [vmem:[#allocation11 + $0x1d0] sm:$0xff]  ;;  %v1408_v24 = vld [vmem:[#allocation11 + $0x4e8] sm:$0xff] }
 0x1f7   :  { %2913 = vmatprep.subr.bf16.mxu0 %v4060_v33  ;;  %v4084_v33 = vcombine.high %v1324_v27, %v1328_v28  ;;  %v1313_v6 = vld [vmem:[#allocation11 + $0x1f0] sm:$0xff] }
 0x1f8   :  { %v4070_v53 = vcombine.high %v1309_v48, %v1313_v6  ;;  %v4069_v61 = vcombine.low %v1309_v48, %v1313_v6 }
 0x1fa   :  { %2914 = vmatpush1.bf16.msra.mxu0 %v4059_v36  ;;  %v1320_v36 = vld [vmem:[#allocation11 + $0x228] sm:$0xff] }
 0x1fb   :  { %2915 = vmatprep.subr.bf16.mxu0 %v4052_v37  ;;  %v4076_v44 = vcombine.high %v1316_v35, %v1320_v36  ;;  %v4075_v45 = vcombine.low %v1316_v35, %v1320_v36  ;;  %v1269_v35 = vld [vmem:[#allocation11 + $0x90] sm:$0xff] }
 0x1fc   :  { %v1273_v36 = vld [vmem:[#allocation11 + $0xb0] sm:$0xff] }
 0x1fd   :  { %v4029_v48 = vcombine.low %v1269_v35, %v1273_v36 }
 0x1fe   :  { %2916 = vmatpush1.bf16.msra.mxu0 %v4051_v41  ;;  %v4083_v41 = vcombine.low %v1324_v27, %v1328_v28 }
 0x1ff   :  { %2917 = vmatprep.subr.bf16.mxu0 %v4044_v42 }
 0x202   :  { %2918 = vmatpush1.bf16.msra.mxu0 %v4043_v46 }
 0x203   :  { %2919 = vmatprep.subr.bf16.mxu0 %v4036_v47 }
 0x206   :  { %2920 = vmatpush1.bf16.msra.mxu0 %v4035_v38 }
 0x207   :  { %2921 = vmatprep.subr.bf16.mxu0 %v4028_v10 }
 0x20a   :  { %2922 = vmatpush1.bf16.msra.mxu0 %v4027_v51 }
 0x20b   :  { %2923 = vmatprep.subr.bf16.mxu0 %v4020_v52 }
 0x20e   :  { %2924 = vmatpush1.bf16.msra.mxu0 %v4019_v55  ;;  %v1428_v55 = vld [vmem:[#allocation11 + $0x588] sm:$0xff] }
 0x20f   :  { %2925 = vmatprep.subr.bf16.mxu0 %v4012_v56  ;;  %v1432_v56 = vld [vmem:[#allocation11 + $0x5a8] sm:$0xff] }
 0x210   :  { %v4188_v62 = vcombine.high %v1428_v55, %v1432_v56 }
 0x212   :  { %2926 = vmatpush1.bf16.msra.mxu0 %v4011_v59 }
 0x213   :  { %2927 = vmatprep.subr.bf16.mxu0 %v4132_v60 }
 0x216   :  { %2928 = vmatpush2.bf16.msra.mxu0 %v4131_v63  ;;  %v4062_v63 = vcombine.high %v1301_v57, %v1305_v58  ;;  %v1373_v57 = vld [vmem:[#allocation11 + $0x3d0] sm:$0xff] }
 0x217   :  { %2929 = vmatprep.subr.bf16.mxu0 %v4124_v0  ;;  %v1420_v0 = vld [vmem:[#allocation11 + $0x548] sm:$0xff]  ;;  %v1377_v58 = vld [vmem:[#allocation11 + $0x3f0] sm:$0xff] }
 0x218   :  { %v4180_v11 = vcombine.high %v1420_v0, %v1424_v1 }
 0x21a   :  { %2930 = vmatpush2.bf16.msra.mxu0 %v4123_v7  ;;  %v1297_v7 = vld [vmem:[#allocation11 + $0x170] sm:$0xff] }
 0x21b   :  { %2931 = vmatprep.subr.bf16.mxu0 %v4116_v8  ;;  %v4187_v8 = vcombine.low %v1428_v55, %v1432_v56  ;;  %v4053_v2 = vcombine.low %v1293_v4, %v1297_v7  ;;  %v1500_v55 = vld [vmem:[#allocation11 + $0x7c8] sm:$0xff] }
 0x21c   :  { %v1504_v56 = vld [vmem:[#allocation11 + $0x7e8] sm:$0xff] }
 0x21e   :  { %2932 = vmatpush2.bf16.msra.mxu0 %v4115_v12  ;;  %v4054_v12 = vcombine.high %v1293_v4, %v1297_v7  ;;  %v1496_v4 = vld [vmem:[#allocation11 + $0x7a8] sm:$0xff]  ;;  %v1365_v7 = vld [vmem:[#allocation11 + $0x390] sm:$0xff] }
 0x21f   :  { %2933 = vmatprep.subr.bf16.mxu0 %v4108_v13  ;;  %v1412_v13 = vld [vmem:[#allocation11 + $0x508] sm:$0xff] }
 0x220   :  { %v4172_v3 = vcombine.high %v1412_v13, %v1416_v17  ;;  %v4171_v27 = vcombine.low %v1412_v13, %v1416_v17  ;;  %v1484_v17 = vld [vmem:[#allocation11 + $0x748] sm:$0xff] }
 0x222   :  { %2934 = vmatpush2.bf16.msra.mxu0 %v4107_v21  ;;  %v1289_v21 = vld [vmem:[#allocation11 + $0x130] sm:$0xff] }
 0x223   :  { %2935 = vmatprep.subr.bf16.mxu0 %v4100_v22  ;;  %v4179_v22 = vcombine.low %v1420_v0, %v1424_v1  ;;  %v4045_v28 = vcombine.low %v1285_v20, %v1289_v21  ;;  %v4134_v0 = vcombine.high %v1373_v57, %v1377_v58  ;;  %v1492_v1 = vld [vmem:[#allocation11 + $0x788] sm:$0xff] }
 0x226   :  { %2936 = vmatpush2.bf16.msra.mxu0 %v4099_v25  ;;  %v1277_v25 = vld [vmem:[#allocation11 + $0xd0] sm:$0xff] }
 0x227   :  { %2937 = vmatprep.subr.bf16.mxu0 %v4092_v26  ;;  %v1281_v26 = vld [vmem:[#allocation11 + $0xf0] sm:$0xff] }
 0x229   :  { %v1195_v37 = vpop.f32.mrf.mxu0  ;;  %v1236_v39 = vpop.f32.mrf.mxu1 }
 0x22a   :  { %v1196_v40 = vadd.f32 %v1195_v37, %v430_v29  ;;  %2938 = vmatpush2.bf16.msra.mxu0 %v4091_v30  ;;  %v4164_v29 = vcombine.high %v1404_v23, %v1408_v24  ;;  %v4038_v30 = vcombine.high %v1277_v25, %v1281_v26  ;;  %v4163_v37 = vcombine.low %v1404_v23, %v1408_v24  ;;  %v1476_v24 = vld [vmem:[#allocation11 + $0x708] sm:$0xff] }
 0x22b   :  { %v1197_v42 = vpop.f32.mrf.mxu0  ;;  %v1238_v43 = vpop.f32.mrf.mxu1  ;;  %2939 = vmatprep.subr.bf16.mxu0 %v4084_v33  ;;  %v1396_v33 = vld [vmem:[#allocation11 + $0x488] sm:$0xff] }
 0x22c   :  { %v1237_v46 = vadd.f32 %v1236_v39, %v1196_v40  ;;  %v1198_v47 = vadd.f32 %v1197_v42, %v434_v34  ;;  %v1400_v34 = vld [vmem:[#allocation11 + $0x4a8] sm:$0xff]  ;;  %v4037_v39 = vcombine.low %v1277_v25, %v1281_v26  ;;  %v1349_v26 = vld [vmem:[#allocation11 + $0x310] sm:$0xff] }
 0x22d   :  { %v1199_v38 = vpop.f32.mrf.mxu0  ;;  %v1240_v10 = vpop.f32.mrf.mxu1  ;;  %v4156_v40 = vcombine.high %v1396_v33, %v1400_v34  ;;  %v1388_v42 = vld [vmem:[#allocation11 + $0x448] sm:$0xff] }
 0x22e   :  { %v1239_v49 = vadd.f32 %v1238_v43, %v1198_v47  ;;  %2940 = vmatpush2.bf16.msra.mxu0 %v4083_v41  ;;  %v1245_v50 = vmax.f32 %v1237_v46, 0.0  ;;  %v4030_v41 = vcombine.high %v1269_v35, %v1273_v36  ;;  %v1392_v43 = vld [vmem:[#allocation11 + $0x468] sm:$0xff]  ;;  %v1265_v46 = vld [vmem:[#allocation11 + $0x70] sm:$0xff]  ;;  %v4155_v47 = vcombine.low %v1396_v33, %v1400_v34 }
 0x22f   :  { %v1200_v51 = vpop.f32.mrf.mxu0  ;;  %v1241_v52 = vpop.f32.mrf.mxu1  ;;  %2941 = vmatprep.subr.bf16.mxu0 %v4076_v44  ;;  %v1261_v44 = vld [vmem:[#allocation11 + $0x50] sm:$0xff]  ;;  %v4148_v6 = vcombine.high %v1388_v42, %v1392_v43  ;;  %v1380_v10 = vld [vmem:[#allocation11 + $0x408] sm:$0xff] }
 0x230   :  { %v1246_v54 = vmax.f32 %v1239_v49, 0.0  ;;  %v5021_v60 = vpack.c.bf16 %v1245_v50, %v1245_v50  ;;  %v4022_v38 = vcombine.high %v1261_v44, %v1265_v46  ;;  %v1384_v49 = vld [vmem:[#allocation11 + $0x428] sm:$0xff]  ;;  %v1257_v50 = vld [vmem:[#allocation11 + $0x30] sm:$0xff]  ;;  %v4147_v51 = vcombine.low %v1388_v42, %v1392_v43 }
 0x231   :  { %v4021_v52 = vcombine.low %v1261_v44, %v1265_v46  ;;  %v1480_v25 = vld [vmem:[#allocation11 + $0x728] sm:$0xff]  ;;  %v1341_v36 = vld [vmem:[#allocation11 + $0x2d0] sm:$0xff] }
 0x232   :  { %v5019_v59 = vpack.c.bf16 %v1246_v54, %v1246_v54  ;;  %2942 = vmatpush2.bf16.msra.mxu0 %v4075_v45  ;;  %v1253_v45 = vld [vmem:[#allocation11 + $0x10] sm:$0xff]  ;;  %v1468_v34 = vld [vmem:[#allocation11 + $0x6c8] sm:$0xff] }
 0x233   :  { %2993 = vmatprep.subr.bf16.mxu0 %v4070_v53  ;;  %v4140_v53 = vcombine.high %v1380_v10, %v1384_v49  ;;  %v4014_v54 = vcombine.high %v1253_v45, %v1257_v50  ;;  %v1472_v35 = vld [vmem:[#allocation11 + $0x6e8] sm:$0xff]  ;;  %v1333_v46 = vld [vmem:[#allocation11 + $0x290] sm:$0xff] }
 0x234   :  { %2902 = vmatprep.mubr.bf16.mxu1 %v5019_v59  ;;  %v1460_v43 = vld [vmem:[#allocation11 + $0x688] sm:$0xff] }
 0x235   :  { %2903 = vmatmul.mubr.bf16.vlgmr.msra.gmra.mxu1 %v5021_v60  ;;  %2944 = vmatmul.mubr.bf16.vlgmr.msra.gmra.mxu0 %v5007_v32  ;;  %v1464_v44 = vld [vmem:[#allocation11 + $0x6a8] sm:$0xff] }
 0x236   :  { %2953 = vmatpush1.bf16.msra.mxu1 %v4195_v5  ;;  %2984 = vmatprep.mubr.bf16.mxu1 %v5019_v59  ;;  %v4046_v5 = vcombine.high %v1285_v20, %v1289_v21  ;;  %v1488_v20 = vld [vmem:[#allocation11 + $0x768] sm:$0xff]  ;;  %v1357_v21 = vld [vmem:[#allocation11 + $0x350] sm:$0xff] }
 0x237   :  { %2994 = vmatpush1.bf16.msra.mxu0 %v4069_v61  ;;  %3025 = vmatprep.mubr.bf16.mxu0 %v5005_v31  ;;  %v4139_v61 = vcombine.low %v1380_v10, %v1384_v49  ;;  %v1452_v49 = vld [vmem:[#allocation11 + $0x648] sm:$0xff] }
 0x238   :  { %2954 = vmatprep.subr.bf16.mxu1 %v4188_v62  ;;  %2995 = vmatprep.subr.bf16.mxu0 %v4062_v63  ;;  %v4013_v62 = vcombine.low %v1253_v45, %v1257_v50  ;;  %v4260_v63 = vcombine.high %v1500_v55, %v1504_v56  ;;  %v1456_v45 = vld [vmem:[#allocation11 + $0x668] sm:$0xff]  ;;  %v1325_v50 = vld [vmem:[#allocation11 + $0x250] sm:$0xff] }
 0x23a   :  { %2955 = vmatpush1.bf16.msra.mxu1 %v4187_v8  ;;  %v1369_v8 = vld [vmem:[#allocation11 + $0x3b0] sm:$0xff] }
 0x23b   :  { %2996 = vmatpush1.bf16.msra.mxu0 %v4061_v9  ;;  %2956 = vmatprep.subr.bf16.mxu1 %v4180_v11  ;;  %v4259_v9 = vcombine.low %v1500_v55, %v1504_v56  ;;  %v4133_v11 = vcombine.low %v1373_v57, %v1377_v58  ;;  %v4126_v13 = vcombine.high %v1365_v7, %v1369_v8  ;;  %v1444_v56 = vld [vmem:[#allocation11 + $0x608] sm:$0xff]  ;;  %v1317_v58 = vld [vmem:[#allocation11 + $0x210] sm:$0xff] }
 0x23c   :  { %2997 = vmatprep.subr.bf16.mxu0 %v4054_v12  ;;  %v4252_v12 = vcombine.high %v1492_v1, %v1496_v4  ;;  %v1448_v57 = vld [vmem:[#allocation11 + $0x628] sm:$0xff] }
 0x23e   :  { %2957 = vmatpush1.bf16.msra.mxu1 %v4179_v22  ;;  %v1361_v22 = vld [vmem:[#allocation11 + $0x370] sm:$0xff] }
 0x23f   :  { %2998 = vmatpush1.bf16.msra.mxu0 %v4053_v2  ;;  %2958 = vmatprep.subr.bf16.mxu1 %v4172_v3  ;;  %v4251_v2 = vcombine.low %v1492_v1, %v1496_v4  ;;  %v4125_v3 = vcombine.low %v1365_v7, %v1369_v8  ;;  %v4118_v23 = vcombine.high %v1357_v21, %v1361_v22  ;;  %v1437_v4 = vld [vmem:[#allocation11 + $0x5d0] sm:$0xff]  ;;  %v1310_v8 = vld [vmem:[#allocation11 + $0x1d8] sm:$0xff] }
 0x240   :  { %2999 = vmatprep.subr.bf16.mxu0 %v4046_v5  ;;  %v4244_v5 = vcombine.high %v1484_v17, %v1488_v20  ;;  %v1441_v7 = vld [vmem:[#allocation11 + $0x5f0] sm:$0xff] }
 0x242   :  { %2959 = vmatpush1.bf16.msra.mxu1 %v4171_v27  ;;  %v1353_v27 = vld [vmem:[#allocation11 + $0x330] sm:$0xff] }
 0x243   :  { %3000 = vmatpush1.bf16.msra.mxu0 %v4045_v28  ;;  %2960 = vmatprep.subr.bf16.mxu1 %v4164_v29  ;;  %v4243_v28 = vcombine.low %v1484_v17, %v1488_v20  ;;  %v4117_v29 = vcombine.low %v1357_v21, %v1361_v22  ;;  %v4110_v33 = vcombine.high %v1349_v26, %v1353_v27  ;;  %v1429_v20 = vld [vmem:[#allocation11 + $0x590] sm:$0xff] }
 0x244   :  { %3001 = vmatprep.subr.bf16.mxu0 %v4038_v30  ;;  %v4236_v30 = vcombine.high %v1476_v24, %v1480_v25  ;;  %v1433_v21 = vld [vmem:[#allocation11 + $0x5b0] sm:$0xff]  ;;  %v4197_v22 = vcombine.low %v1437_v4, %v1441_v7 }
 0x246   :  { %2961 = vmatpush1.bf16.msra.mxu1 %v4163_v37  ;;  %v1345_v37 = vld [vmem:[#allocation11 + $0x2f0] sm:$0xff] }
 0x247   :  { %3002 = vmatpush1.bf16.msra.mxu0 %v4037_v39  ;;  %2962 = vmatprep.subr.bf16.mxu1 %v4156_v40  ;;  %v4235_v39 = vcombine.low %v1476_v24, %v1480_v25  ;;  %v4109_v40 = vcombine.low %v1349_v26, %v1353_v27  ;;  %v4102_v42 = vcombine.high %v1341_v36, %v1345_v37  ;;  %v1421_v24 = vld [vmem:[#allocation11 + $0x550] sm:$0xff]  ;;  %v1294_v27 = vld [vmem:[#allocation11 + $0x158] sm:$0xff] }
 0x248   :  { %3003 = vmatprep.subr.bf16.mxu0 %v4030_v41  ;;  %v4228_v41 = vcombine.high %v1468_v34, %v1472_v35  ;;  %v1425_v25 = vld [vmem:[#allocation11 + $0x570] sm:$0xff] }
 0x24a   :  { %2963 = vmatpush1.bf16.msra.mxu1 %v4155_v47  ;;  %v1337_v47 = vld [vmem:[#allocation11 + $0x2b0] sm:$0xff] }
 0x24b   :  { %3004 = vmatpush1.bf16.msra.mxu0 %v4029_v48  ;;  %2964 = vmatprep.subr.bf16.mxu1 %v4148_v6  ;;  %v4227_v48 = vcombine.low %v1468_v34, %v1472_v35  ;;  %v4101_v6 = vcombine.low %v1341_v36, %v1345_v37  ;;  %v4094_v10 = vcombine.high %v1333_v46, %v1337_v47  ;;  %v1413_v35 = vld [vmem:[#allocation11 + $0x510] sm:$0xff]  ;;  %v1286_v37 = vld [vmem:[#allocation11 + $0x118] sm:$0xff] }
 0x24c   :  { %3005 = vmatprep.subr.bf16.mxu0 %v4022_v38  ;;  %v4220_v38 = vcombine.high %v1460_v43, %v1464_v44  ;;  %v1417_v36 = vld [vmem:[#allocation11 + $0x530] sm:$0xff] }
 0x24e   :  { %2965 = vmatpush1.bf16.msra.mxu1 %v4147_v51  ;;  %v1329_v51 = vld [vmem:[#allocation11 + $0x270] sm:$0xff] }
 0x24f   :  { %3006 = vmatpush1.bf16.msra.mxu0 %v4021_v52  ;;  %2966 = vmatprep.subr.bf16.mxu1 %v4140_v53  ;;  %v4219_v52 = vcombine.low %v1460_v43, %v1464_v44  ;;  %v4093_v53 = vcombine.low %v1333_v46, %v1337_v47  ;;  %v4086_v55 = vcombine.high %v1325_v50, %v1329_v51  ;;  %v1405_v44 = vld [vmem:[#allocation11 + $0x4d0] sm:$0xff]  ;;  %v1278_v47 = vld [vmem:[#allocation11 + $0xd8] sm:$0xff] }
 0x250   :  { %3007 = vmatprep.subr.bf16.mxu0 %v4014_v54  ;;  %v4212_v54 = vcombine.high %v1452_v49, %v1456_v45  ;;  %v1409_v46 = vld [vmem:[#allocation11 + $0x4f0] sm:$0xff] }
 0x252   :  { %2967 = vmatpush1.bf16.msra.mxu1 %v4139_v61  ;;  %v1321_v61 = vld [vmem:[#allocation11 + $0x230] sm:$0xff] }
 0x253   :  { %3008 = vmatpush1.bf16.msra.mxu0 %v4013_v62  ;;  %2968 = vmatprep.subr.bf16.mxu1 %v4260_v63  ;;  %v4211_v62 = vcombine.low %v1452_v49, %v1456_v45  ;;  %v4085_v63 = vcombine.low %v1325_v50, %v1329_v51  ;;  %v4078_v1 = vcombine.high %v1317_v58, %v1321_v61  ;;  %v1397_v49 = vld [vmem:[#allocation11 + $0x490] sm:$0xff]  ;;  %v1270_v50 = vld [vmem:[#allocation11 + $0x98] sm:$0xff] }
 0x254   :  { %3009 = vmatprep.subr.bf16.mxu0 %v4134_v0  ;;  %v4204_v0 = vcombine.high %v1444_v56, %v1448_v57  ;;  %v1401_v45 = vld [vmem:[#allocation11 + $0x4b0] sm:$0xff]  ;;  %v1274_v51 = vld [vmem:[#allocation11 + $0xb8] sm:$0xff] }
 0x256   :  { %2969 = vmatpush2.bf16.msra.mxu1 %v4259_v9  ;;  %v1314_v9 = vld [vmem:[#allocation11 + $0x1f8] sm:$0xff] }
 0x257   :  { %3010 = vmatpush2.bf16.msra.mxu0 %v4133_v11  ;;  %2970 = vmatprep.subr.bf16.mxu1 %v4252_v12  ;;  %v4203_v11 = vcombine.low %v1444_v56, %v1448_v57  ;;  %v4077_v12 = vcombine.low %v1317_v58, %v1321_v61  ;;  %v4072_v17 = vcombine.high %v1310_v8, %v1314_v9  ;;  %v1389_v56 = vld [vmem:[#allocation11 + $0x450] sm:$0xff]  ;;  %v1262_v58 = vld [vmem:[#allocation11 + $0x58] sm:$0xff] }
 0x258   :  { %3011 = vmatprep.subr.bf16.mxu0 %v4126_v13  ;;  %v4198_v13 = vcombine.high %v1437_v4, %v1441_v7  ;;  %v1393_v57 = vld [vmem:[#allocation11 + $0x470] sm:$0xff]  ;;  %v1266_v61 = vld [vmem:[#allocation11 + $0x78] sm:$0xff] }
 0x259   :  { %v1381_v4 = vld [vmem:[#allocation11 + $0x410] sm:$0xff] }
 0x25a   :  { %2971 = vmatpush2.bf16.msra.mxu1 %v4251_v2  ;;  %v1302_v2 = vld [vmem:[#allocation11 + $0x198] sm:$0xff]  ;;  %v1385_v7 = vld [vmem:[#allocation11 + $0x430] sm:$0xff] }
 0x25b   :  { %3012 = vmatpush2.bf16.msra.mxu0 %v4125_v3  ;;  %2972 = vmatprep.subr.bf16.mxu1 %v4244_v5  ;;  %v1306_v3 = vld [vmem:[#allocation11 + $0x1b8] sm:$0xff]  ;;  %v4071_v5 = vcombine.low %v1310_v8, %v1314_v9 }
 0x25c   :  { %3013 = vmatprep.subr.bf16.mxu0 %v4118_v23  ;;  %v4190_v23 = vcombine.high %v1429_v20, %v1433_v21  ;;  %v4064_v26 = vcombine.high %v1302_v2, %v1306_v3  ;;  %v1254_v8 = vld [vmem:[#allocation11 + $0x18] sm:$0xff] }
 0x25d   :  { %v1258_v9 = vld [vmem:[#allocation11 + $0x38] sm:$0xff] }
 0x25e   :  { %2973 = vmatpush2.bf16.msra.mxu1 %v4243_v28  ;;  %v1298_v28 = vld [vmem:[#allocation11 + $0x178] sm:$0xff] }
 0x25f   :  { %3014 = vmatpush2.bf16.msra.mxu0 %v4117_v29  ;;  %2974 = vmatprep.subr.bf16.mxu1 %v4236_v30  ;;  %v4189_v29 = vcombine.low %v1429_v20, %v1433_v21  ;;  %v4063_v30 = vcombine.low %v1302_v2, %v1306_v3  ;;  %v4056_v34 = vcombine.high %v1294_v27, %v1298_v28  ;;  %v1501_v20 = vld [vmem:[#allocation11 + $0x7d0] sm:$0xff]  ;;  %v1378_v2 = vld [vmem:[#allocation11 + $0x3f8] sm:$0xff] }
 0x260   :  { %3015 = vmatprep.subr.bf16.mxu0 %v4110_v33  ;;  %v4182_v33 = vcombine.high %v1421_v24, %v1425_v25  ;;  %v1505_v21 = vld [vmem:[#allocation11 + $0x7f0] sm:$0xff]  ;;  %v4141_v3 = vcombine.low %v1381_v4, %v1385_v7 }
 0x262   :  { %2975 = vmatpush2.bf16.msra.mxu1 %v4235_v39  ;;  %v1290_v39 = vld [vmem:[#allocation11 + $0x138] sm:$0xff] }
 0x263   :  { %3016 = vmatpush2.bf16.msra.mxu0 %v4109_v40  ;;  %2976 = vmatprep.subr.bf16.mxu1 %v4228_v41  ;;  %v4181_v40 = vcombine.low %v1421_v24, %v1425_v25  ;;  %v4055_v41 = vcombine.low %v1294_v27, %v1298_v28  ;;  %v4048_v43 = vcombine.high %v1286_v37, %v1290_v39  ;;  %v1493_v25 = vld [vmem:[#allocation11 + $0x790] sm:$0xff]  ;;  %v1366_v27 = vld [vmem:[#allocation11 + $0x398] sm:$0xff] }
 0x264   :  { %3017 = vmatprep.subr.bf16.mxu0 %v4102_v42  ;;  %v4174_v42 = vcombine.high %v1413_v35, %v1417_v36  ;;  %v1370_v28 = vld [vmem:[#allocation11 + $0x3b8] sm:$0xff] }
 0x266   :  { %2977 = vmatpush2.bf16.msra.mxu1 %v4227_v48  ;;  %v1282_v48 = vld [vmem:[#allocation11 + $0xf8] sm:$0xff] }
 0x267   :  { %3018 = vmatpush2.bf16.msra.mxu0 %v4101_v6  ;;  %2978 = vmatprep.subr.bf16.mxu1 %v4220_v38  ;;  %v4047_v6 = vcombine.low %v1286_v37, %v1290_v39  ;;  %v4166_v38 = vcombine.high %v1405_v44, %v1409_v46  ;;  %v1358_v37 = vld [vmem:[#allocation11 + $0x358] sm:$0xff] }
 0x268   :  { %3019 = vmatprep.subr.bf16.mxu0 %v4094_v10  ;;  %v4040_v10 = vcombine.high %v1278_v47, %v1282_v48  ;;  %v1362_v39 = vld [vmem:[#allocation11 + $0x378] sm:$0xff] }
 0x26a   :  { %2979 = vmatpush2.bf16.msra.mxu1 %v4219_v52  ;;  %v4165_v52 = vcombine.low %v1405_v44, %v1409_v46  ;;  %v1477_v44 = vld [vmem:[#allocation11 + $0x710] sm:$0xff] }
 0x26b   :  { %3020 = vmatpush2.bf16.msra.mxu0 %v4093_v53  ;;  %2980 = vmatprep.subr.bf16.mxu1 %v4212_v54  ;;  %v4039_v53 = vcombine.low %v1278_v47, %v1282_v48  ;;  %v4158_v54 = vcombine.high %v1397_v49, %v1401_v45  ;;  %v1481_v46 = vld [vmem:[#allocation11 + $0x730] sm:$0xff]  ;;  %v1350_v47 = vld [vmem:[#allocation11 + $0x318] sm:$0xff] }
 0x26c   :  { %3021 = vmatprep.subr.bf16.mxu0 %v4086_v55  ;;  %v4032_v55 = vcombine.high %v1270_v50, %v1274_v51  ;;  %v1354_v48 = vld [vmem:[#allocation11 + $0x338] sm:$0xff] }
 0x26e   :  { %2981 = vmatpush2.bf16.msra.mxu1 %v4211_v62  ;;  %v4157_v62 = vcombine.low %v1397_v49, %v1401_v45  ;;  %v1469_v49 = vld [vmem:[#allocation11 + $0x6d0] sm:$0xff] }
 0x26f   :  { %3022 = vmatpush2.bf16.msra.mxu0 %v4085_v63  ;;  %2982 = vmatprep.subr.bf16.mxu1 %v4204_v0  ;;  %v4031_v63 = vcombine.low %v1270_v50, %v1274_v51  ;;  %v4150_v0 = vcombine.high %v1389_v56, %v1393_v57  ;;  %v1473_v45 = vld [vmem:[#allocation11 + $0x6f0] sm:$0xff]  ;;  %v1342_v50 = vld [vmem:[#allocation11 + $0x2d8] sm:$0xff] }
 0x270   :  { %3023 = vmatprep.subr.bf16.mxu0 %v4078_v1  ;;  %v4024_v1 = vcombine.high %v1262_v58, %v1266_v61  ;;  %v1346_v51 = vld [vmem:[#allocation11 + $0x2f8] sm:$0xff] }
 0x272   :  { %2983 = vmatpush2.bf16.msra.mxu1 %v4203_v11  ;;  %v4149_v11 = vcombine.low %v1389_v56, %v1393_v57  ;;  %v1461_v56 = vld [vmem:[#allocation11 + $0x690] sm:$0xff] }
 0x273   :  { %3024 = vmatpush2.bf16.msra.mxu0 %v4077_v12  ;;  %3034 = vmatprep.subr.bf16.mxu1 %v4198_v13  ;;  %v4023_v12 = vcombine.low %v1262_v58, %v1266_v61  ;;  %v4142_v13 = vcombine.high %v1381_v4, %v1385_v7  ;;  %v1465_v57 = vld [vmem:[#allocation11 + $0x6b0] sm:$0xff]  ;;  %v1334_v58 = vld [vmem:[#allocation11 + $0x298] sm:$0xff] }
 0x274   :  { %3075 = vmatprep.subr.bf16.mxu0 %v4072_v17  ;;  %v4016_v17 = vcombine.high %v1254_v8, %v1258_v9  ;;  %v1338_v61 = vld [vmem:[#allocation11 + $0x2b8] sm:$0xff]  ;;  %v1453_v4 = vld [vmem:[#allocation11 + $0x650] sm:$0xff] }
 0x275   :  { %2985 = vmatmul.mubr.bf16.vlgmr.msra.gmra.mxu1 %v5021_v60  ;;  %v1457_v7 = vld [vmem:[#allocation11 + $0x670] sm:$0xff] }
 0x276   :  { %3026 = vmatmul.mubr.bf16.vlgmr.msra.gmra.mxu0 %v5007_v32  ;;  %3035 = vmatpush1.bf16.msra.mxu1 %v4197_v22  ;;  %v1374_v22 = vld [vmem:[#allocation11 + $0x3d8] sm:$0xff] }
 0x277   :  { %3066 = vmatprep.mubr.bf16.mxu1 %v5019_v59  ;;  %3076 = vmatpush1.bf16.msra.mxu0 %v4071_v5  ;;  %v4015_v5 = vcombine.low %v1254_v8, %v1258_v9  ;;  %v4136_v24 = vcombine.high %v1374_v22, %v1378_v2  ;;  %v1326_v8 = vld [vmem:[#allocation11 + $0x258] sm:$0xff] }
 0x278   :  { %3107 = vmatprep.mubr.bf16.mxu0 %v5005_v31  ;;  %3036 = vmatprep.subr.bf16.mxu1 %v4190_v23  ;;  %v4173_v31 = vcombine.low %v1413_v35, %v1417_v36  ;;  %v4262_v23 = vcombine.high %v1501_v20, %v1505_v21  ;;  %v1485_v35 = vld [vmem:[#allocation11 + $0x750] sm:$0xff]  ;;  %v1330_v9 = vld [vmem:[#allocation11 + $0x278] sm:$0xff] }
 0x279   :  { %3077 = vmatprep.subr.bf16.mxu0 %v4064_v26  ;;  %v1497_v26 = vld [vmem:[#allocation11 + $0x7b0] sm:$0xff] }
 0x27a   :  { %3037 = vmatpush1.bf16.msra.mxu1 %v4189_v29  ;;  %v4261_v29 = vcombine.low %v1501_v20, %v1505_v21  ;;  %v1489_v36 = vld [vmem:[#allocation11 + $0x770] sm:$0xff] }
 0x27b   :  { %3078 = vmatpush1.bf16.msra.mxu0 %v4063_v30  ;;  %3038 = vmatprep.subr.bf16.mxu1 %v4182_v33  ;;  %v4135_v30 = vcombine.low %v1374_v22, %v1378_v2  ;;  %v4254_v33 = vcombine.high %v1493_v25, %v1497_v26  ;;  %v1445_v20 = vld [vmem:[#allocation11 + $0x610] sm:$0xff]  ;;  %v1318_v22 = vld [vmem:[#allocation11 + $0x218] sm:$0xff] }
 0x27c   :  { %3079 = vmatprep.subr.bf16.mxu0 %v4056_v34  ;;  %v4128_v34 = vcombine.high %v1366_v27, %v1370_v28  ;;  %v1449_v21 = vld [vmem:[#allocation11 + $0x630] sm:$0xff]  ;;  %v1322_v2 = vld [vmem:[#allocation11 + $0x238] sm:$0xff] }
 0x27e   :  { %3039 = vmatpush1.bf16.msra.mxu1 %v4181_v40  ;;  %v4253_v40 = vcombine.low %v1493_v25, %v1497_v26  ;;  %v1438_v25 = vld [vmem:[#allocation11 + $0x5d8] sm:$0xff] }
 0x27f   :  { %3080 = vmatpush1.bf16.msra.mxu0 %v4055_v41  ;;  %3040 = vmatprep.subr.bf16.mxu1 %v4174_v42  ;;  %v4127_v41 = vcombine.low %v1366_v27, %v1370_v28  ;;  %v4246_v42 = vcombine.high %v1485_v35, %v1489_v36  ;;  %v1442_v26 = vld [vmem:[#allocation11 + $0x5f8] sm:$0xff]  ;;  %v4205_v27 = vcombine.low %v1445_v20, %v1449_v21 }
 0x280   :  { %3081 = vmatprep.subr.bf16.mxu0 %v4048_v43  ;;  %v4120_v43 = vcombine.high %v1358_v37, %v1362_v39  ;;  %v4079_v28 = vcombine.low %v1318_v22, %v1322_v2 }
 0x282   :  { %3041 = vmatpush1.bf16.msra.mxu1 %v4173_v31  ;;  %v4245_v31 = vcombine.low %v1485_v35, %v1489_v36  ;;  %v4199_v35 = vcombine.low %v1438_v25, %v1442_v26 }
 0x283   :  { %3082 = vmatpush1.bf16.msra.mxu0 %v4047_v6  ;;  %3042 = vmatprep.subr.bf16.mxu1 %v4166_v38  ;;  %v4119_v6 = vcombine.low %v1358_v37, %v1362_v39  ;;  %v4238_v38 = vcombine.high %v1477_v44, %v1481_v46  ;;  %v1422_v37 = vld [vmem:[#allocation11 + $0x558] sm:$0xff] }
 0x284   :  { %3083 = vmatprep.subr.bf16.mxu0 %v4040_v10  ;;  %v4112_v10 = vcombine.high %v1350_v47, %v1354_v48  ;;  %v1426_v39 = vld [vmem:[#allocation11 + $0x578] sm:$0xff] }
 0x286   :  { %3043 = vmatpush1.bf16.msra.mxu1 %v4165_v52  ;;  %v4237_v52 = vcombine.low %v1477_v44, %v1481_v46  ;;  %v4184_v46 = vcombine.high %v1422_v37, %v1426_v39 }
 0x287   :  { %3084 = vmatpush1.bf16.msra.mxu0 %v4039_v53  ;;  %3044 = vmatprep.subr.bf16.mxu1 %v4158_v54  ;;  %v4111_v53 = vcombine.low %v1350_v47, %v1354_v48  ;;  %v4230_v54 = vcombine.high %v1469_v49, %v1473_v45  ;;  %v1414_v47 = vld [vmem:[#allocation11 + $0x518] sm:$0xff] }
 0x288   :  { %3085 = vmatprep.subr.bf16.mxu0 %v4032_v55  ;;  %v4104_v55 = vcombine.high %v1342_v50, %v1346_v51  ;;  %v1418_v48 = vld [vmem:[#allocation11 + $0x538] sm:$0xff] }
 0x28a   :  { %3045 = vmatpush1.bf16.msra.mxu1 %v4157_v62  ;;  %v4229_v62 = vcombine.low %v1469_v49, %v1473_v45  ;;  %v1406_v45 = vld [vmem:[#allocation11 + $0x4d8] sm:$0xff] }
 0x28b   :  { %3086 = vmatpush1.bf16.msra.mxu0 %v4031_v63  ;;  %3046 = vmatprep.subr.bf16.mxu1 %v4150_v0  ;;  %v4103_v63 = vcombine.low %v1342_v50, %v1346_v51  ;;  %v4222_v0 = vcombine.high %v1461_v56, %v1465_v57  ;;  %v1410_v50 = vld [vmem:[#allocation11 + $0x4f8] sm:$0xff]  ;;  %v4643_v51 = vld [vmem:[#allocation13 + $0x60] sm:$0xff]  }
 0x28c   :  { %3087 = vmatprep.subr.bf16.mxu0 %v4024_v1  ;;  %v4096_v1 = vcombine.high %v1334_v58, %v1338_v61 }
 0x28e   :  { %3047 = vmatpush1.bf16.msra.mxu1 %v4149_v11  ;;  %v4221_v11 = vcombine.low %v1461_v56, %v1465_v57  ;;  %v4644_v56 = vld [vmem:[#allocation13 + $0x20] sm:$0xff]   ;;  %v4645_v57 = vld [vmem:[#allocation13 + $0x58] sm:$0xff]  }
 0x28f   :  { %3088 = vmatpush1.bf16.msra.mxu0 %v4023_v12  ;;  %3048 = vmatprep.subr.bf16.mxu1 %v4142_v13  ;;  %v4095_v12 = vcombine.low %v1334_v58, %v1338_v61  ;;  %v4214_v13 = vcombine.high %v1453_v4, %v1457_v7  ;;  %v4167_v58 = vcombine.low %v1406_v45, %v1410_v50 }
 0x290   :  { %3089 = vmatprep.subr.bf16.mxu0 %v4016_v17  ;;  %v4088_v17 = vcombine.high %v1326_v8, %v1330_v9 }
 0x292   :  { %3049 = vmatpush1.bf16.msra.mxu1 %v4141_v3  ;;  %v4213_v3 = vcombine.low %v1453_v4, %v1457_v7 }
 0x293   :  { %3090 = vmatpush1.bf16.msra.mxu0 %v4015_v5  ;;  %3050 = vmatprep.subr.bf16.mxu1 %v4262_v23  ;;  %v4087_v5 = vcombine.low %v1326_v8, %v1330_v9  ;;  %v4206_v23 = vcombine.high %v1445_v20, %v1449_v21  ;;  %v1382_v8 = vld [vmem:[#allocation11 + $0x418] sm:$0xff] }
 0x294   :  { %3091 = vmatprep.subr.bf16.mxu0 %v4136_v24  ;;  %v4080_v24 = vcombine.high %v1318_v22, %v1322_v2  ;;  %v1386_v9 = vld [vmem:[#allocation11 + $0x438] sm:$0xff]  ;;  %v4650_v22 = vld [vmem:[#allocation13 + $0x8] sm:$0xff]   ;;  %v4651_v2 = vld [vmem:[#allocation13 + $0x40] sm:$0xff]  }
 0x295   :  { %v1502_v20 = vld [vmem:[#allocation11 + $0x7d8] sm:$0xff] }
 0x296   :  { %3051 = vmatpush2.bf16.msra.mxu1 %v4261_v29  ;;  %v4200_v29 = vcombine.high %v1438_v25, %v1442_v26  ;;  %v1506_v21 = vld [vmem:[#allocation11 + $0x7f8] sm:$0xff]  ;;  %v4652_v25 = vld [vmem:[#allocation13] sm:$0xff]  }
 0x297   :  { %3092 = vmatpush2.bf16.msra.mxu0 %v4135_v30  ;;  %3052 = vmatprep.subr.bf16.mxu1 %v4254_v33  ;;  %v1430_v30 = vld [vmem:[#allocation11 + $0x598] sm:$0xff] }
 0x298   :  { %3093 = vmatprep.subr.bf16.mxu0 %v4128_v34  ;;  %v1434_v33 = vld [vmem:[#allocation11 + $0x5b8] sm:$0xff] }
 0x299   :  { %v4637_v34 = vld [vmem:[#allocation13 + $0x78] sm:$0xff]   ;;  %v4192_v36 = vcombine.high %v1430_v30, %v1434_v33 }
 0x29a   :  { %3053 = vmatpush2.bf16.msra.mxu1 %v4253_v40  ;;  %v4638_v40 = vld [vmem:[#allocation13 + $0x38] sm:$0xff]  }
 0x29b   :  { %3094 = vmatpush2.bf16.msra.mxu0 %v4127_v41  ;;  %3054 = vmatprep.subr.bf16.mxu1 %v4246_v42  ;;  %v4639_v42 = vld [vmem:[#allocation13 + $0x70] sm:$0xff]   ;;  %v4669_v26 = vld [vmem:[#allocation13 + $0x178] sm:$0xff]  }
 0x29c   :  { %3095 = vmatprep.subr.bf16.mxu0 %v4120_v43  ;;  %v4191_v43 = vcombine.low %v1430_v30, %v1434_v33  ;;  %v1490_v30 = vld [vmem:[#allocation11 + $0x778] sm:$0xff] }
 0x29e   :  { %3055 = vmatpush2.bf16.msra.mxu1 %v4245_v31  ;;  %v4640_v31 = vld [vmem:[#allocation13 + $0x30] sm:$0xff]  }
 0x29f   :  { %3096 = vmatpush2.bf16.msra.mxu0 %v4119_v6  ;;  %3056 = vmatprep.subr.bf16.mxu1 %v4238_v38  ;;  %v4641_v38 = vld [vmem:[#allocation13 + $0x68] sm:$0xff]  }
 0x2a0   :  { %3097 = vmatprep.subr.bf16.mxu0 %v4112_v10  ;;  %v4183_v10 = vcombine.low %v1422_v37, %v1426_v39 }
 0x2a2   :  { %3057 = vmatpush2.bf16.msra.mxu1 %v4237_v52  ;;  %v4175_v52 = vcombine.low %v1414_v47, %v1418_v48 }
 0x2a3   :  { %3098 = vmatpush2.bf16.msra.mxu0 %v4111_v53  ;;  %3058 = vmatprep.subr.bf16.mxu1 %v4230_v54  ;;  %v4168_v53 = vcombine.high %v1406_v45, %v1410_v50  ;;  %v1398_v54 = vld [vmem:[#allocation11 + $0x498] sm:$0xff] }
 0x2a4   :  { %3099 = vmatprep.subr.bf16.mxu0 %v4104_v55  ;;  %v1402_v55 = vld [vmem:[#allocation11 + $0x4b8] sm:$0xff] }
 0x2a5   :  { %v4160_v61 = vcombine.high %v1398_v54, %v1402_v55  ;;  %v4159_v4 = vcombine.low %v1398_v54, %v1402_v55  ;;  %v1446_v45 = vld [vmem:[#allocation11 + $0x618] sm:$0xff] }
 0x2a6   :  { %3059 = vmatpush2.bf16.msra.mxu1 %v4229_v62  ;;  %v1390_v62 = vld [vmem:[#allocation11 + $0x458] sm:$0xff] }
 0x2a7   :  { %3100 = vmatpush2.bf16.msra.mxu0 %v4103_v63  ;;  %3060 = vmatprep.subr.bf16.mxu1 %v4222_v0  ;;  %v1394_v63 = vld [vmem:[#allocation11 + $0x478] sm:$0xff] }
 0x2a8   :  { %3101 = vmatprep.subr.bf16.mxu0 %v4096_v1  ;;  %v4646_v0 = vld [vmem:[#allocation13 + $0x18] sm:$0xff]   ;;  %v4647_v1 = vld [vmem:[#allocation13 + $0x50] sm:$0xff]   ;;  %v4152_v7 = vcombine.high %v1390_v62, %v1394_v63 }
 0x2a9   :  { %v1450_v50 = vld [vmem:[#allocation11 + $0x638] sm:$0xff] }
 0x2aa   :  { %3061 = vmatpush2.bf16.msra.mxu1 %v4221_v11  ;;  %v4648_v11 = vld [vmem:[#allocation13 + $0x10] sm:$0xff]   ;;  %v4653_v54 = vld [vmem:[#allocation13 + $0xf8] sm:$0xff]  }
 0x2ab   :  { %3102 = vmatpush2.bf16.msra.mxu0 %v4095_v12  ;;  %3062 = vmatprep.subr.bf16.mxu1 %v4214_v13  ;;  %v4649_v12 = vld [vmem:[#allocation13 + $0x48] sm:$0xff]   ;;  %v4151_v13 = vcombine.low %v1390_v62, %v1394_v63 }
 0x2ac   :  { %3103 = vmatprep.subr.bf16.mxu0 %v4088_v17  ;;  %v4144_v17 = vcombine.high %v1382_v8, %v1386_v9 }
 0x2ae   :  { %3063 = vmatpush2.bf16.msra.mxu1 %v4213_v3  ;;  %v4143_v3 = vcombine.low %v1382_v8, %v1386_v9 }
 0x2af   :  { %3104 = vmatpush2.bf16.msra.mxu0 %v4087_v5  ;;  %3064 = vmatprep.subr.bf16.mxu1 %v4206_v23  ;;  %v4264_v5 = vcombine.high %v1502_v20, %v1506_v21  ;;  %v1494_v23 = vld [vmem:[#allocation11 + $0x798] sm:$0xff] }
 0x2b0   :  { %3105 = vmatprep.subr.bf16.mxu0 %v4080_v24  ;;  %v1498_v24 = vld [vmem:[#allocation11 + $0x7b8] sm:$0xff] }
 0x2b1   :  { %v4255_v33 = vcombine.low %v1494_v23, %v1498_v24 }
 0x2b2   :  { %3065 = vmatpush2.bf16.msra.mxu1 %v4205_v27  ;;  %v4263_v27 = vcombine.low %v1502_v20, %v1506_v21  ;;  %v4659_v20 = vld [vmem:[#allocation13 + $0xe0] sm:$0xff]   ;;  %v4670_v21 = vld [vmem:[#allocation13 + $0x138] sm:$0xff]  }
 0x2b3   :  { %3106 = vmatpush2.bf16.msra.mxu0 %v4079_v28  ;;  %3116 = vmatprep.subr.bf16.mxu1 %v4200_v29  ;;  %v4256_v28 = vcombine.high %v1494_v23, %v1498_v24  ;;  %v1486_v29 = vld [vmem:[#allocation11 + $0x758] sm:$0xff]  ;;  %v4672_v23 = vld [vmem:[#allocation13 + $0x130] sm:$0xff]   ;;  %v4673_v24 = vld [vmem:[#allocation13 + $0x168] sm:$0xff]  }
 0x2b4   :  { %4330 = vmatprep.subr.bf16.mxu0 %v4637_v34  ;;  %v4248_v34 = vcombine.high %v1486_v29, %v1490_v30  ;;  %v4247_v37 = vcombine.low %v1486_v29, %v1490_v30  ;;  %v4664_v29 = vld [vmem:[#allocation13 + $0x90] sm:$0xff]   ;;  %v4665_v30 = vld [vmem:[#allocation13 + $0xc8] sm:$0xff]  }
 0x2b5   :  { %3067 = vmatmul.mubr.bf16.vlgmr.msra.gmra.mxu1 %v5021_v60  ;;  %v5036_v41 = vpop.f32.mrf.mxu0 }
 0x2b6   :  { %3108 = vmatmul.mubr.bf16.vlgmr.msra.gmra.mxu0 %v5007_v32  ;;  %3117 = vmatpush1.bf16.msra.mxu1 %v4199_v35  ;;  %v4176_v32 = vcombine.high %v1414_v47, %v1418_v48  ;;  %v1478_v35 = vld [vmem:[#allocation11 + $0x718] sm:$0xff] }
 0x2b7   :  { %3148 = vmatprep.mubr.bf16.mxu1 %v5019_v59  ;;  %v5040_v44 = vpop.f32.mrf.mxu0  ;;  %3118 = vmatprep.subr.bf16.mxu1 %v4192_v36  ;;  %v4642_v59 = vld [vmem:[#allocation13 + $0x28] sm:$0xff]   ;;  %v1482_v36 = vld [vmem:[#allocation11 + $0x738] sm:$0xff] }
 0x2b8   :  { %4331 = vmatpush3.bf16.msra.mxu0 %v4638_v40  ;;  %v4240_v39 = vcombine.high %v1478_v35, %v1482_v36  ;;  %v1470_v40 = vld [vmem:[#allocation11 + $0x6d8] sm:$0xff] }
 0x2b9   :  { %v2867_v6 = vpop.f32.mrf.mxu0  ;;  %4332 = vmatprep.subr.bf16.mxu0 %v4639_v42  ;;  %v1474_v42 = vld [vmem:[#allocation11 + $0x6f8] sm:$0xff] }
 0x2ba   :  { %3119 = vmatpush1.bf16.msra.mxu1 %v4191_v43  ;;  %v4239_v43 = vcombine.low %v1478_v35, %v1482_v36  ;;  %v1462_v47 = vld [vmem:[#allocation11 + $0x698] sm:$0xff]  ;;  %v4666_v35 = vld [vmem:[#allocation13 + $0x88] sm:$0xff]   ;;  %v4667_v36 = vld [vmem:[#allocation13 + $0xc0] sm:$0xff]  }
 0x2bb   :  { %v2868_v49 = vpop.f32.mrf.mxu0  ;;  %3120 = vmatprep.subr.bf16.mxu1 %v4184_v46  ;;  %v4232_v46 = vcombine.high %v1470_v40, %v1474_v42  ;;  %v1466_v48 = vld [vmem:[#allocation11 + $0x6b8] sm:$0xff] }
 0x2bc   :  { %4333 = vmatpush3.bf16.msra.mxu0 %v4640_v31  ;;  %v4231_v31 = vcombine.low %v1470_v40, %v1474_v42  ;;  %v4224_v6 = vcombine.high %v1462_v47, %v1466_v48  ;;  %v4223_v49 = vcombine.low %v1462_v47, %v1466_v48  ;;  %v4668_v40 = vld [vmem:[#allocation13 + $0x80] sm:$0xff]   ;;  %v4685_v42 = vld [vmem:[#allocation13 + $0x1f8] sm:$0xff]   ;;  %v4682_v47 = vld [vmem:[#allocation13 + $0x108] sm:$0xff]  }
 0x2bd   :  { %4334 = vmatprep.subr.bf16.mxu0 %v4641_v38  ;;  %v1454_v38 = vld [vmem:[#allocation11 + $0x658] sm:$0xff]  ;;  %v4683_v48 = vld [vmem:[#allocation13 + $0x140] sm:$0xff]  }
 0x2be   :  { %3121 = vmatpush1.bf16.msra.mxu1 %v4183_v10  ;;  %v1458_v10 = vld [vmem:[#allocation11 + $0x678] sm:$0xff] }
 0x2bf   :  { %3122 = vmatprep.subr.bf16.mxu1 %v4176_v32  ;;  %v4216_v32 = vcombine.high %v1454_v38, %v1458_v10 }
 0x2c0   :  { %4335 = vmatpush3.bf16.msra.mxu0 %v4642_v59  ;;  %v4215_v59 = vcombine.low %v1454_v38, %v1458_v10 }
 0x2c1   :  { %4336 = vmatprep.subr.bf16.mxu0 %v4643_v51  ;;  %v4208_v51 = vcombine.high %v1446_v45, %v1450_v50 }
 0x2c2   :  { %3123 = vmatpush1.bf16.msra.mxu1 %v4175_v52  ;;  %v5045_v52 = vld [vmem:[%s5084_s6] sm:$0xff] }
 0x2c3   :  { %3124 = vmatprep.subr.bf16.mxu1 %v4168_v53  ;;  %v4207_v53 = vcombine.low %v1446_v45, %v1450_v50  ;;  %v1512_v55 = vrot.slane %v5045_v52, %v4960_v15  ;;  %v1524_v38 = vrot.slane %v5045_v52, %v4969_v19  ;;  %v4687_v19 = vld [vmem:[#allocation13 + $0x1f0] sm:$0xff]  }
 0x2c4   :  { %4337 = vmatpush3.bf16.msra.mxu0 %v4644_v56  ;;  %v1516_v56 = vrot.slane %v5045_v52, %v4966_v18  ;;  %v4657_v18 = vld [vmem:[#allocation13 + $0xe8] sm:$0xff]  }
 0x2c5   :  { %4338 = vmatprep.subr.bf16.mxu0 %v4645_v57  ;;  %v4654_v57 = vld [vmem:[#allocation13 + $0xb8] sm:$0xff]  }
 0x2c6   :  { %3125 = vmatpush1.bf16.msra.mxu1 %v4167_v58  ;;  %v4655_v58 = vld [vmem:[#allocation13 + $0xf0] sm:$0xff]  }
 0x2c7   :  { %3126 = vmatprep.subr.bf16.mxu1 %v4160_v61  ;;  %v2864_v61 = vadd.f32 %v5036_v41, %v1512_v55 }
 0x2c8   :  { %4339 = vmatpush3.bf16.msra.mxu0 %v4646_v0  ;;  %v2866_v0 = vadd.f32 %v5040_v44, %v1516_v56 }
 0x2c9   :  { %4340 = vmatprep.subr.bf16.mxu0 %v4647_v1 }
 0x2ca   :  { %3127 = vmatpush1.bf16.msra.mxu1 %v4159_v4  ;;  %v4656_v4 = vld [vmem:[#allocation13 + $0xb0] sm:$0xff]  }
 0x2cb   :  { %3128 = vmatprep.subr.bf16.mxu1 %v4152_v7 }
 0x2cc   :  { %4341 = vmatpush3.bf16.msra.mxu0 %v4648_v11 }
 0x2cd   :  { %4342 = vmatprep.subr.bf16.mxu0 %v4649_v12 }
 0x2ce   :  { %3129 = vmatpush1.bf16.msra.mxu1 %v4151_v13 }
 0x2cf   :  { %3130 = vmatprep.subr.bf16.mxu1 %v4144_v17 }
 0x2d0   :  { %4343 = vmatpush3.bf16.msra.mxu0 %v4650_v22 }
 0x2d1   :  { %4344 = vmatprep.subr.bf16.mxu0 %v4651_v2  ;;  %v4671_v2 = vld [vmem:[#allocation13 + $0x170] sm:$0xff]  }
 0x2d2   :  { %3131 = vmatpush1.bf16.msra.mxu1 %v4143_v3  ;;  %v4660_v3 = vld [vmem:[#allocation13 + $0xa0] sm:$0xff]  }
 0x2d3   :  { %3132 = vmatprep.subr.bf16.mxu1 %v4264_v5  ;;  %v4661_v5 = vld [vmem:[#allocation13 + $0xd8] sm:$0xff]  }
 0x2d4   :  { %4345 = vmatpush3.bf16.msra.mxu0 %v4652_v25  ;;  %v4662_v25 = vld [vmem:[#allocation13 + $0x98] sm:$0xff]  }
 0x2d5   :  { %4374 = vmatprep.subr.bf16.mxu0 %v4669_v26  ;;  %v4663_v26 = vld [vmem:[#allocation13 + $0xd0] sm:$0xff]  }
 0x2d6   :  { %3133 = vmatpush2.bf16.msra.mxu1 %v4263_v27  ;;  %v4674_v27 = vld [vmem:[#allocation13 + $0x128] sm:$0xff]  }
 0x2d7   :  { %3134 = vmatprep.subr.bf16.mxu1 %v4256_v28  ;;  %v4675_v28 = vld [vmem:[#allocation13 + $0x160] sm:$0xff]  }
 0x2da   :  { %3135 = vmatpush2.bf16.msra.mxu1 %v4255_v33  ;;  %v4676_v33 = vld [vmem:[#allocation13 + $0x120] sm:$0xff]  }
 0x2db   :  { %3136 = vmatprep.subr.bf16.mxu1 %v4248_v34  ;;  %v4677_v34 = vld [vmem:[#allocation13 + $0x158] sm:$0xff]  }
 0x2de   :  { %3137 = vmatpush2.bf16.msra.mxu1 %v4247_v37  ;;  %v4678_v37 = vld [vmem:[#allocation13 + $0x118] sm:$0xff]  }
 0x2df   :  { %3138 = vmatprep.subr.bf16.mxu1 %v4240_v39  ;;  %v4679_v39 = vld [vmem:[#allocation13 + $0x150] sm:$0xff]  }
 0x2e2   :  { %3139 = vmatpush2.bf16.msra.mxu1 %v4239_v43  ;;  %v4680_v43 = vld [vmem:[#allocation13 + $0x110] sm:$0xff]  }
 0x2e3   :  { %3140 = vmatprep.subr.bf16.mxu1 %v4232_v46  ;;  %v4681_v46 = vld [vmem:[#allocation13 + $0x148] sm:$0xff]  }
 0x2e6   :  { %3141 = vmatpush2.bf16.msra.mxu1 %v4231_v31  ;;  %v4684_v31 = vld [vmem:[#allocation13 + $0x100] sm:$0xff]  }
 0x2e7   :  { %3142 = vmatprep.subr.bf16.mxu1 %v4224_v6  ;;  %v1520_v6 = vrot.slane %v5045_v52, %v4963_v16 }
 0x2ea   :  { %3143 = vmatpush2.bf16.msra.mxu1 %v4223_v49 }
 0x2eb   :  { %3144 = vmatprep.subr.bf16.mxu1 %v4216_v32 }
 0x2ee   :  { %3145 = vmatpush2.bf16.msra.mxu1 %v4215_v59 }
 0x2ef   :  { %3146 = vmatprep.subr.bf16.mxu1 %v4208_v51 }
 0x2f2   :  { %3147 = vmatpush2.bf16.msra.mxu1 %v4207_v53 }
 0x2f3   :  { %4352 = vmatprep.subr.bf16.mxu1 %v4653_v54 }
 0x2f5   :  { %3149 = vmatmul.mubr.bf16.vlgmr.msra.gmra.mxu1 %v5021_v60  ;;  %v2904_v62 = vpop.f32.mrf.mxu1  ;;  %v5053_v63 = vpop.f32.mrf.mxu0  ;;  %v4658_v60 = vld [vmem:[#allocation13 + $0xa8] sm:$0xff]  }
 0x2f6   :  { %v2905_v1 = vadd.f32 %v2904_v62, %v2864_v61  ;;  %4353 = vmatpush3.bf16.msra.mxu1 %v4654_v57  ;;  %v2946_v10 = vadd.f32 %v5053_v63, %v1520_v6  ;;  %v4686_v62 = vld [vmem:[#allocation13 + $0x1b8] sm:$0xff]   ;;  %v4688_v63 = vld [vmem:[#allocation13 + $0x1b0] sm:$0xff]  }
 0x2f7   :  { %v2906_v15 = vpop.f32.mrf.mxu1  ;;  %v5056_v7 = vpop.f32.mrf.mxu0  ;;  %4354 = vmatprep.subr.bf16.mxu1 %v4655_v58 }
 0x2f8   :  { %v2907_v8 = vadd.f32 %v2906_v15, %v2866_v0  ;;  %v3157_v9 = vmax.f32 %v2905_v1, 0.0  ;;  %v2948_v32 = vadd.f32 %v5056_v7, %v1524_v38  ;;  %v4689_v1 = vld [vmem:[#allocation13 + $0x1e8] sm:$0xff]   ;;  %v4691_v15 = vld [vmem:[#allocation13 + $0x1e0] sm:$0xff]  }
 0x2f9   :  { %v2908_v11 = vpop.f32.mrf.mxu1  ;;  %v2949_v12 = vpop.f32.mrf.mxu0  ;;  %v4692_v7 = vld [vmem:[#allocation13 + $0x1a0] sm:$0xff]  }
 0x2fa   :  { %v3158_v41 = vmax.f32 %v2907_v8, 0.0  ;;  %4355 = vmatpush3.bf16.msra.mxu1 %v4656_v4  ;;  %v3165_v22 = vpack.c.bf16 %v3157_v9, %v3157_v9  ;;  %v4690_v4 = vld [vmem:[#allocation13 + $0x1a8] sm:$0xff]   ;;  %v4694_v8 = vld [vmem:[#allocation13 + $0x198] sm:$0xff]   ;;  %v4695_v9 = vld [vmem:[#allocation13 + $0x1d0] sm:$0xff]  }
 0x2fb   :  { %v2909_v13 = vpop.f32.mrf.mxu1  ;;  %v2950_v17 = vpop.f32.mrf.mxu0  ;;  %4356 = vmatprep.subr.bf16.mxu1 %v4657_v18  ;;  %v4693_v18 = vld [vmem:[#allocation13 + $0x1d8] sm:$0xff]   ;;  %v4696_v11 = vld [vmem:[#allocation13 + $0x190] sm:$0xff]   ;;  %v4697_v12 = vld [vmem:[#allocation13 + $0x1c8] sm:$0xff]  }
 0x2fc   :  { %v3166_v44 = vpack.c.bf16 %v3158_v41, %v3158_v41  ;;  %v4698_v41 = vld [vmem:[#allocation13 + $0x188] sm:$0xff]   ;;  %v4700_v13 = vld [vmem:[#allocation13 + $0x180] sm:$0xff]   ;;  %v1527_v17 = vsub.s32 4, %v4957_v14 }
 0x2fe   :  { %3724 = vmatprep.mubr.bf16.mxu0 %v3166_v44  ;;  %4357 = vmatpush3.bf16.msra.mxu1 %v4658_v60  ;;  %v4699_v60 = vld [vmem:[#allocation13 + $0x1c0] sm:$0xff]   ;;  %v1528_v44 = vrot.slane %v5045_v52, %v1527_v17 }
 0x2ff   :  { %3725 = vmatmul.mubr.bf16.vlgmr.msra.gmra.mxu0 %v3165_v22  ;;  %4358 = vmatprep.subr.bf16.mxu1 %v4659_v20  ;;  %v1531_v20 = vsub.s32 5, %v4957_v14 }
 0x300   :  { %4375 = vmatpush3.bf16.msra.mxu0 %v4670_v21 }
 0x301   :  { %4376 = vmatprep.subr.bf16.mxu0 %v4671_v2  ;;  %v1532_v21 = vrot.slane %v5045_v52, %v1531_v20 }
 0x302   :  { %4359 = vmatpush3.bf16.msra.mxu1 %v4660_v3 }
 0x303   :  { %4360 = vmatprep.subr.bf16.mxu1 %v4661_v5 }
 0x304   :  { %4377 = vmatpush3.bf16.msra.mxu0 %v4672_v23 }
 0x305   :  { %4378 = vmatprep.subr.bf16.mxu0 %v4673_v24 }
 0x306   :  { %4361 = vmatpush3.bf16.msra.mxu1 %v4662_v25 }
 0x307   :  { %4362 = vmatprep.subr.bf16.mxu1 %v4663_v26 }
 0x308   :  { %4379 = vmatpush3.bf16.msra.mxu0 %v4674_v27 }
 0x309   :  { %4380 = vmatprep.subr.bf16.mxu0 %v4675_v28 }
 0x30a   :  { %4363 = vmatpush3.bf16.msra.mxu1 %v4664_v29 }
 0x30b   :  { %4364 = vmatprep.subr.bf16.mxu1 %v4665_v30 }
 0x30c   :  { %4381 = vmatpush3.bf16.msra.mxu0 %v4676_v33 }
 0x30d   :  { %4382 = vmatprep.subr.bf16.mxu0 %v4677_v34 }
 0x30e   :  { %4365 = vmatpush3.bf16.msra.mxu1 %v4666_v35 }
 0x30f   :  { %4366 = vmatprep.subr.bf16.mxu1 %v4667_v36 }
 0x310   :  { %4383 = vmatpush3.bf16.msra.mxu0 %v4678_v37  ;;  %v1535_v37 = vsub.s32 6, %v4957_v14 }
 0x311   :  { %4384 = vmatprep.subr.bf16.mxu0 %v4679_v39  ;;  %v1539_v39 = vsub.s32 7, %v4957_v14 }
 0x312   :  { %4367 = vmatpush3.bf16.msra.mxu1 %v4668_v40  ;;  %v1536_v40 = vrot.slane %v5045_v52, %v1535_v37 }
 0x313   :  { %4396 = vmatprep.subr.bf16.mxu1 %v4685_v42  ;;  %v1540_v42 = vrot.slane %v5045_v52, %v1539_v39  ;;  %v4265_v52 = vld [vmem:[%s5086_s8] ss:$0 sm:$0xff]  ;;  %s4841_s8 = scalar_lea.vmem %s3860_s25, 128 }
 0x314   :  { %4385 = vmatpush3.bf16.msra.mxu0 %v4680_v43  ;;  %p4842_p7 = scmp.ne.s32.totalorder %s3860_s25, %s4841_s8  ;;  %p4847_p9 = scmp.lt.s32.totalorder %s4841_s8, %s4841_s8 }
 0x315   :  { %4386 = vmatprep.subr.bf16.mxu0 %v4681_v46 }
 0x316   :  { %p4848_p10 = por %p4847_p9, %p4846_p8 }
 0x318   :  { %4387 = vmatpush3.bf16.msra.mxu0 %v4682_v47  ;;  %p4849_p11 = pnand %p4848_p10, %p4842_p7 }
 0x319   :  { %4388 = vmatprep.subr.bf16.mxu0 %v4683_v48 }
 0x31c   :  { %4389 = vmatpush3.bf16.msra.mxu0 %v4684_v31 }
 0x335   :  { %v2986_v49 = vpop.f32.mrf.mxu1 }
 0x336   :  { %v2987_v45 = vadd.f32 %v2986_v49, %v2946_v10  ;;  %v3027_v50 = vpop.f32.mrf.mxu0 }
 0x337   :  { %v2988_v59 = vpop.f32.mrf.mxu1  ;;  %v3028_v22 = vadd.f32 %v3027_v50, %v1528_v44 }
 0x338   :  { %v2989_v51 = vadd.f32 %v2988_v59, %v2948_v32  ;;  %v3029_v53 = vpop.f32.mrf.mxu0  ;;  %v3159_v54 = vmax.f32 %v2987_v45, 0.0 }
 0x339   :  { %v2990_v55 = vpop.f32.mrf.mxu1  ;;  %v3030_v3 = vadd.f32 %v3029_v53, %v1532_v21 }
 0x33a   :  { %v3160_v56 = vmax.f32 %v2989_v51, 0.0  ;;  %v3031_v57 = vpop.f32.mrf.mxu0  ;;  %v3167_v0 = vpack.c.bf16 %v3159_v54, %v3159_v54 }
 0x33b   :  { %v2991_v58 = vpop.f32.mrf.mxu1 }
 0x33c   :  { %v3168_v61 = vpack.c.bf16 %v3160_v56, %v3160_v56  ;;  %v3032_v16 = vpop.f32.mrf.mxu0 }
 0x33e   :  { %3764 = vmatprep.mubr.bf16.mxu1 %v3168_v61 }
 0x33f   :  { %3765 = vmatmul.mubr.bf16.vlgmr.msra.gmra.mxu1 %v3167_v0 }
 0x340   :  { %4397 = vmatpush3.bf16.msra.mxu1 %v4686_v62 }
 0x341   :  { %4398 = vmatprep.subr.bf16.mxu1 %v4687_v19 }
 0x344   :  { %4399 = vmatpush3.bf16.msra.mxu1 %v4688_v63 }
 0x345   :  { %4400 = vmatprep.subr.bf16.mxu1 %v4689_v1 }
 0x348   :  { %4401 = vmatpush3.bf16.msra.mxu1 %v4690_v4 }
 0x349   :  { %4402 = vmatprep.subr.bf16.mxu1 %v4691_v15 }
 0x34c   :  { %4403 = vmatpush3.bf16.msra.mxu1 %v4692_v7 }
 0x34d   :  { %4404 = vmatprep.subr.bf16.mxu1 %v4693_v18 }
 0x350   :  { %4405 = vmatpush3.bf16.msra.mxu1 %v4694_v8 }
 0x351   :  { %4406 = vmatprep.subr.bf16.mxu1 %v4695_v9 }
 0x354   :  { %4407 = vmatpush3.bf16.msra.mxu1 %v4696_v11 }
 0x355   :  { %4408 = vmatprep.subr.bf16.mxu1 %v4697_v12 }
 0x358   :  { %4409 = vmatpush3.bf16.msra.mxu1 %v4698_v41 }
 0x359   :  { %4410 = vmatprep.subr.bf16.mxu1 %v4699_v60 }
 0x35c   :  { %4411 = vmatpush3.bf16.msra.mxu1 %v4700_v13 }
 0x375   :  { %v3068_v2 = vpop.f32.mrf.mxu1 }
 0x376   :  { %v3069_v5 = vadd.f32 %v3068_v2, %v3028_v22  ;;  %v3109_v23 = vpop.f32.mrf.mxu0 }
 0x377   :  { %v3070_v24 = vpop.f32.mrf.mxu1  ;;  %v3110_v43 = vadd.f32 %v3109_v23, %v1536_v40 }
 0x378   :  { %v3071_v25 = vadd.f32 %v3070_v24, %v3030_v3  ;;  %v3111_v26 = vpop.f32.mrf.mxu0  ;;  %v3161_v27 = vmax.f32 %v3069_v5, 0.0 }
 0x379   :  { %v3072_v28 = vpop.f32.mrf.mxu1  ;;  %v3112_v47 = vadd.f32 %v3111_v26, %v1540_v42 }
 0x37a   :  { %v3162_v29 = vmax.f32 %v3071_v25, 0.0  ;;  %v3113_v30 = vpop.f32.mrf.mxu0  ;;  %v3169_v36 = vpack.c.bf16 %v3161_v27, %v3161_v27 }
 0x37b   :  { %v3073_v33 = vpop.f32.mrf.mxu1 }
 0x37c   :  { %v3170_v34 = vpack.c.bf16 %v3162_v29, %v3162_v29  ;;  %v3114_v35 = vpop.f32.mrf.mxu0 }
 0x37e   :  { %3804 = vmatprep.mubr.bf16.mxu0 %v3170_v34 }
 0x37f   :  { %3805 = vmatmul.mubr.bf16.vlgmr.msra.gmra.mxu0 %v3169_v36 }
 0x3b5   :  { %v3150_v46 = vpop.f32.mrf.mxu1 }
 0x3b6   :  { %v3151_v48 = vadd.f32 %v3150_v46, %v3110_v43 }
 0x3b7   :  { %v3152_v31 = vpop.f32.mrf.mxu1 }
 0x3b8   :  { %v3153_v6 = vadd.f32 %v3152_v31, %v3112_v47  ;;  %v3163_v38 = vmax.f32 %v3151_v48, 0.0 }
 0x3b9   :  { %v3154_v10 = vpop.f32.mrf.mxu1 }
 0x3ba   :  { %v3164_v49 = vmax.f32 %v3153_v6, 0.0  ;;  %v3171_v50 = vpack.c.bf16 %v3163_v38, %v3163_v38 }
 0x3bb   :  { %v3155_v32 = vpop.f32.mrf.mxu1 }
 0x3bc   :  { %v3172_v45 = vpack.c.bf16 %v3164_v49, %v3164_v49 }
 0x3be   :  { %3844 = vmatprep.mubr.bf16.mxu1 %v3172_v45 }
 0x3bf   :  { %3845 = vmatmul.mubr.bf16.vlgmr.msra.gmra.mxu1 %v3171_v50  ;;  %v4346_v59 = vpop.f32.mrf.mxu0 }
 0x3c1   :  { %v4347_v14 = vpop.f32.mrf.mxu0 }
 0x3c2   :  { %v4348_v51 = vadd.f32 %v4347_v14, %v4346_v59 }
 0x3c3   :  { %v4349_v53 = vpop.f32.mrf.mxu0 }
 0x3c4   :  { %v3727_v57 = vadd.f32 %v4348_v51, %v4265_v52 }
 0x3c5   :  { %v4350_v54 = vpop.f32.mrf.mxu0 }
 0x3ff   :  { %v4368_v55 = vpop.f32.mrf.mxu1 }
 0x401   :  { %v4369_v56 = vpop.f32.mrf.mxu1 }
 0x402   :  { %v4370_v58 = vadd.f32 %v4369_v56, %v4368_v55 }
 0x403   :  { %v4371_v61 = vpop.f32.mrf.mxu1 }
 0x404   :  { %v3767_v16 = vadd.f32 %v4370_v58, %v3727_v57 }
 0x405   :  { %v4372_v62 = vpop.f32.mrf.mxu1 }
 0x43f   :  { %v4390_v0 = vpop.f32.mrf.mxu0 }
 0x441   :  { %v4391_v19 = vpop.f32.mrf.mxu0 }
 0x442   :  { %v4392_v63 = vadd.f32 %v4391_v19, %v4390_v0 }
 0x443   :  { %v4393_v1 = vpop.f32.mrf.mxu0 }
 0x444   :  { %v3807_v4 = vadd.f32 %v4392_v63, %v3767_v16 }
 0x445   :  { %v4394_v15 = vpop.f32.mrf.mxu0 }
 0x47f   :  { %v4412_v7 = vpop.f32.mrf.mxu1 }
 0x481   :  { %v4413_v18 = vpop.f32.mrf.mxu1 }
 0x482   :  { %v4414_v8 = vadd.f32 %v4413_v18, %v4412_v7 }
 0x483   :  { %v4415_v9 = vpop.f32.mrf.mxu1 }
 0x484   :  { %v3847_v11 = vadd.f32 %v4414_v8, %v3807_v4 }
 0x485   :  { %v4416_v12 = vpop.f32.mrf.mxu1 }
 0x486   :  { %3852 = vst [vmem:[#allocation14] sm:$0xff] %v3847_v11 }
 0x487   :  { %4852 = shalt.err (!%p4849_p11)
}
 0x488   :  { %3862 = dma.vmem_to_hbm [thread:$0]  %s3860_s25, 128, %s5087_s9, [#allocation4]  }
 0x489   :  { %4869 = dma.done.wait [#allocation4], 128  }
 0x48a   :  { %4870 = vsyncadd [#allocation4], 4294967168 }
 0x48b   :  { %3866 = vsyncpa [#allocation3], 1 }
 0x48c   :  { %3867 = vsyncpa [#allocation6], 1 }
 0x48d   :  { %3868 = vsyncpa [#allocation9], 1 }
 0x48e   :  { %3869 = vsyncpa [#allocation12], 1 }
 0x48f   :  { %3870 = vsyncpa [#allocation4], 1 }

// kernel: tpu_custom_call.1
= control target key start
LH: loop header
LB: loop body
LE: loop exit
PB: predicated region body
PF: predicated region fallthrough
CT: control target
= control target key end

     0   :  { %14 = vsyncpa [#allocation3], 0  ;;  %s5078_s0 = inlined_call_operand.hbm [shape: f32[8,32], index: 0, kind: input, shape index: {}]   ;;  %s5079_s1 = inlined_call_operand.hbm [shape: bf16[32,512], index: 1, kind: input, shape index: {}]   ;;  %s5080_s2 = inlined_call_operand.hbm [shape: f32[1,512], index: 2, kind: input, shape index: {}]   ;;  %s5081_s3 = inlined_call_operand.hbm [shape: bf16[512,512], index: 3, kind: input, shape index: {}]   ;;  %s5082_s4 = inlined_call_operand.hbm [shape: f32[1,512], index: 4, kind: input, shape index: {}]   ;;  %s5083_s5 = inlined_call_operand.hbm [shape: bf16[512,1024], index: 5, kind: input, shape index: {}]   ;;  %s5084_s6 = inlined_call_operand.vmem [shape: f32[1,1024], index: 6, kind: input, shape index: {}]   ;;  %s5085_s7 = inlined_call_operand.hbm [shape: bf16[1024,128], index: 7, kind: input, shape index: {}]   ;;  %s5086_s8 = inlined_call_operand.vmem [shape: f32[1,128], index: 8, kind: input, shape index: {}]   ;;  %s5087_s9 = inlined_call_operand.hbm [shape: f32[8,128], index: 9, kind: output, shape index: {}]  }
   0x1   :  { %15 = vsyncpa [#allocation6], 0 }
   0x2   :  { %16 = vsyncpa [#allocation9], 0 }
   0x3   :  { %17 = vsyncpa [#allocation12], 0 }
   0x4   :  { %18 = vsyncpa [#allocation4], 0  ;;  %s4871_s30 = smov [#allocation5]  }
   0x5   :  { %s34_s10 = sshll.u32 %s4871_s30, 4  ;;  %s35_s10 = int_to_ptr.vmem [resolvable:$true] %s34_s10 }
   0x6   :  { %s4709_s11 = scalar_lea.vmem %s35_s10, 1024  ;;  %p4714_p1 = scmp.lt.s32.totalorder %s35_s10, %s35_s10 }
   0x7   :  { %p4710_p0 = scmp.ne.s32.totalorder %s35_s10, %s4709_s11  ;;  %p4715_p2 = scmp.lt.s32.totalorder %s4709_s11, %s4709_s11 }
   0x9   :  { %p4716_p3 = por %p4715_p2, %p4714_p1 }
   0xb   :  { %p4717_p4 = pnand %p4716_p3, %p4710_p0 }
   0xd   :  { %4720 = shalt.err (!%p4717_p4)
}
   0xe   :  { %s4872_s12 = smov 256   ;;  %s4873_s13 = smov 16  }
   0xf   :  { %40 = dma.hbm_to_vmem [thread:$0]  %s5079_s1, 1024, %s35_s10, [#allocation6], %s4872_s12, %s4872_s12, %s4873_s13  }
  0x10   :  { %s4874_s16 = smov [#allocation8]   ;;  %s4875_s18 = smov [#allocation11]  }
  0x11   :  { %s56_s17 = sshll.u32 %s4874_s16, 4  ;;  %s78_s19 = sshll.u32 %s4875_s18, 4  ;;  %s57_s17 = int_to_ptr.vmem [resolvable:$true] %s56_s17  ;;  %s79_s19 = int_to_ptr.vmem [resolvable:$true] %s78_s19 }
  0x12   :  { %s4729_s20 = scalar_lea.vmem %s57_s17, 16384  ;;  %p4734_p6 = scmp.lt.s32.totalorder %s57_s17, %s57_s17 }
  0x13   :  { %p4730_p5 = scmp.ne.s32.totalorder %s57_s17, %s4729_s20  ;;  %p4735_p7 = scmp.lt.s32.totalorder %s4729_s20, %s4729_s20 }
  0x15   :  { %p4736_p8 = por %p4735_p7, %p4734_p6 }
  0x17   :  { %p4737_p9 = pnand %p4736_p8, %p4730_p5 }
  0x19   :  { %4740 = shalt.err (!%p4737_p9)
}
  0x1a   :  { %62 = dma.hbm_to_vmem [thread:$0]  %s5081_s3, 16384, %s57_s17, [#allocation9], %s4872_s12, %s4872_s12, %s4873_s13  }
  0x1b   :  { %s4749_s23 = scalar_lea.vmem %s79_s19, 32768  ;;  %p4754_p11 = scmp.lt.s32.totalorder %s79_s19, %s79_s19 }
  0x1c   :  { %p4750_p10 = scmp.ne.s32.totalorder %s79_s19, %s4749_s23  ;;  %p4755_p12 = scmp.lt.s32.totalorder %s4749_s23, %s4749_s23 }
  0x1e   :  { %p4756_p13 = por %p4755_p12, %p4754_p11 }
  0x20   :  { %p4757_p0 = pnand %p4756_p13, %p4750_p10 }
  0x22   :  { %4760 = shalt.err (!%p4757_p0)
}
  0x23   :  { %s4876_s1 = smov 512   ;;  %s4877_s24 = smov 32  }
  0x24   :  { %84 = dma.hbm_to_vmem [thread:$0]  %s5083_s5, 32768, %s79_s19, [#allocation12], %s4876_s1, %s4876_s1, %s4877_s24  }
  0x25   :  { %s4878_s27 = smov [#allocation2]   ;;  %s4879_s29 = smov [#allocation7]  }
  0x26   :  { %s25_s28 = sshll.u32 %s4878_s27, 4  ;;  %s47_s30 = sshll.u32 %s4879_s29, 4  ;;  %s26_s28 = int_to_ptr.vmem [resolvable:$true] %s25_s28  ;;  %s48_s30 = int_to_ptr.vmem [resolvable:$true] %s47_s30 }
  0x27   :  { %s4769_s3 = scalar_lea.vmem %s26_s28, 128  ;;  %p4774_p2 = scmp.lt.s32.totalorder %s26_s28, %s26_s28 }
  0x28   :  { %p4770_p1 = scmp.ne.s32.totalorder %s26_s28, %s4769_s3  ;;  %p4775_p3 = scmp.lt.s32.totalorder %s4769_s3, %s4769_s3 }
  0x2a   :  { %p4776_p4 = por %p4775_p3, %p4774_p2 }
  0x2c   :  { %p4777_p5 = pnand %p4776_p4, %p4770_p1 }
  0x2e   :  { %4780 = shalt.err (!%p4777_p5)
}
  0x2f   :  { %28 = dma.hbm_to_vmem [thread:$0]  %s5078_s0, 128, %s26_s28, [#allocation3]  }
  0x30   :  { %s4789_s12 = scalar_lea.vmem %s48_s30, 64  ;;  %p4794_p7 = scmp.lt.s32.totalorder %s48_s30, %s48_s30 }
  0x31   :  { %p4790_p6 = scmp.ne.s32.totalorder %s48_s30, %s4789_s12  ;;  %p4795_p8 = scmp.lt.s32.totalorder %s4789_s12, %s4789_s12 }
  0x33   :  { %p4796_p9 = por %p4795_p8, %p4794_p7 }
  0x35   :  { %p4797_p10 = pnand %p4796_p9, %p4790_p6 }
  0x37   :  { %4800 = shalt.err (!%p4797_p10)
}
  0x38   :  { %50 = dma.hbm_to_vmem [thread:$0]  %s5080_s2, 64, %s48_s30, [#allocation6]  }
  0x39   :  { %s4880_s14 = smov [#allocation10]   ;;  %s4881_s16 = smov [#allocation13]  }
  0x3a   :  { %s69_s15 = sshll.u32 %s4880_s14, 4  ;;  %s92_s17 = sshll.u32 %s4881_s16, 4  ;;  %s70_s15 = int_to_ptr.vmem [resolvable:$true] %s69_s15  ;;  %s93_s17 = int_to_ptr.vmem [resolvable:$true] %s92_s17 }
  0x3b   :  { %s4809_s18 = scalar_lea.vmem %s70_s15, 64  ;;  %p4814_p12 = scmp.lt.s32.totalorder %s70_s15, %s70_s15 }
  0x3c   :  { %p4810_p11 = scmp.ne.s32.totalorder %s70_s15, %s4809_s18  ;;  %p4815_p13 = scmp.lt.s32.totalorder %s4809_s18, %s4809_s18 }
  0x3e   :  { %p4816_p0 = por %p4815_p13, %p4814_p12 }
  0x40   :  { %p4817_p1 = pnand %p4816_p0, %p4810_p11 }
  0x42   :  { %4820 = shalt.err (!%p4817_p1)
}
  0x43   :  { %72 = dma.hbm_to_vmem [thread:$0]  %s5082_s4, 64, %s70_s15, [#allocation9]  }
  0x44   :  { %s4829_s20 = scalar_lea.vmem %s93_s17, 8192  ;;  %p4834_p3 = scmp.lt.s32.totalorder %s93_s17, %s93_s17 }
  0x45   :  { %p4830_p2 = scmp.ne.s32.totalorder %s93_s17, %s4829_s20  ;;  %p4835_p4 = scmp.lt.s32.totalorder %s4829_s20, %s4829_s20 }
  0x47   :  { %p4836_p5 = por %p4835_p4, %p4834_p3 }
  0x49   :  { %p4837_p6 = pnand %p4836_p5, %p4830_p2 }
  0x4b   :  { %4840 = shalt.err (!%p4837_p6)
}
  0x4c   :  { %s4882_s2 = smov 64   ;;  %s4883_s21 = smov 4  }
  0x4d   :  { %98 = dma.hbm_to_vmem [thread:$0]  %s5085_s7, 8192, %s93_s17, [#allocation12], %s4882_s2, %s4882_s2, %s4883_s21  }
  0x4e   :  { %4861 = dma.done.wait [#allocation3], 128  }
  0x4f   :  { %4862 = vsyncadd [#allocation3], 4294967168 }
  0x50   :  { %4863 = dma.done.wait [#allocation6], 1088  }
  0x51   :  { %4864 = vsyncadd [#allocation6], 4294966208 }
  0x52   :  { %4865 = dma.done.wait [#allocation9], 16448  }
  0x53   :  { %4866 = vsyncadd [#allocation9], 4294950848 }
  0x54   :  { %4867 = dma.done.wait [#allocation12], 40960  }
  0x55   :  { %4868 = vsyncadd [#allocation12], 4294926336  ;;  %v4884_v0 = vmov 0   ;;  %v4433_v1 = vld [vmem:[#allocation5 + $0x24] ss:$16 sps:$4 sm:$0xff]   ;;  %v123_v9 = vld [vmem:[#allocation2] sm:$0xff] }
  0x56   :  { %231 = vmatprep.mubr.bf16.mxu0 %v4884_v0  ;;  %272 = vmatprep.mubr.bf16.mxu1 %v4884_v0  ;;  %v4435_v2 = vld [vmem:[#allocation5 + $0x2c] ss:$16 sps:$4 sm:$0xff]   ;;  %v4437_v3 = vld [vmem:[#allocation5 + $0x20] ss:$16 sps:$4 sm:$0xff]   ;;  %v4438_v4 = vld [vmem:[#allocation5 + $0x28] ss:$16 sps:$4 sm:$0xff]   ;;  %v124_v12 = vpack.c.bf16 %v123_v9, %v123_v9 }
  0x57   :  { %211 = vmatprep.subr.bf16.mxu0 %v4433_v1  ;;  %252 = vmatprep.subr.bf16.mxu1 %v4435_v2  ;;  %v4439_v5 = vld [vmem:[#allocation5 + $0x4] ss:$16 sps:$4 sm:$0xff]   ;;  %v4441_v6 = vld [vmem:[#allocation5 + $0xc] ss:$16 sps:$4 sm:$0xff]   ;;  %v4443_v7 = vld [vmem:[#allocation5] ss:$16 sps:$4 sm:$0xff]  }
  0x58   :  { %212 = vmatpush1.bf16.msra.mxu0 %v4437_v3  ;;  %253 = vmatpush1.bf16.msra.mxu1 %v4438_v4  ;;  %v4444_v8 = vld [vmem:[#allocation5 + $0x8] ss:$16 sps:$4 sm:$0xff]   ;;  %v4445_v10 = vld [vmem:[#allocation8 + $0xe0] ss:$16 sps:$4 sm:$0xff]   ;;  %vm195_vm0 = vcmask 261120   ;;  %s4885_s24 = smov [#allocation14]  }
  0x59   :  { %213 = vmatprep.subr.bf16.mxu0 %v4439_v5  ;;  %254 = vmatprep.subr.bf16.mxu1 %v4441_v6  ;;  %v4447_v11 = vld [vmem:[#allocation8 + $0xe4] ss:$16 sps:$4 sm:$0xff]   ;;  %v4448_v13 = vld [vmem:[#allocation8 + $0x2e0] ss:$16 sps:$4 sm:$0xff]   ;;  %s3859_s25 = sshll.u32 %s4885_s24, 4  ;;  %s3860_s25 = int_to_ptr.vmem [resolvable:$true] %s3859_s25 }
  0x5a   :  { %v4450_v14 = vld [vmem:[#allocation8 + $0x2e4] ss:$16 sps:$4 sm:$0xff]   ;;  %v4451_v17 = vld [vmem:[#allocation8 + $0xc0] ss:$16 sps:$4 sm:$0xff]   ;;  %p4846_p8 = scmp.lt.s32.totalorder %s3860_s25, %s3860_s25 }
  0x5b   :  { %v4453_v15 = vld [vmem:[#allocation8 + $0xc4] ss:$16 sps:$4 sm:$0xff]   ;;  %v4454_v18 = vld [vmem:[#allocation8 + $0x2c0] ss:$16 sps:$4 sm:$0xff]  }
  0x5c   :  { %214 = vmatpush1.bf16.msra.mxu0 %v4443_v7  ;;  %255 = vmatpush1.bf16.msra.mxu1 %v4444_v8  ;;  %v4456_v16 = vld [vmem:[#allocation8 + $0x2c4] ss:$16 sps:$4 sm:$0xff]   ;;  %v4457_v21 = vld [vmem:[#allocation8 + $0xa0] ss:$16 sps:$4 sm:$0xff]  }
  0x5d   :  { %1079 = vmatprep.subr.bf16.mxu0 %v4447_v11  ;;  %1120 = vmatprep.subr.bf16.mxu1 %v4450_v14  ;;  %v4459_v19 = vld [vmem:[#allocation8 + $0xa4] ss:$16 sps:$4 sm:$0xff]   ;;  %v4460_v22 = vld [vmem:[#allocation8 + $0x2a0] ss:$16 sps:$4 sm:$0xff]   ;;  %v4543_v11 = vld [vmem:[#allocation8 + $0xec] ss:$16 sps:$4 sm:$0xff]  }
  0x5e   :  { %v4462_v20 = vld [vmem:[#allocation8 + $0x2a4] ss:$16 sps:$4 sm:$0xff]   ;;  %v4463_v25 = vld [vmem:[#allocation8 + $0x80] ss:$16 sps:$4 sm:$0xff]  }
  0x5f   :  { %3879 = vmatmul.mubr.msk.bf16.vlgmr.msra.gmra.mxu0 %vm195_vm0, %v124_v12  ;;  %3880 = vmatmul.mubr.msk.bf16.vlgmr.msra.gmra.mxu1 %vm195_vm0, %v124_v12  ;;  %v4465_v23 = vld [vmem:[#allocation8 + $0x84] ss:$16 sps:$4 sm:$0xff]   ;;  %v4466_v26 = vld [vmem:[#allocation8 + $0x280] ss:$16 sps:$4 sm:$0xff]   ;;  %v4546_v12 = vld [vmem:[#allocation8 + $0x2ec] ss:$16 sps:$4 sm:$0xff]  }
  0x60   :  { %1080 = vmatpush1.bf16.msra.mxu0 %v4445_v10  ;;  %1121 = vmatpush1.bf16.msra.mxu1 %v4448_v13  ;;  %v4468_v24 = vld [vmem:[#allocation8 + $0x284] ss:$16 sps:$4 sm:$0xff]   ;;  %v4469_v29 = vld [vmem:[#allocation8 + $0x60] ss:$16 sps:$4 sm:$0xff]   ;;  %v135_v13 = vlaneseq }
  0x61   :  { %1081 = vmatprep.subr.bf16.mxu0 %v4453_v15  ;;  %1122 = vmatprep.subr.bf16.mxu1 %v4456_v16  ;;  %v4471_v27 = vld [vmem:[#allocation8 + $0x64] ss:$16 sps:$4 sm:$0xff]   ;;  %v4472_v30 = vld [vmem:[#allocation8 + $0x260] ss:$16 sps:$4 sm:$0xff]  }
  0x62   :  { %v4474_v28 = vld [vmem:[#allocation8 + $0x264] ss:$16 sps:$4 sm:$0xff]   ;;  %v4475_v33 = vld [vmem:[#allocation8 + $0x40] ss:$16 sps:$4 sm:$0xff]   ;;  %v4957_v14 = vshrl.u32 %v135_v13, 7 }
  0x63   :  { %v4477_v31 = vld [vmem:[#allocation8 + $0x44] ss:$16 sps:$4 sm:$0xff]   ;;  %v4478_v34 = vld [vmem:[#allocation8 + $0x240] ss:$16 sps:$4 sm:$0xff]   ;;  %v4592_v13 = vld [vmem:[#allocation8 + $0x3e8] ss:$16 sps:$4 sm:$0xff]  }
  0x64   :  { %1082 = vmatpush1.bf16.msra.mxu0 %v4451_v17  ;;  %1123 = vmatpush1.bf16.msra.mxu1 %v4454_v18  ;;  %v4480_v32 = vld [vmem:[#allocation8 + $0x244] ss:$16 sps:$4 sm:$0xff]   ;;  %v4481_v37 = vld [vmem:[#allocation8 + $0x20] ss:$16 sps:$4 sm:$0xff]   ;;  %v4960_v15 = vsub.s32 0, %v4957_v14  ;;  %v4963_v16 = vsub.s32 2, %v4957_v14 }
  0x65   :  { %1083 = vmatprep.subr.bf16.mxu0 %v4459_v19  ;;  %1124 = vmatprep.subr.bf16.mxu1 %v4462_v20  ;;  %v4483_v35 = vld [vmem:[#allocation8 + $0x24] ss:$16 sps:$4 sm:$0xff]   ;;  %v4484_v38 = vld [vmem:[#allocation8 + $0x220] ss:$16 sps:$4 sm:$0xff]   ;;  %v133_v17 = vld [vmem:[#allocation7] sm:$0xf] }
  0x66   :  { %v4486_v36 = vld [vmem:[#allocation8 + $0x224] ss:$16 sps:$4 sm:$0xff]   ;;  %v4487_v41 = vld [vmem:[#allocation8] ss:$16 sps:$4 sm:$0xff]   ;;  %v4966_v18 = vsub.s32 1, %v4957_v14  ;;  %v4969_v19 = vsub.s32 3, %v4957_v14  ;;  %v138_v20 = vrot.slane %v133_v17, %v4960_v15 }
  0x67   :  { %v4489_v39 = vld [vmem:[#allocation8 + $0x4] ss:$16 sps:$4 sm:$0xff]   ;;  %v4490_v42 = vld [vmem:[#allocation8 + $0x200] ss:$16 sps:$4 sm:$0xff]  }
  0x68   :  { %1084 = vmatpush1.bf16.msra.mxu0 %v4457_v21  ;;  %1125 = vmatpush1.bf16.msra.mxu1 %v4460_v22  ;;  %v4492_v40 = vld [vmem:[#allocation8 + $0x204] ss:$16 sps:$4 sm:$0xff]   ;;  %v4493_v45 = vld [vmem:[#allocation8 + $0x1e0] ss:$16 sps:$4 sm:$0xff]   ;;  %v146_v21 = vrot.slane %v133_v17, %v4963_v16  ;;  %v142_v22 = vrot.slane %v133_v17, %v4966_v18 }
  0x69   :  { %1085 = vmatprep.subr.bf16.mxu0 %v4465_v23  ;;  %1126 = vmatprep.subr.bf16.mxu1 %v4468_v24  ;;  %v4495_v43 = vld [vmem:[#allocation8 + $0x1e4] ss:$16 sps:$4 sm:$0xff]   ;;  %v4496_v46 = vld [vmem:[#allocation8 + $0x3e0] ss:$16 sps:$4 sm:$0xff]   ;;  %v150_v23 = vrot.slane %v133_v17, %v4969_v19  ;;  %v4597_v17 = vld [vmem:[#allocation8 + $0x1cc] ss:$16 sps:$4 sm:$0xff]  }
  0x6a   :  { %v4498_v44 = vld [vmem:[#allocation8 + $0x3e4] ss:$16 sps:$4 sm:$0xff]   ;;  %v4499_v49 = vld [vmem:[#allocation8 + $0x1c0] ss:$16 sps:$4 sm:$0xff]  }
  0x6b   :  { %v4501_v47 = vld [vmem:[#allocation8 + $0x1c4] ss:$16 sps:$4 sm:$0xff]   ;;  %v4502_v50 = vld [vmem:[#allocation8 + $0x3c0] ss:$16 sps:$4 sm:$0xff]  }
  0x6c   :  { %1086 = vmatpush1.bf16.msra.mxu0 %v4463_v25  ;;  %1127 = vmatpush1.bf16.msra.mxu1 %v4466_v26  ;;  %v4504_v48 = vld [vmem:[#allocation8 + $0x3c4] ss:$16 sps:$4 sm:$0xff]   ;;  %v4505_v53 = vld [vmem:[#allocation8 + $0x1a0] ss:$16 sps:$4 sm:$0xff]  }
  0x6d   :  { %1087 = vmatprep.subr.bf16.mxu0 %v4471_v27  ;;  %1128 = vmatprep.subr.bf16.mxu1 %v4474_v28  ;;  %v4507_v51 = vld [vmem:[#allocation8 + $0x1a4] ss:$16 sps:$4 sm:$0xff]   ;;  %v4508_v54 = vld [vmem:[#allocation8 + $0x3a0] ss:$16 sps:$4 sm:$0xff]  }
  0x6e   :  { %v4510_v52 = vld [vmem:[#allocation8 + $0x3a4] ss:$16 sps:$4 sm:$0xff]   ;;  %v4511_v57 = vld [vmem:[#allocation8 + $0x180] ss:$16 sps:$4 sm:$0xff]  }
  0x6f   :  { %v4513_v55 = vld [vmem:[#allocation8 + $0x184] ss:$16 sps:$4 sm:$0xff]   ;;  %v4514_v58 = vld [vmem:[#allocation8 + $0x380] ss:$16 sps:$4 sm:$0xff]  }
  0x70   :  { %1088 = vmatpush1.bf16.msra.mxu0 %v4469_v29  ;;  %1129 = vmatpush1.bf16.msra.mxu1 %v4472_v30  ;;  %v4516_v56 = vld [vmem:[#allocation8 + $0x384] ss:$16 sps:$4 sm:$0xff]   ;;  %v4517_v61 = vld [vmem:[#allocation8 + $0x160] ss:$16 sps:$4 sm:$0xff]  }
  0x71   :  { %1089 = vmatprep.subr.bf16.mxu0 %v4477_v31  ;;  %1130 = vmatprep.subr.bf16.mxu1 %v4480_v32  ;;  %v4519_v59 = vld [vmem:[#allocation8 + $0x164] ss:$16 sps:$4 sm:$0xff]   ;;  %v4520_v62 = vld [vmem:[#allocation8 + $0x360] ss:$16 sps:$4 sm:$0xff]  }
  0x72   :  { %v4522_v60 = vld [vmem:[#allocation8 + $0x364] ss:$16 sps:$4 sm:$0xff]   ;;  %v4523_v1 = vld [vmem:[#allocation8 + $0x140] ss:$16 sps:$4 sm:$0xff]  }
  0x73   :  { %v4525_v63 = vld [vmem:[#allocation8 + $0x144] ss:$16 sps:$4 sm:$0xff]   ;;  %v4526_v2 = vld [vmem:[#allocation8 + $0x340] ss:$16 sps:$4 sm:$0xff]  }
  0x74   :  { %1090 = vmatpush1.bf16.msra.mxu0 %v4475_v33  ;;  %1131 = vmatpush1.bf16.msra.mxu1 %v4478_v34  ;;  %v4528_v0 = vld [vmem:[#allocation8 + $0x344] ss:$16 sps:$4 sm:$0xff]   ;;  %v4529_v5 = vld [vmem:[#allocation8 + $0x120] ss:$16 sps:$4 sm:$0xff]  }
  0x75   :  { %1091 = vmatprep.subr.bf16.mxu0 %v4483_v35  ;;  %1132 = vmatprep.subr.bf16.mxu1 %v4486_v36  ;;  %v4531_v3 = vld [vmem:[#allocation8 + $0x124] ss:$16 sps:$4 sm:$0xff]   ;;  %v4532_v6 = vld [vmem:[#allocation8 + $0x320] ss:$16 sps:$4 sm:$0xff]  }
  0x76   :  { %v4534_v4 = vld [vmem:[#allocation8 + $0x324] ss:$16 sps:$4 sm:$0xff]   ;;  %v4535_v9 = vld [vmem:[#allocation8 + $0x100] ss:$16 sps:$4 sm:$0xff]  }
  0x77   :  { %v4537_v7 = vld [vmem:[#allocation8 + $0x104] ss:$16 sps:$4 sm:$0xff]   ;;  %v4538_v10 = vld [vmem:[#allocation8 + $0x300] ss:$16 sps:$4 sm:$0xff]  }
  0x78   :  { %1092 = vmatpush1.bf16.msra.mxu0 %v4481_v37  ;;  %1133 = vmatpush1.bf16.msra.mxu1 %v4484_v38  ;;  %v4540_v8 = vld [vmem:[#allocation8 + $0x304] ss:$16 sps:$4 sm:$0xff]  }
  0x79   :  { %1093 = vmatprep.subr.bf16.mxu0 %v4489_v39  ;;  %1134 = vmatprep.subr.bf16.mxu1 %v4492_v40 }
  0x7c   :  { %1094 = vmatpush1.bf16.msra.mxu0 %v4487_v41  ;;  %1135 = vmatpush1.bf16.msra.mxu1 %v4490_v42 }
  0x7d   :  { %1095 = vmatprep.subr.bf16.mxu0 %v4495_v43  ;;  %1136 = vmatprep.subr.bf16.mxu1 %v4498_v44  ;;  %v4541_v43 = vld [vmem:[#allocation8 + $0xe8] ss:$16 sps:$4 sm:$0xff]  }
  0x7e   :  { %v4544_v44 = vld [vmem:[#allocation8 + $0x2e8] ss:$16 sps:$4 sm:$0xff]  }
  0x80   :  { %1096 = vmatpush2.bf16.msra.mxu0 %v4493_v45  ;;  %1137 = vmatpush2.bf16.msra.mxu1 %v4496_v46  ;;  %v4549_v46 = vld [vmem:[#allocation8 + $0xcc] ss:$16 sps:$4 sm:$0xff]  }
  0x81   :  { %1097 = vmatprep.subr.bf16.mxu0 %v4501_v47  ;;  %1138 = vmatprep.subr.bf16.mxu1 %v4504_v48  ;;  %v4552_v47 = vld [vmem:[#allocation8 + $0x2cc] ss:$16 sps:$4 sm:$0xff]   ;;  %v4547_v48 = vld [vmem:[#allocation8 + $0xc8] ss:$16 sps:$4 sm:$0xff]  }
  0x84   :  { %1098 = vmatpush2.bf16.msra.mxu0 %v4499_v49  ;;  %1139 = vmatpush2.bf16.msra.mxu1 %v4502_v50  ;;  %v4550_v49 = vld [vmem:[#allocation8 + $0x2c8] ss:$16 sps:$4 sm:$0xff]   ;;  %v4555_v50 = vld [vmem:[#allocation8 + $0xac] ss:$16 sps:$4 sm:$0xff]  }
  0x85   :  { %1099 = vmatprep.subr.bf16.mxu0 %v4507_v51  ;;  %1140 = vmatprep.subr.bf16.mxu1 %v4510_v52  ;;  %v4558_v51 = vld [vmem:[#allocation8 + $0x2ac] ss:$16 sps:$4 sm:$0xff]   ;;  %v4553_v52 = vld [vmem:[#allocation8 + $0xa8] ss:$16 sps:$4 sm:$0xff]  }
  0x88   :  { %1100 = vmatpush2.bf16.msra.mxu0 %v4505_v53  ;;  %1141 = vmatpush2.bf16.msra.mxu1 %v4508_v54  ;;  %v4556_v53 = vld [vmem:[#allocation8 + $0x2a8] ss:$16 sps:$4 sm:$0xff]   ;;  %v4561_v54 = vld [vmem:[#allocation8 + $0x8c] ss:$16 sps:$4 sm:$0xff]  }
  0x89   :  { %1101 = vmatprep.subr.bf16.mxu0 %v4513_v55  ;;  %1142 = vmatprep.subr.bf16.mxu1 %v4516_v56  ;;  %v4564_v55 = vld [vmem:[#allocation8 + $0x28c] ss:$16 sps:$4 sm:$0xff]   ;;  %v4559_v56 = vld [vmem:[#allocation8 + $0x88] ss:$16 sps:$4 sm:$0xff]  }
  0x8c   :  { %1102 = vmatpush2.bf16.msra.mxu0 %v4511_v57  ;;  %1143 = vmatpush2.bf16.msra.mxu1 %v4514_v58  ;;  %v4562_v57 = vld [vmem:[#allocation8 + $0x288] ss:$16 sps:$4 sm:$0xff]   ;;  %v4567_v58 = vld [vmem:[#allocation8 + $0x6c] ss:$16 sps:$4 sm:$0xff]  }
  0x8d   :  { %1103 = vmatprep.subr.bf16.mxu0 %v4519_v59  ;;  %1144 = vmatprep.subr.bf16.mxu1 %v4522_v60  ;;  %v4570_v59 = vld [vmem:[#allocation8 + $0x26c] ss:$16 sps:$4 sm:$0xff]   ;;  %v4565_v60 = vld [vmem:[#allocation8 + $0x68] ss:$16 sps:$4 sm:$0xff]  }
  0x90   :  { %1104 = vmatpush2.bf16.msra.mxu0 %v4517_v61  ;;  %1145 = vmatpush2.bf16.msra.mxu1 %v4520_v62  ;;  %v4568_v61 = vld [vmem:[#allocation8 + $0x268] ss:$16 sps:$4 sm:$0xff]   ;;  %v4573_v62 = vld [vmem:[#allocation8 + $0x4c] ss:$16 sps:$4 sm:$0xff]  }
  0x91   :  { %1105 = vmatprep.subr.bf16.mxu0 %v4525_v63  ;;  %1146 = vmatprep.subr.bf16.mxu1 %v4528_v0  ;;  %v4576_v63 = vld [vmem:[#allocation8 + $0x24c] ss:$16 sps:$4 sm:$0xff]   ;;  %v4571_v0 = vld [vmem:[#allocation8 + $0x48] ss:$16 sps:$4 sm:$0xff]  }
  0x94   :  { %1106 = vmatpush2.bf16.msra.mxu0 %v4523_v1  ;;  %1147 = vmatpush2.bf16.msra.mxu1 %v4526_v2  ;;  %v4574_v1 = vld [vmem:[#allocation8 + $0x248] ss:$16 sps:$4 sm:$0xff]   ;;  %v4579_v2 = vld [vmem:[#allocation8 + $0x2c] ss:$16 sps:$4 sm:$0xff]  }
  0x95   :  { %1107 = vmatprep.subr.bf16.mxu0 %v4531_v3  ;;  %1148 = vmatprep.subr.bf16.mxu1 %v4534_v4  ;;  %v4582_v3 = vld [vmem:[#allocation8 + $0x22c] ss:$16 sps:$4 sm:$0xff]   ;;  %v4577_v4 = vld [vmem:[#allocation8 + $0x28] ss:$16 sps:$4 sm:$0xff]  }
  0x98   :  { %1108 = vmatpush2.bf16.msra.mxu0 %v4529_v5  ;;  %1149 = vmatpush2.bf16.msra.mxu1 %v4532_v6  ;;  %v4580_v5 = vld [vmem:[#allocation8 + $0x228] ss:$16 sps:$4 sm:$0xff]   ;;  %v4585_v6 = vld [vmem:[#allocation8 + $0xc] ss:$16 sps:$4 sm:$0xff]  }
  0x99   :  { %1109 = vmatprep.subr.bf16.mxu0 %v4537_v7  ;;  %1150 = vmatprep.subr.bf16.mxu1 %v4540_v8  ;;  %v4588_v7 = vld [vmem:[#allocation8 + $0x20c] ss:$16 sps:$4 sm:$0xff]   ;;  %v4583_v8 = vld [vmem:[#allocation8 + $0x8] ss:$16 sps:$4 sm:$0xff]  }
  0x9c   :  { %1110 = vmatpush2.bf16.msra.mxu0 %v4535_v9  ;;  %1151 = vmatpush2.bf16.msra.mxu1 %v4538_v10  ;;  %v4586_v9 = vld [vmem:[#allocation8 + $0x208] ss:$16 sps:$4 sm:$0xff]   ;;  %v4591_v10 = vld [vmem:[#allocation8 + $0x1ec] ss:$16 sps:$4 sm:$0xff]  }
  0x9d   :  { %1161 = vmatprep.subr.bf16.mxu0 %v4543_v11  ;;  %1202 = vmatprep.subr.bf16.mxu1 %v4546_v12  ;;  %v4594_v11 = vld [vmem:[#allocation8 + $0x3ec] ss:$16 sps:$4 sm:$0xff]   ;;  %v4589_v12 = vld [vmem:[#allocation8 + $0x1e8] ss:$16 sps:$4 sm:$0xff]  }
 0x11f   :  { %v233_v24 = vpop.f32.mrf.mxu0  ;;  %v274_v25 = vpop.f32.mrf.mxu1 }
 0x120   :  { %v234_v26 = vadd.f32 %v233_v24, %v138_v20  ;;  %v275_v27 = vadd.f32 %v274_v25, %v146_v21  ;;  %v4600_v20 = vld [vmem:[#allocation8 + $0x3cc] ss:$16 sps:$4 sm:$0xff]   ;;  %v4595_v21 = vld [vmem:[#allocation8 + $0x1c8] ss:$16 sps:$4 sm:$0xff]  }
 0x121   :  { %v235_v28 = vpop.f32.mrf.mxu0  ;;  %v276_v29 = vpop.f32.mrf.mxu1  ;;  %v4606_v24 = vld [vmem:[#allocation8 + $0x3ac] ss:$16 sps:$4 sm:$0xff]   ;;  %v4601_v25 = vld [vmem:[#allocation8 + $0x1a8] ss:$16 sps:$4 sm:$0xff]  }
 0x122   :  { %v283_v30 = vmax.f32 %v275_v27, 0.0  ;;  %v236_v31 = vadd.f32 %v235_v28, %v142_v22  ;;  %v277_v32 = vadd.f32 %v276_v29, %v150_v23  ;;  %v281_v33 = vmax.f32 %v234_v26, 0.0  ;;  %v4598_v22 = vld [vmem:[#allocation8 + $0x3c8] ss:$16 sps:$4 sm:$0xff]   ;;  %v4603_v23 = vld [vmem:[#allocation8 + $0x1ac] ss:$16 sps:$4 sm:$0xff]  }
 0x123   :  { %v237_v34 = vpop.f32.mrf.mxu0  ;;  %v278_v35 = vpop.f32.mrf.mxu1  ;;  %v4604_v26 = vld [vmem:[#allocation8 + $0x3a8] ss:$16 sps:$4 sm:$0xff]   ;;  %v4609_v27 = vld [vmem:[#allocation8 + $0x18c] ss:$16 sps:$4 sm:$0xff]  }
 0x124   :  { %v282_v36 = vmax.f32 %v236_v31, 0.0  ;;  %v284_v37 = vmax.f32 %v277_v32, 0.0  ;;  %v4975_v38 = vpack.c.bf16 %v283_v30, %v283_v30  ;;  %v4977_v45 = vpack.c.bf16 %v281_v33, %v281_v33  ;;  %v4612_v28 = vld [vmem:[#allocation8 + $0x38c] ss:$16 sps:$4 sm:$0xff]   ;;  %v4607_v29 = vld [vmem:[#allocation8 + $0x188] ss:$16 sps:$4 sm:$0xff]  }
 0x125   :  { %v238_v39 = vpop.f32.mrf.mxu0  ;;  %v279_v40 = vpop.f32.mrf.mxu1  ;;  %v4610_v30 = vld [vmem:[#allocation8 + $0x388] ss:$16 sps:$4 sm:$0xff]   ;;  %v4615_v31 = vld [vmem:[#allocation8 + $0x16c] ss:$16 sps:$4 sm:$0xff]  }
 0x126   :  { %v286_v41 = vpack.c.bf16 %v282_v36, %v282_v36  ;;  %v288_v42 = vpack.c.bf16 %v284_v37, %v284_v37  ;;  %v4618_v32 = vld [vmem:[#allocation8 + $0x36c] ss:$16 sps:$4 sm:$0xff]   ;;  %v4613_v33 = vld [vmem:[#allocation8 + $0x168] ss:$16 sps:$4 sm:$0xff]  }
 0x127   :  { %v4616_v34 = vld [vmem:[#allocation8 + $0x368] ss:$16 sps:$4 sm:$0xff]   ;;  %v4621_v35 = vld [vmem:[#allocation8 + $0x14c] ss:$16 sps:$4 sm:$0xff]  }
 0x128   :  { %1111 = vmatprep.mubr.bf16.mxu0 %v286_v41  ;;  %1152 = vmatprep.mubr.bf16.mxu1 %v288_v42  ;;  %v4624_v36 = vld [vmem:[#allocation8 + $0x34c] ss:$16 sps:$4 sm:$0xff]   ;;  %v4619_v37 = vld [vmem:[#allocation8 + $0x148] ss:$16 sps:$4 sm:$0xff]  }
 0x129   :  { %1112 = vmatmul.mubr.bf16.vlgmr.msra.gmra.mxu0 %v4977_v45  ;;  %1153 = vmatmul.mubr.bf16.vlgmr.msra.gmra.mxu1 %v4975_v38  ;;  %v4622_v39 = vld [vmem:[#allocation8 + $0x348] ss:$16 sps:$4 sm:$0xff]   ;;  %v4627_v40 = vld [vmem:[#allocation8 + $0x12c] ss:$16 sps:$4 sm:$0xff]  }
 0x12a   :  { %1162 = vmatpush1.bf16.msra.mxu0 %v4541_v43  ;;  %1203 = vmatpush1.bf16.msra.mxu1 %v4544_v44  ;;  %v4628_v43 = vld [vmem:[#allocation8 + $0x328] ss:$16 sps:$4 sm:$0xff]   ;;  %v4633_v44 = vld [vmem:[#allocation8 + $0x10c] ss:$16 sps:$4 sm:$0xff]  }
 0x12b   :  { %1193 = vmatprep.mubr.bf16.mxu0 %v286_v41  ;;  %1234 = vmatprep.mubr.bf16.mxu1 %v288_v42  ;;  %v4630_v41 = vld [vmem:[#allocation8 + $0x32c] ss:$16 sps:$4 sm:$0xff]   ;;  %v4625_v42 = vld [vmem:[#allocation8 + $0x128] ss:$16 sps:$4 sm:$0xff]  }
 0x12c   :  { %1163 = vmatprep.subr.bf16.mxu0 %v4549_v46  ;;  %1204 = vmatprep.subr.bf16.mxu1 %v4552_v47  ;;  %v4636_v46 = vld [vmem:[#allocation8 + $0x30c] ss:$16 sps:$4 sm:$0xff]   ;;  %v1307_v47 = vld [vmem:[#allocation11 + $0x1c0] sm:$0xff] }
 0x12e   :  { %1164 = vmatpush1.bf16.msra.mxu0 %v4547_v48  ;;  %1205 = vmatpush1.bf16.msra.mxu1 %v4550_v49  ;;  %v1311_v48 = vld [vmem:[#allocation11 + $0x1e0] sm:$0xff] }
 0x12f   :  { %1165 = vmatprep.subr.bf16.mxu0 %v4555_v50  ;;  %1206 = vmatprep.subr.bf16.mxu1 %v4558_v51  ;;  %v4631_v49 = vld [vmem:[#allocation8 + $0x108] ss:$16 sps:$4 sm:$0xff]   ;;  %v4066_v51 = vcombine.high %v1307_v47, %v1311_v48 }
 0x130   :  { %v4634_v50 = vld [vmem:[#allocation8 + $0x308] ss:$16 sps:$4 sm:$0xff]  }
 0x132   :  { %1166 = vmatpush1.bf16.msra.mxu0 %v4553_v52  ;;  %1207 = vmatpush1.bf16.msra.mxu1 %v4556_v53  ;;  %v1299_v52 = vld [vmem:[#allocation11 + $0x180] sm:$0xff] }
 0x133   :  { %1167 = vmatprep.subr.bf16.mxu0 %v4561_v54  ;;  %1208 = vmatprep.subr.bf16.mxu1 %v4564_v55  ;;  %v1303_v53 = vld [vmem:[#allocation11 + $0x1a0] sm:$0xff]  ;;  %v4065_v54 = vcombine.low %v1307_v47, %v1311_v48 }
 0x134   :  { %v4058_v55 = vcombine.high %v1299_v52, %v1303_v53  ;;  %v1363_v48 = vld [vmem:[#allocation11 + $0x380] sm:$0xff] }
 0x136   :  { %1168 = vmatpush1.bf16.msra.mxu0 %v4559_v56  ;;  %1209 = vmatpush1.bf16.msra.mxu1 %v4562_v57  ;;  %v1291_v56 = vld [vmem:[#allocation11 + $0x140] sm:$0xff] }
 0x137   :  { %1169 = vmatprep.subr.bf16.mxu0 %v4567_v58  ;;  %1210 = vmatprep.subr.bf16.mxu1 %v4570_v59  ;;  %v1295_v57 = vld [vmem:[#allocation11 + $0x160] sm:$0xff]  ;;  %v4057_v58 = vcombine.low %v1299_v52, %v1303_v53 }
 0x138   :  { %v4050_v59 = vcombine.high %v1291_v56, %v1295_v57 }
 0x13a   :  { %1170 = vmatpush1.bf16.msra.mxu0 %v4565_v60  ;;  %1211 = vmatpush1.bf16.msra.mxu1 %v4568_v61  ;;  %v1283_v60 = vld [vmem:[#allocation11 + $0x100] sm:$0xff] }
 0x13b   :  { %1171 = vmatprep.subr.bf16.mxu0 %v4573_v62  ;;  %1212 = vmatprep.subr.bf16.mxu1 %v4576_v63  ;;  %v1287_v61 = vld [vmem:[#allocation11 + $0x120] sm:$0xff]  ;;  %v4049_v62 = vcombine.low %v1291_v56, %v1295_v57 }
 0x13c   :  { %v4042_v63 = vcombine.high %v1283_v60, %v1287_v61  ;;  %v1355_v56 = vld [vmem:[#allocation11 + $0x340] sm:$0xff] }
 0x13d   :  { %v1359_v57 = vld [vmem:[#allocation11 + $0x360] sm:$0xff] }
 0x13e   :  { %1172 = vmatpush1.bf16.msra.mxu0 %v4571_v0  ;;  %1213 = vmatpush1.bf16.msra.mxu1 %v4574_v1  ;;  %v1275_v0 = vld [vmem:[#allocation11 + $0xc0] sm:$0xff] }
 0x13f   :  { %1173 = vmatprep.subr.bf16.mxu0 %v4579_v2  ;;  %1214 = vmatprep.subr.bf16.mxu1 %v4582_v3  ;;  %v1279_v1 = vld [vmem:[#allocation11 + $0xe0] sm:$0xff] }
 0x140   :  { %v1435_v2 = vld [vmem:[#allocation11 + $0x5c0] sm:$0xff] }
 0x141   :  { %v1439_v3 = vld [vmem:[#allocation11 + $0x5e0] sm:$0xff] }
 0x142   :  { %1174 = vmatpush1.bf16.msra.mxu0 %v4577_v4  ;;  %1215 = vmatpush1.bf16.msra.mxu1 %v4580_v5  ;;  %v4041_v4 = vcombine.low %v1283_v60, %v1287_v61  ;;  %v4193_v5 = vcombine.low %v1435_v2, %v1439_v3 }
 0x143   :  { %1175 = vmatprep.subr.bf16.mxu0 %v4585_v6  ;;  %1216 = vmatprep.subr.bf16.mxu1 %v4588_v7  ;;  %v4983_v6 = vld [vmem:[#allocation11 + $0x1c8] sm:$0xff]  ;;  %v4034_v7 = vcombine.high %v1275_v0, %v1279_v1 }
 0x146   :  { %1176 = vmatpush1.bf16.msra.mxu0 %v4583_v8  ;;  %1217 = vmatpush1.bf16.msra.mxu1 %v4586_v9  ;;  %v1267_v8 = vld [vmem:[#allocation11 + $0x80] sm:$0xff] }
 0x147   :  { %1177 = vmatprep.subr.bf16.mxu0 %v4591_v10  ;;  %1218 = vmatprep.subr.bf16.mxu1 %v4594_v11  ;;  %v1271_v9 = vld [vmem:[#allocation11 + $0xa0] sm:$0xff] }
 0x148   :  { %v1427_v11 = vld [vmem:[#allocation11 + $0x580] sm:$0xff] }
 0x14a   :  { %1178 = vmatpush2.bf16.msra.mxu0 %v4589_v12  ;;  %1219 = vmatpush2.bf16.msra.mxu1 %v4592_v13  ;;  %v1431_v12 = vld [vmem:[#allocation11 + $0x5a0] sm:$0xff]  ;;  %v4033_v13 = vcombine.low %v1275_v0, %v1279_v1 }
 0x14b   :  { %1179 = vmatprep.subr.bf16.mxu0 %v4597_v17  ;;  %1220 = vmatprep.subr.bf16.mxu1 %v4600_v20  ;;  %v4185_v17 = vcombine.low %v1427_v11, %v1431_v12  ;;  %v4186_v20 = vcombine.high %v1427_v11, %v1431_v12  ;;  %v1347_v0 = vld [vmem:[#allocation11 + $0x300] sm:$0xff] }
 0x14c   :  { %v1351_v1 = vld [vmem:[#allocation11 + $0x320] sm:$0xff] }
 0x14d   :  { %v1499_v11 = vld [vmem:[#allocation11 + $0x7c0] sm:$0xff] }
 0x14e   :  { %1180 = vmatpush2.bf16.msra.mxu0 %v4595_v21  ;;  %1221 = vmatpush2.bf16.msra.mxu1 %v4598_v22  ;;  %v4026_v21 = vcombine.high %v1267_v8, %v1271_v9  ;;  %v1259_v22 = vld [vmem:[#allocation11 + $0x40] sm:$0xff] }
 0x14f   :  { %1181 = vmatprep.subr.bf16.mxu0 %v4603_v23  ;;  %1222 = vmatprep.subr.bf16.mxu1 %v4606_v24  ;;  %v1263_v23 = vld [vmem:[#allocation11 + $0x60] sm:$0xff] }
 0x150   :  { %v1419_v24 = vld [vmem:[#allocation11 + $0x540] sm:$0xff] }
 0x151   :  { %v1503_v12 = vld [vmem:[#allocation11 + $0x7e0] sm:$0xff] }
 0x152   :  { %1182 = vmatpush2.bf16.msra.mxu0 %v4601_v25  ;;  %1223 = vmatpush2.bf16.msra.mxu1 %v4604_v26  ;;  %v1423_v25 = vld [vmem:[#allocation11 + $0x560] sm:$0xff]  ;;  %v4025_v26 = vcombine.low %v1267_v8, %v1271_v9 }
 0x153   :  { %1183 = vmatprep.subr.bf16.mxu0 %v4609_v27  ;;  %1224 = vmatprep.subr.bf16.mxu1 %v4612_v28  ;;  %v4177_v27 = vcombine.low %v1419_v24, %v1423_v25  ;;  %v4178_v28 = vcombine.high %v1419_v24, %v1423_v25  ;;  %v1339_v8 = vld [vmem:[#allocation11 + $0x2c0] sm:$0xff] }
 0x154   :  { %v1343_v9 = vld [vmem:[#allocation11 + $0x2e0] sm:$0xff] }
 0x155   :  { %v1491_v24 = vld [vmem:[#allocation11 + $0x780] sm:$0xff] }
 0x156   :  { %1184 = vmatpush2.bf16.msra.mxu0 %v4607_v29  ;;  %1225 = vmatpush2.bf16.msra.mxu1 %v4610_v30  ;;  %v4018_v29 = vcombine.high %v1259_v22, %v1263_v23  ;;  %v1251_v30 = vld [vmem:[#allocation11] sm:$0xff] }
 0x157   :  { %1185 = vmatprep.subr.bf16.mxu0 %v4615_v31  ;;  %1226 = vmatprep.subr.bf16.mxu1 %v4618_v32  ;;  %v1255_v31 = vld [vmem:[#allocation11 + $0x20] sm:$0xff] }
 0x158   :  { %v1411_v32 = vld [vmem:[#allocation11 + $0x500] sm:$0xff] }
 0x159   :  { %v1495_v25 = vld [vmem:[#allocation11 + $0x7a0] sm:$0xff] }
 0x15a   :  { %1186 = vmatpush2.bf16.msra.mxu0 %v4613_v33  ;;  %1227 = vmatpush2.bf16.msra.mxu1 %v4616_v34  ;;  %v1415_v33 = vld [vmem:[#allocation11 + $0x520] sm:$0xff]  ;;  %v4017_v34 = vcombine.low %v1259_v22, %v1263_v23 }
 0x15b   :  { %1187 = vmatprep.subr.bf16.mxu0 %v4621_v35  ;;  %1228 = vmatprep.subr.bf16.mxu1 %v4624_v36  ;;  %v4169_v35 = vcombine.low %v1411_v32, %v1415_v33  ;;  %v4170_v36 = vcombine.high %v1411_v32, %v1415_v33  ;;  %v1331_v22 = vld [vmem:[#allocation11 + $0x280] sm:$0xff] }
 0x15c   :  { %v1335_v23 = vld [vmem:[#allocation11 + $0x2a0] sm:$0xff] }
 0x15d   :  { %v1483_v32 = vld [vmem:[#allocation11 + $0x740] sm:$0xff] }
 0x15e   :  { %1188 = vmatpush2.bf16.msra.mxu0 %v4619_v37  ;;  %1229 = vmatpush2.bf16.msra.mxu1 %v4622_v39  ;;  %v4010_v37 = vcombine.high %v1251_v30, %v1255_v31  ;;  %v1371_v39 = vld [vmem:[#allocation11 + $0x3c0] sm:$0xff] }
 0x15f   :  { %1189 = vmatprep.subr.bf16.mxu0 %v4627_v40  ;;  %1230 = vmatprep.subr.bf16.mxu1 %v4630_v41  ;;  %v1375_v40 = vld [vmem:[#allocation11 + $0x3e0] sm:$0xff] }
 0x160   :  { %v1403_v41 = vld [vmem:[#allocation11 + $0x4c0] sm:$0xff]  ;;  %v4130_v47 = vcombine.high %v1371_v39, %v1375_v40  ;;  %v4129_v52 = vcombine.low %v1371_v39, %v1375_v40 }
 0x161   :  { %v1487_v33 = vld [vmem:[#allocation11 + $0x760] sm:$0xff] }
 0x162   :  { %1190 = vmatpush2.bf16.msra.mxu0 %v4625_v42  ;;  %1231 = vmatpush2.bf16.msra.mxu1 %v4628_v43  ;;  %v1407_v42 = vld [vmem:[#allocation11 + $0x4e0] sm:$0xff]  ;;  %v4009_v43 = vcombine.low %v1251_v30, %v1255_v31 }
 0x163   :  { %1191 = vmatprep.subr.bf16.mxu0 %v4633_v44  ;;  %1232 = vmatprep.subr.bf16.mxu1 %v4636_v46  ;;  %v4161_v44 = vcombine.low %v1403_v41, %v1407_v42  ;;  %v4162_v46 = vcombine.high %v1403_v41, %v1407_v42  ;;  %v1323_v30 = vld [vmem:[#allocation11 + $0x240] sm:$0xff] }
 0x164   :  { %v1327_v31 = vld [vmem:[#allocation11 + $0x260] sm:$0xff] }
 0x165   :  { %v1315_v39 = vld [vmem:[#allocation11 + $0x200] sm:$0xff] }
 0x166   :  { %1192 = vmatpush2.bf16.msra.mxu0 %v4631_v49  ;;  %1233 = vmatpush2.bf16.msra.mxu1 %v4634_v50  ;;  %v1367_v49 = vld [vmem:[#allocation11 + $0x3a0] sm:$0xff] }
 0x167   :  { %2829 = vmatprep.subr.bf16.mxu0 %v4066_v51  ;;  %v1395_v50 = vld [vmem:[#allocation11 + $0x480] sm:$0xff]  ;;  %v4121_v60 = vcombine.low %v1363_v48, %v1367_v49 }
 0x168   :  { %v1399_v51 = vld [vmem:[#allocation11 + $0x4a0] sm:$0xff] }
 0x169   :  { %1194 = vmatmul.mubr.bf16.vlgmr.msra.gmra.mxu0 %v4977_v45  ;;  %1235 = vmatmul.mubr.bf16.vlgmr.msra.gmra.mxu1 %v4975_v38  ;;  %v4194_v45 = vcombine.high %v1435_v2, %v1439_v3  ;;  %v4985_v38 = vld [vmem:[#allocation11 + $0x1e8] sm:$0xff]  ;;  %v4153_v53 = vcombine.low %v1395_v50, %v1399_v51  ;;  %v1379_v2 = vld [vmem:[#allocation11 + $0x400] sm:$0xff] }
 0x16a   :  { %2830 = vmatpush1.bf16.msra.mxu0 %v4065_v54  ;;  %v4067_v10 = vcombine.low %v4983_v6, %v4985_v38  ;;  %v4154_v54 = vcombine.high %v1395_v50, %v1399_v51  ;;  %v1383_v3 = vld [vmem:[#allocation11 + $0x420] sm:$0xff] }
 0x16b   :  { %2831 = vmatprep.subr.bf16.mxu0 %v4058_v55  ;;  %2870 = vmatprep.subr.bf16.mxu1 %v4194_v45  ;;  %v4122_v55 = vcombine.high %v1363_v48, %v1367_v49  ;;  %v4138_v45 = vcombine.high %v1379_v2, %v1383_v3  ;;  %v1319_v40 = vld [vmem:[#allocation11 + $0x220] sm:$0xff] }
 0x16c   :  { %2871 = vmatpush1.bf16.msra.mxu1 %v4193_v5  ;;  %v4137_v5 = vcombine.low %v1379_v2, %v1383_v3  ;;  %v1475_v41 = vld [vmem:[#allocation11 + $0x700] sm:$0xff]  ;;  %v4073_v50 = vcombine.low %v1315_v39, %v1319_v40  ;;  %v4991_v2 = vld [vmem:[#allocation11 + $0x5c8] sm:$0xff] }
 0x16d   :  { %2872 = vmatprep.subr.bf16.mxu1 %v4186_v20  ;;  %v4258_v20 = vcombine.high %v1499_v11, %v1503_v12  ;;  %v1479_v42 = vld [vmem:[#allocation11 + $0x720] sm:$0xff]  ;;  %v4993_v3 = vld [vmem:[#allocation11 + $0x5e8] sm:$0xff] }
 0x16e   :  { %2832 = vmatpush1.bf16.msra.mxu0 %v4057_v58  ;;  %v1387_v58 = vld [vmem:[#allocation11 + $0x440] sm:$0xff] }
 0x16f   :  { %2833 = vmatprep.subr.bf16.mxu0 %v4050_v59  ;;  %v1391_v59 = vld [vmem:[#allocation11 + $0x460] sm:$0xff] }
 0x170   :  { %2873 = vmatpush1.bf16.msra.mxu1 %v4185_v17  ;;  %v4145_v61 = vcombine.low %v1387_v58, %v1391_v59  ;;  %v4257_v17 = vcombine.low %v1499_v11, %v1503_v12  ;;  %v1467_v48 = vld [vmem:[#allocation11 + $0x6c0] sm:$0xff] }
 0x171   :  { %2874 = vmatprep.subr.bf16.mxu1 %v4178_v28  ;;  %v4250_v28 = vcombine.high %v1491_v24, %v1495_v25  ;;  %v1471_v49 = vld [vmem:[#allocation11 + $0x6e0] sm:$0xff] }
 0x172   :  { %2834 = vmatpush1.bf16.msra.mxu0 %v4049_v62  ;;  %v4146_v62 = vcombine.high %v1387_v58, %v1391_v59  ;;  %v4225_v51 = vcombine.low %v1467_v48, %v1471_v49  ;;  %v1451_v58 = vld [vmem:[#allocation11 + $0x640] sm:$0xff] }
 0x173   :  { %2835 = vmatprep.subr.bf16.mxu0 %v4042_v63  ;;  %v4114_v63 = vcombine.high %v1355_v56, %v1359_v57  ;;  %v1455_v59 = vld [vmem:[#allocation11 + $0x660] sm:$0xff] }
 0x174   :  { %2875 = vmatpush1.bf16.msra.mxu1 %v4177_v27  ;;  %v4249_v27 = vcombine.low %v1491_v24, %v1495_v25 }
 0x175   :  { %2876 = vmatprep.subr.bf16.mxu1 %v4170_v36  ;;  %v4242_v36 = vcombine.high %v1483_v32, %v1487_v33 }
 0x176   :  { %2836 = vmatpush1.bf16.msra.mxu0 %v4041_v4  ;;  %v4113_v4 = vcombine.low %v1355_v56, %v1359_v57 }
 0x177   :  { %2837 = vmatprep.subr.bf16.mxu0 %v4034_v7  ;;  %v4106_v7 = vcombine.high %v1347_v0, %v1351_v1 }
 0x178   :  { %2877 = vmatpush1.bf16.msra.mxu1 %v4169_v35  ;;  %v4241_v35 = vcombine.low %v1483_v32, %v1487_v33 }
 0x179   :  { %2878 = vmatprep.subr.bf16.mxu1 %v4162_v46  ;;  %v4234_v46 = vcombine.high %v1475_v41, %v1479_v42 }
 0x17a   :  { %2838 = vmatpush1.bf16.msra.mxu0 %v4033_v13  ;;  %v4105_v13 = vcombine.low %v1347_v0, %v1351_v1 }
 0x17b   :  { %2839 = vmatprep.subr.bf16.mxu0 %v4026_v21  ;;  %v4098_v21 = vcombine.high %v1339_v8, %v1343_v9 }
 0x17c   :  { %2879 = vmatpush1.bf16.msra.mxu1 %v4161_v44  ;;  %v4233_v44 = vcombine.low %v1475_v41, %v1479_v42 }
 0x17d   :  { %2880 = vmatprep.subr.bf16.mxu1 %v4154_v54  ;;  %v1459_v54 = vld [vmem:[#allocation11 + $0x680] sm:$0xff] }
 0x17e   :  { %2840 = vmatpush1.bf16.msra.mxu0 %v4025_v26  ;;  %v4097_v26 = vcombine.low %v1339_v8, %v1343_v9 }
 0x17f   :  { %2841 = vmatprep.subr.bf16.mxu0 %v4018_v29  ;;  %v4090_v29 = vcombine.high %v1331_v22, %v1335_v23 }
 0x180   :  { %2881 = vmatpush1.bf16.msra.mxu1 %v4153_v53  ;;  %v4068_v53 = vcombine.high %v4983_v6, %v4985_v38  ;;  %v1272_v6 = vld [vmem:[#allocation11 + $0xa8] sm:$0xff] }
 0x181   :  { %2882 = vmatprep.subr.bf16.mxu1 %v4146_v62  ;;  %v1443_v62 = vld [vmem:[#allocation11 + $0x600] sm:$0xff] }
 0x182   :  { %2842 = vmatpush1.bf16.msra.mxu0 %v4017_v34  ;;  %v4089_v34 = vcombine.low %v1331_v22, %v1335_v23 }
 0x183   :  { %2843 = vmatprep.subr.bf16.mxu0 %v4010_v37  ;;  %v4082_v37 = vcombine.high %v1323_v30, %v1327_v31 }
 0x184   :  { %2883 = vmatpush1.bf16.msra.mxu1 %v4145_v61  ;;  %v4209_v61 = vcombine.low %v1451_v58, %v1455_v59 }
 0x185   :  { %2884 = vmatprep.subr.bf16.mxu1 %v4138_v45  ;;  %v4999_v45 = vld [vmem:[#allocation10] sm:$0xf] }
 0x186   :  { %2844 = vmatpush1.bf16.msra.mxu0 %v4009_v43  ;;  %v4081_v43 = vcombine.low %v1323_v30, %v1327_v31  ;;  %v426_v8 = vrot.slane %v4999_v45, %v4966_v18  ;;  %v1304_v30 = vld [vmem:[#allocation11 + $0x1a8] sm:$0xff] }
 0x187   :  { %2845 = vmatprep.subr.bf16.mxu0 %v4130_v47  ;;  %v4074_v47 = vcombine.high %v1315_v39, %v1319_v40  ;;  %v1284_v39 = vld [vmem:[#allocation11 + $0x108] sm:$0xff] }
 0x188   :  { %2885 = vmatpush1.bf16.msra.mxu1 %v4137_v5  ;;  %v4195_v5 = vcombine.low %v4991_v2, %v4993_v3  ;;  %v1288_v40 = vld [vmem:[#allocation11 + $0x128] sm:$0xff] }
 0x189   :  { %2886 = vmatprep.subr.bf16.mxu1 %v4258_v20  ;;  %v4044_v42 = vcombine.high %v1284_v39, %v1288_v40 }
 0x18a   :  { %2846 = vmatpush2.bf16.msra.mxu0 %v4129_v52  ;;  %v4226_v52 = vcombine.high %v1467_v48, %v1471_v49  ;;  %v1268_v48 = vld [vmem:[#allocation11 + $0x88] sm:$0xff] }
 0x18b   :  { %2847 = vmatprep.subr.bf16.mxu0 %v4122_v55  ;;  %v1463_v55 = vld [vmem:[#allocation11 + $0x6a0] sm:$0xff]  ;;  %v1260_v49 = vld [vmem:[#allocation11 + $0x48] sm:$0xff] }
 0x18c   :  { %2887 = vmatpush2.bf16.msra.mxu1 %v4257_v17  ;;  %v4217_v56 = vcombine.low %v1459_v54, %v1463_v55  ;;  %v4218_v57 = vcombine.high %v1459_v54, %v1463_v55  ;;  %v1256_v54 = vld [vmem:[#allocation11 + $0x28] sm:$0xff] }
 0x18d   :  { %2888 = vmatprep.subr.bf16.mxu1 %v4250_v28 }
 0x18e   :  { %2848 = vmatpush2.bf16.msra.mxu0 %v4121_v60  ;;  %v4210_v60 = vcombine.high %v1451_v58, %v1455_v59  ;;  %v1376_v58 = vld [vmem:[#allocation11 + $0x3e8] sm:$0xff] }
 0x18f   :  { %2849 = vmatprep.subr.bf16.mxu0 %v4114_v63  ;;  %v1447_v63 = vld [vmem:[#allocation11 + $0x620] sm:$0xff] }
 0x190   :  { %2889 = vmatpush2.bf16.msra.mxu1 %v4249_v27  ;;  %v4202_v0 = vcombine.high %v1443_v62, %v1447_v63  ;;  %v4201_v1 = vcombine.low %v1443_v62, %v1447_v63  ;;  %v1368_v62 = vld [vmem:[#allocation11 + $0x3a8] sm:$0xff] }
 0x191   :  { %2890 = vmatprep.subr.bf16.mxu1 %v4242_v36 }
 0x192   :  { %2850 = vmatpush2.bf16.msra.mxu0 %v4113_v4  ;;  %v4196_v4 = vcombine.high %v4991_v2, %v4993_v3 }
 0x193   :  { %2851 = vmatprep.subr.bf16.mxu0 %v4106_v7  ;;  %v422_v7 = vrot.slane %v4999_v45, %v4960_v15 }
 0x194   :  { %2891 = vmatpush2.bf16.msra.mxu1 %v4241_v35  ;;  %v1296_v35 = vld [vmem:[#allocation11 + $0x168] sm:$0xff] }
 0x195   :  { %2892 = vmatprep.subr.bf16.mxu1 %v4234_v46  ;;  %v4043_v46 = vcombine.low %v1284_v39, %v1288_v40 }
 0x196   :  { %2852 = vmatpush2.bf16.msra.mxu0 %v4105_v13 }
 0x197   :  { %2853 = vmatprep.subr.bf16.mxu0 %v4098_v21 }
 0x198   :  { %2893 = vmatpush2.bf16.msra.mxu1 %v4233_v44  ;;  %v1280_v44 = vld [vmem:[#allocation11 + $0xe8] sm:$0xff] }
 0x199   :  { %2894 = vmatprep.subr.bf16.mxu1 %v4226_v52 }
 0x19a   :  { %2854 = vmatpush2.bf16.msra.mxu0 %v4097_v26 }
 0x19b   :  { %2855 = vmatprep.subr.bf16.mxu0 %v4090_v29  ;;  %v1300_v29 = vld [vmem:[#allocation11 + $0x188] sm:$0xff] }
 0x19c   :  { %2895 = vmatpush2.bf16.msra.mxu1 %v4225_v51  ;;  %v4060_v33 = vcombine.high %v1300_v29, %v1304_v30  ;;  %v4059_v36 = vcombine.low %v1300_v29, %v1304_v30  ;;  %v4027_v51 = vcombine.low %v1268_v48, %v1272_v6  ;;  %v430_v29 = vrot.slane %v4999_v45, %v4963_v16 }
 0x19d   :  { %2896 = vmatprep.subr.bf16.mxu1 %v4218_v57  ;;  %v1372_v57 = vld [vmem:[#allocation11 + $0x3c8] sm:$0xff] }
 0x19e   :  { %2856 = vmatpush2.bf16.msra.mxu0 %v4089_v34  ;;  %v1292_v34 = vld [vmem:[#allocation11 + $0x148] sm:$0xff]  ;;  %v4131_v63 = vcombine.low %v1372_v57, %v1376_v58 }
 0x19f   :  { %2857 = vmatprep.subr.bf16.mxu0 %v4082_v37  ;;  %v4052_v37 = vcombine.high %v1292_v34, %v1296_v35  ;;  %v4051_v41 = vcombine.low %v1292_v34, %v1296_v35  ;;  %v434_v34 = vrot.slane %v4999_v45, %v4969_v19  ;;  %v1316_v35 = vld [vmem:[#allocation11 + $0x208] sm:$0xff] }
 0x1a0   :  { %2897 = vmatpush2.bf16.msra.mxu1 %v4217_v56 }
 0x1a1   :  { %2898 = vmatprep.subr.bf16.mxu1 %v4210_v60  ;;  %v4132_v60 = vcombine.high %v1372_v57, %v1376_v58  ;;  %v1301_v57 = vld [vmem:[#allocation11 + $0x190] sm:$0xff] }
 0x1a2   :  { %2858 = vmatpush2.bf16.msra.mxu0 %v4081_v43  ;;  %v1276_v43 = vld [vmem:[#allocation11 + $0xc8] sm:$0xff]  ;;  %v1305_v58 = vld [vmem:[#allocation11 + $0x1b0] sm:$0xff] }
 0x1a3   :  { %2859 = vmatprep.subr.bf16.mxu0 %v4074_v47  ;;  %v4036_v47 = vcombine.high %v1276_v43, %v1280_v44  ;;  %v4035_v38 = vcombine.low %v1276_v43, %v1280_v44 }
 0x1a4   :  { %2899 = vmatpush2.bf16.msra.mxu1 %v4209_v61  ;;  %v1364_v61 = vld [vmem:[#allocation11 + $0x388] sm:$0xff] }
 0x1a5   :  { %2900 = vmatprep.subr.bf16.mxu1 %v4202_v0  ;;  %v4124_v0 = vcombine.high %v1364_v61, %v1368_v62 }
 0x1a6   :  { %2860 = vmatpush2.bf16.msra.mxu0 %v4073_v50  ;;  %v1264_v50 = vld [vmem:[#allocation11 + $0x68] sm:$0xff] }
 0x1a7   :  { %2911 = vmatprep.subr.bf16.mxu0 %v4068_v53  ;;  %v4020_v52 = vcombine.high %v1260_v49, %v1264_v50  ;;  %v1252_v53 = vld [vmem:[#allocation11 + $0x8] sm:$0xff]  ;;  %v4019_v55 = vcombine.low %v1260_v49, %v1264_v50 }
 0x1a8   :  { %2901 = vmatpush2.bf16.msra.mxu1 %v4201_v1  ;;  %v4012_v56 = vcombine.high %v1252_v53, %v1256_v54  ;;  %v4011_v59 = vcombine.low %v1252_v53, %v1256_v54  ;;  %v1356_v1 = vld [vmem:[#allocation11 + $0x348] sm:$0xff] }
 0x1a9   :  { %2952 = vmatprep.subr.bf16.mxu1 %v4196_v4  ;;  %v1360_v4 = vld [vmem:[#allocation11 + $0x368] sm:$0xff] }
 0x1e9   :  { %v1113_v9 = vpop.f32.mrf.mxu0  ;;  %v1154_v11 = vpop.f32.mrf.mxu1 }
 0x1ea   :  { %v1114_v12 = vadd.f32 %v1113_v9, %v422_v7  ;;  %v4123_v7 = vcombine.low %v1364_v61, %v1368_v62  ;;  %v1348_v9 = vld [vmem:[#allocation11 + $0x308] sm:$0xff] }
 0x1eb   :  { %v1115_v13 = vpop.f32.mrf.mxu0  ;;  %v1156_v17 = vpop.f32.mrf.mxu1 }
 0x1ec   :  { %v1155_v20 = vadd.f32 %v1154_v11, %v1114_v12  ;;  %v1116_v21 = vadd.f32 %v1115_v13, %v426_v8  ;;  %v4116_v8 = vcombine.high %v1356_v1, %v1360_v4  ;;  %v1352_v11 = vld [vmem:[#allocation11 + $0x328] sm:$0xff]  ;;  %v4115_v12 = vcombine.low %v1356_v1, %v1360_v4  ;;  %v1293_v4 = vld [vmem:[#allocation11 + $0x150] sm:$0xff] }
 0x1ed   :  { %v1117_v22 = vpop.f32.mrf.mxu0  ;;  %v1158_v23 = vpop.f32.mrf.mxu1  ;;  %v4108_v13 = vcombine.high %v1348_v9, %v1352_v11  ;;  %v1424_v1 = vld [vmem:[#allocation11 + $0x568] sm:$0xff] }
 0x1ee   :  { %v1157_v24 = vadd.f32 %v1156_v17, %v1116_v21  ;;  %v1243_v25 = vmax.f32 %v1155_v20, 0.0  ;;  %v1340_v17 = vld [vmem:[#allocation11 + $0x2c8] sm:$0xff]  ;;  %v4107_v21 = vcombine.low %v1348_v9, %v1352_v11  ;;  %v4061_v9 = vcombine.low %v1301_v57, %v1305_v58 }
 0x1ef   :  { %v1118_v26 = vpop.f32.mrf.mxu0  ;;  %v1159_v27 = vpop.f32.mrf.mxu1  ;;  %v1344_v20 = vld [vmem:[#allocation11 + $0x2e8] sm:$0xff] }
 0x1f0   :  { %v1244_v28 = vmax.f32 %v1157_v24, 0.0  ;;  %v5007_v32 = vpack.c.bf16 %v1243_v25, %v1243_v25  ;;  %v4100_v22 = vcombine.high %v1340_v17, %v1344_v20  ;;  %v1332_v23 = vld [vmem:[#allocation11 + $0x288] sm:$0xff]  ;;  %v4099_v25 = vcombine.low %v1340_v17, %v1344_v20  ;;  %v1285_v20 = vld [vmem:[#allocation11 + $0x110] sm:$0xff] }
 0x1f1   :  { %v1336_v24 = vld [vmem:[#allocation11 + $0x2a8] sm:$0xff] }
 0x1f2   :  { %v5005_v31 = vpack.c.bf16 %v1244_v28, %v1244_v28  ;;  %v4092_v26 = vcombine.high %v1332_v23, %v1336_v24  ;;  %v1324_v27 = vld [vmem:[#allocation11 + $0x248] sm:$0xff]  ;;  %v4091_v30 = vcombine.low %v1332_v23, %v1336_v24 }
 0x1f3   :  { %v1328_v28 = vld [vmem:[#allocation11 + $0x268] sm:$0xff] }
 0x1f4   :  { %2861 = vmatprep.mubr.bf16.mxu0 %v5005_v31  ;;  %v1416_v17 = vld [vmem:[#allocation11 + $0x528] sm:$0xff] }
 0x1f5   :  { %2862 = vmatmul.mubr.bf16.vlgmr.msra.gmra.mxu0 %v5007_v32  ;;  %v1404_v23 = vld [vmem:[#allocation11 + $0x4c8] sm:$0xff] }
 0x1f6   :  { %2912 = vmatpush1.bf16.msra.mxu0 %v4067_v10  ;;  %2943 = vmatprep.mubr.bf16.mxu0 %v5005_v31  ;;  %v4028_v10 = vcombine.high %v1268_v48, %v1272_v6  ;;  %v1309_v48 = vld [vmem:[#allocation11 + $0x1d0] sm:$0xff]  ;;  %v1408_v24 = vld [vmem:[#allocation11 + $0x4e8] sm:$0xff] }
 0x1f7   :  { %2913 = vmatprep.subr.bf16.mxu0 %v4060_v33  ;;  %v4084_v33 = vcombine.high %v1324_v27, %v1328_v28  ;;  %v1313_v6 = vld [vmem:[#allocation11 + $0x1f0] sm:$0xff] }
 0x1f8   :  { %v4070_v53 = vcombine.high %v1309_v48, %v1313_v6  ;;  %v4069_v61 = vcombine.low %v1309_v48, %v1313_v6 }
 0x1fa   :  { %2914 = vmatpush1.bf16.msra.mxu0 %v4059_v36  ;;  %v1320_v36 = vld [vmem:[#allocation11 + $0x228] sm:$0xff] }
 0x1fb   :  { %2915 = vmatprep.subr.bf16.mxu0 %v4052_v37  ;;  %v4076_v44 = vcombine.high %v1316_v35, %v1320_v36  ;;  %v4075_v45 = vcombine.low %v1316_v35, %v1320_v36  ;;  %v1269_v35 = vld [vmem:[#allocation11 + $0x90] sm:$0xff] }
 0x1fc   :  { %v1273_v36 = vld [vmem:[#allocation11 + $0xb0] sm:$0xff] }
 0x1fd   :  { %v4029_v48 = vcombine.low %v1269_v35, %v1273_v36 }
 0x1fe   :  { %2916 = vmatpush1.bf16.msra.mxu0 %v4051_v41  ;;  %v4083_v41 = vcombine.low %v1324_v27, %v1328_v28 }
 0x1ff   :  { %2917 = vmatprep.subr.bf16.mxu0 %v4044_v42 }
 0x202   :  { %2918 = vmatpush1.bf16.msra.mxu0 %v4043_v46 }
 0x203   :  { %2919 = vmatprep.subr.bf16.mxu0 %v4036_v47 }
 0x206   :  { %2920 = vmatpush1.bf16.msra.mxu0 %v4035_v38 }
 0x207   :  { %2921 = vmatprep.subr.bf16.mxu0 %v4028_v10 }
 0x20a   :  { %2922 = vmatpush1.bf16.msra.mxu0 %v4027_v51 }
 0x20b   :  { %2923 = vmatprep.subr.bf16.mxu0 %v4020_v52 }
 0x20e   :  { %2924 = vmatpush1.bf16.msra.mxu0 %v4019_v55  ;;  %v1428_v55 = vld [vmem:[#allocation11 + $0x588] sm:$0xff] }
 0x20f   :  { %2925 = vmatprep.subr.bf16.mxu0 %v4012_v56  ;;  %v1432_v56 = vld [vmem:[#allocation11 + $0x5a8] sm:$0xff] }
 0x210   :  { %v4188_v62 = vcombine.high %v1428_v55, %v1432_v56 }
 0x212   :  { %2926 = vmatpush1.bf16.msra.mxu0 %v4011_v59 }
 0x213   :  { %2927 = vmatprep.subr.bf16.mxu0 %v4132_v60 }
 0x216   :  { %2928 = vmatpush2.bf16.msra.mxu0 %v4131_v63  ;;  %v4062_v63 = vcombine.high %v1301_v57, %v1305_v58  ;;  %v1373_v57 = vld [vmem:[#allocation11 + $0x3d0] sm:$0xff] }
 0x217   :  { %2929 = vmatprep.subr.bf16.mxu0 %v4124_v0  ;;  %v1420_v0 = vld [vmem:[#allocation11 + $0x548] sm:$0xff]  ;;  %v1377_v58 = vld [vmem:[#allocation11 + $0x3f0] sm:$0xff] }
 0x218   :  { %v4180_v11 = vcombine.high %v1420_v0, %v1424_v1 }
 0x21a   :  { %2930 = vmatpush2.bf16.msra.mxu0 %v4123_v7  ;;  %v1297_v7 = vld [vmem:[#allocation11 + $0x170] sm:$0xff] }
 0x21b   :  { %2931 = vmatprep.subr.bf16.mxu0 %v4116_v8  ;;  %v4187_v8 = vcombine.low %v1428_v55, %v1432_v56  ;;  %v4053_v2 = vcombine.low %v1293_v4, %v1297_v7  ;;  %v1500_v55 = vld [vmem:[#allocation11 + $0x7c8] sm:$0xff] }
 0x21c   :  { %v1504_v56 = vld [vmem:[#allocation11 + $0x7e8] sm:$0xff] }
 0x21e   :  { %2932 = vmatpush2.bf16.msra.mxu0 %v4115_v12  ;;  %v4054_v12 = vcombine.high %v1293_v4, %v1297_v7  ;;  %v1496_v4 = vld [vmem:[#allocation11 + $0x7a8] sm:$0xff]  ;;  %v1365_v7 = vld [vmem:[#allocation11 + $0x390] sm:$0xff] }
 0x21f   :  { %2933 = vmatprep.subr.bf16.mxu0 %v4108_v13  ;;  %v1412_v13 = vld [vmem:[#allocation11 + $0x508] sm:$0xff] }
 0x220   :  { %v4172_v3 = vcombine.high %v1412_v13, %v1416_v17  ;;  %v4171_v27 = vcombine.low %v1412_v13, %v1416_v17  ;;  %v1484_v17 = vld [vmem:[#allocation11 + $0x748] sm:$0xff] }
 0x222   :  { %2934 = vmatpush2.bf16.msra.mxu0 %v4107_v21  ;;  %v1289_v21 = vld [vmem:[#allocation11 + $0x130] sm:$0xff] }
 0x223   :  { %2935 = vmatprep.subr.bf16.mxu0 %v4100_v22  ;;  %v4179_v22 = vcombine.low %v1420_v0, %v1424_v1  ;;  %v4045_v28 = vcombine.low %v1285_v20, %v1289_v21  ;;  %v4134_v0 = vcombine.high %v1373_v57, %v1377_v58  ;;  %v1492_v1 = vld [vmem:[#allocation11 + $0x788] sm:$0xff] }
 0x226   :  { %2936 = vmatpush2.bf16.msra.mxu0 %v4099_v25  ;;  %v1277_v25 = vld [vmem:[#allocation11 + $0xd0] sm:$0xff] }
 0x227   :  { %2937 = vmatprep.subr.bf16.mxu0 %v4092_v26  ;;  %v1281_v26 = vld [vmem:[#allocation11 + $0xf0] sm:$0xff] }
 0x229   :  { %v1195_v37 = vpop.f32.mrf.mxu0  ;;  %v1236_v39 = vpop.f32.mrf.mxu1 }
 0x22a   :  { %v1196_v40 = vadd.f32 %v1195_v37, %v430_v29  ;;  %2938 = vmatpush2.bf16.msra.mxu0 %v4091_v30  ;;  %v4164_v29 = vcombine.high %v1404_v23, %v1408_v24  ;;  %v4038_v30 = vcombine.high %v1277_v25, %v1281_v26  ;;  %v4163_v37 = vcombine.low %v1404_v23, %v1408_v24  ;;  %v1476_v24 = vld [vmem:[#allocation11 + $0x708] sm:$0xff] }
 0x22b   :  { %v1197_v42 = vpop.f32.mrf.mxu0  ;;  %v1238_v43 = vpop.f32.mrf.mxu1  ;;  %2939 = vmatprep.subr.bf16.mxu0 %v4084_v33  ;;  %v1396_v33 = vld [vmem:[#allocation11 + $0x488] sm:$0xff] }
 0x22c   :  { %v1237_v46 = vadd.f32 %v1236_v39, %v1196_v40  ;;  %v1198_v47 = vadd.f32 %v1197_v42, %v434_v34  ;;  %v1400_v34 = vld [vmem:[#allocation11 + $0x4a8] sm:$0xff]  ;;  %v4037_v39 = vcombine.low %v1277_v25, %v1281_v26  ;;  %v1349_v26 = vld [vmem:[#allocation11 + $0x310] sm:$0xff] }
 0x22d   :  { %v1199_v38 = vpop.f32.mrf.mxu0  ;;  %v1240_v10 = vpop.f32.mrf.mxu1  ;;  %v4156_v40 = vcombine.high %v1396_v33, %v1400_v34  ;;  %v1388_v42 = vld [vmem:[#allocation11 + $0x448] sm:$0xff] }
 0x22e   :  { %v1239_v49 = vadd.f32 %v1238_v43, %v1198_v47  ;;  %2940 = vmatpush2.bf16.msra.mxu0 %v4083_v41  ;;  %v1245_v50 = vmax.f32 %v1237_v46, 0.0  ;;  %v4030_v41 = vcombine.high %v1269_v35, %v1273_v36  ;;  %v1392_v43 = vld [vmem:[#allocation11 + $0x468] sm:$0xff]  ;;  %v1265_v46 = vld [vmem:[#allocation11 + $0x70] sm:$0xff]  ;;  %v4155_v47 = vcombine.low %v1396_v33, %v1400_v34 }
 0x22f   :  { %v1200_v51 = vpop.f32.mrf.mxu0  ;;  %v1241_v52 = vpop.f32.mrf.mxu1  ;;  %2941 = vmatprep.subr.bf16.mxu0 %v4076_v44  ;;  %v1261_v44 = vld [vmem:[#allocation11 + $0x50] sm:$0xff]  ;;  %v4148_v6 = vcombine.high %v1388_v42, %v1392_v43  ;;  %v1380_v10 = vld [vmem:[#allocation11 + $0x408] sm:$0xff] }
 0x230   :  { %v1246_v54 = vmax.f32 %v1239_v49, 0.0  ;;  %v5021_v60 = vpack.c.bf16 %v1245_v50, %v1245_v50  ;;  %v4022_v38 = vcombine.high %v1261_v44, %v1265_v46  ;;  %v1384_v49 = vld [vmem:[#allocation11 + $0x428] sm:$0xff]  ;;  %v1257_v50 = vld [vmem:[#allocation11 + $0x30] sm:$0xff]  ;;  %v4147_v51 = vcombine.low %v1388_v42, %v1392_v43 }
 0x231   :  { %v4021_v52 = vcombine.low %v1261_v44, %v1265_v46  ;;  %v1480_v25 = vld [vmem:[#allocation11 + $0x728] sm:$0xff]  ;;  %v1341_v36 = vld [vmem:[#allocation11 + $0x2d0] sm:$0xff] }
 0x232   :  { %v5019_v59 = vpack.c.bf16 %v1246_v54, %v1246_v54  ;;  %2942 = vmatpush2.bf16.msra.mxu0 %v4075_v45  ;;  %v1253_v45 = vld [vmem:[#allocation11 + $0x10] sm:$0xff]  ;;  %v1468_v34 = vld [vmem:[#allocation11 + $0x6c8] sm:$0xff] }
 0x233   :  { %2993 = vmatprep.subr.bf16.mxu0 %v4070_v53  ;;  %v4140_v53 = vcombine.high %v1380_v10, %v1384_v49  ;;  %v4014_v54 = vcombine.high %v1253_v45, %v1257_v50  ;;  %v1472_v35 = vld [vmem:[#allocation11 + $0x6e8] sm:$0xff]  ;;  %v1333_v46 = vld [vmem:[#allocation11 + $0x290] sm:$0xff] }
 0x234   :  { %2902 = vmatprep.mubr.bf16.mxu1 %v5019_v59  ;;  %v1460_v43 = vld [vmem:[#allocation11 + $0x688] sm:$0xff] }
 0x235   :  { %2903 = vmatmul.mubr.bf16.vlgmr.msra.gmra.mxu1 %v5021_v60  ;;  %2944 = vmatmul.mubr.bf16.vlgmr.msra.gmra.mxu0 %v5007_v32  ;;  %v1464_v44 = vld [vmem:[#allocation11 + $0x6a8] sm:$0xff] }
 0x236   :  { %2953 = vmatpush1.bf16.msra.mxu1 %v4195_v5  ;;  %2984 = vmatprep.mubr.bf16.mxu1 %v5019_v59  ;;  %v4046_v5 = vcombine.high %v1285_v20, %v1289_v21  ;;  %v1488_v20 = vld [vmem:[#allocation11 + $0x768] sm:$0xff]  ;;  %v1357_v21 = vld [vmem:[#allocation11 + $0x350] sm:$0xff] }
 0x237   :  { %2994 = vmatpush1.bf16.msra.mxu0 %v4069_v61  ;;  %3025 = vmatprep.mubr.bf16.mxu0 %v5005_v31  ;;  %v4139_v61 = vcombine.low %v1380_v10, %v1384_v49  ;;  %v1452_v49 = vld [vmem:[#allocation11 + $0x648] sm:$0xff] }
 0x238   :  { %2954 = vmatprep.subr.bf16.mxu1 %v4188_v62  ;;  %2995 = vmatprep.subr.bf16.mxu0 %v4062_v63  ;;  %v4013_v62 = vcombine.low %v1253_v45, %v1257_v50  ;;  %v4260_v63 = vcombine.high %v1500_v55, %v1504_v56  ;;  %v1456_v45 = vld [vmem:[#allocation11 + $0x668] sm:$0xff]  ;;  %v1325_v50 = vld [vmem:[#allocation11 + $0x250] sm:$0xff] }
 0x23a   :  { %2955 = vmatpush1.bf16.msra.mxu1 %v4187_v8  ;;  %v1369_v8 = vld [vmem:[#allocation11 + $0x3b0] sm:$0xff] }
 0x23b   :  { %2996 = vmatpush1.bf16.msra.mxu0 %v4061_v9  ;;  %2956 = vmatprep.subr.bf16.mxu1 %v4180_v11  ;;  %v4259_v9 = vcombine.low %v1500_v55, %v1504_v56  ;;  %v4133_v11 = vcombine.low %v1373_v57, %v1377_v58  ;;  %v4126_v13 = vcombine.high %v1365_v7, %v1369_v8  ;;  %v1444_v56 = vld [vmem:[#allocation11 + $0x608] sm:$0xff]  ;;  %v1317_v58 = vld [vmem:[#allocation11 + $0x210] sm:$0xff] }
 0x23c   :  { %2997 = vmatprep.subr.bf16.mxu0 %v4054_v12  ;;  %v4252_v12 = vcombine.high %v1492_v1, %v1496_v4  ;;  %v1448_v57 = vld [vmem:[#allocation11 + $0x628] sm:$0xff] }
 0x23e   :  { %2957 = vmatpush1.bf16.msra.mxu1 %v4179_v22  ;;  %v1361_v22 = vld [vmem:[#allocation11 + $0x370] sm:$0xff] }
 0x23f   :  { %2998 = vmatpush1.bf16.msra.mxu0 %v4053_v2  ;;  %2958 = vmatprep.subr.bf16.mxu1 %v4172_v3  ;;  %v4251_v2 = vcombine.low %v1492_v1, %v1496_v4  ;;  %v4125_v3 = vcombine.low %v1365_v7, %v1369_v8  ;;  %v4118_v23 = vcombine.high %v1357_v21, %v1361_v22  ;;  %v1437_v4 = vld [vmem:[#allocation11 + $0x5d0] sm:$0xff]  ;;  %v1310_v8 = vld [vmem:[#allocation11 + $0x1d8] sm:$0xff] }
 0x240   :  { %2999 = vmatprep.subr.bf16.mxu0 %v4046_v5  ;;  %v4244_v5 = vcombine.high %v1484_v17, %v1488_v20  ;;  %v1441_v7 = vld [vmem:[#allocation11 + $0x5f0] sm:$0xff] }
 0x242   :  { %2959 = vmatpush1.bf16.msra.mxu1 %v4171_v27  ;;  %v1353_v27 = vld [vmem:[#allocation11 + $0x330] sm:$0xff] }
 0x243   :  { %3000 = vmatpush1.bf16.msra.mxu0 %v4045_v28  ;;  %2960 = vmatprep.subr.bf16.mxu1 %v4164_v29  ;;  %v4243_v28 = vcombine.low %v1484_v17, %v1488_v20  ;;  %v4117_v29 = vcombine.low %v1357_v21, %v1361_v22  ;;  %v4110_v33 = vcombine.high %v1349_v26, %v1353_v27  ;;  %v1429_v20 = vld [vmem:[#allocation11 + $0x590] sm:$0xff] }
 0x244   :  { %3001 = vmatprep.subr.bf16.mxu0 %v4038_v30  ;;  %v4236_v30 = vcombine.high %v1476_v24, %v1480_v25  ;;  %v1433_v21 = vld [vmem:[#allocation11 + $0x5b0] sm:$0xff]  ;;  %v4197_v22 = vcombine.low %v1437_v4, %v1441_v7 }
 0x246   :  { %2961 = vmatpush1.bf16.msra.mxu1 %v4163_v37  ;;  %v1345_v37 = vld [vmem:[#allocation11 + $0x2f0] sm:$0xff] }
 0x247   :  { %3002 = vmatpush1.bf16.msra.mxu0 %v4037_v39  ;;  %2962 = vmatprep.subr.bf16.mxu1 %v4156_v40  ;;  %v4235_v39 = vcombine.low %v1476_v24, %v1480_v25  ;;  %v4109_v40 = vcombine.low %v1349_v26, %v1353_v27  ;;  %v4102_v42 = vcombine.high %v1341_v36, %v1345_v37  ;;  %v1421_v24 = vld [vmem:[#allocation11 + $0x550] sm:$0xff]  ;;  %v1294_v27 = vld [vmem:[#allocation11 + $0x158] sm:$0xff] }
 0x248   :  { %3003 = vmatprep.subr.bf16.mxu0 %v4030_v41  ;;  %v4228_v41 = vcombine.high %v1468_v34, %v1472_v35  ;;  %v1425_v25 = vld [vmem:[#allocation11 + $0x570] sm:$0xff] }
 0x24a   :  { %2963 = vmatpush1.bf16.msra.mxu1 %v4155_v47  ;;  %v1337_v47 = vld [vmem:[#allocation11 + $0x2b0] sm:$0xff] }
 0x24b   :  { %3004 = vmatpush1.bf16.msra.mxu0 %v4029_v48  ;;  %2964 = vmatprep.subr.bf16.mxu1 %v4148_v6  ;;  %v4227_v48 = vcombine.low %v1468_v34, %v1472_v35  ;;  %v4101_v6 = vcombine.low %v1341_v36, %v1345_v37  ;;  %v4094_v10 = vcombine.high %v1333_v46, %v1337_v47  ;;  %v1413_v35 = vld [vmem:[#allocation11 + $0x510] sm:$0xff]  ;;  %v1286_v37 = vld [vmem:[#allocation11 + $0x118] sm:$0xff] }
 0x24c   :  { %3005 = vmatprep.subr.bf16.mxu0 %v4022_v38  ;;  %v4220_v38 = vcombine.high %v1460_v43, %v1464_v44  ;;  %v1417_v36 = vld [vmem:[#allocation11 + $0x530] sm:$0xff] }
 0x24e   :  { %2965 = vmatpush1.bf16.msra.mxu1 %v4147_v51  ;;  %v1329_v51 = vld [vmem:[#allocation11 + $0x270] sm:$0xff] }
 0x24f   :  { %3006 = vmatpush1.bf16.msra.mxu0 %v4021_v52  ;;  %2966 = vmatprep.subr.bf16.mxu1 %v4140_v53  ;;  %v4219_v52 = vcombine.low %v1460_v43, %v1464_v44  ;;  %v4093_v53 = vcombine.low %v1333_v46, %v1337_v47  ;;  %v4086_v55 = vcombine.high %v1325_v50, %v1329_v51  ;;  %v1405_v44 = vld [vmem:[#allocation11 + $0x4d0] sm:$0xff]  ;;  %v1278_v47 = vld [vmem:[#allocation11 + $0xd8] sm:$0xff] }
 0x250   :  { %3007 = vmatprep.subr.bf16.mxu0 %v4014_v54  ;;  %v4212_v54 = vcombine.high %v1452_v49, %v1456_v45  ;;  %v1409_v46 = vld [vmem:[#allocation11 + $0x4f0] sm:$0xff] }
 0x252   :  { %2967 = vmatpush1.bf16.msra.mxu1 %v4139_v61  ;;  %v1321_v61 = vld [vmem:[#allocation11 + $0x230] sm:$0xff] }
 0x253   :  { %3008 = vmatpush1.bf16.msra.mxu0 %v4013_v62  ;;  %2968 = vmatprep.subr.bf16.mxu1 %v4260_v63  ;;  %v4211_v62 = vcombine.low %v1452_v49, %v1456_v45  ;;  %v4085_v63 = vcombine.low %v1325_v50, %v1329_v51  ;;  %v4078_v1 = vcombine.high %v1317_v58, %v1321_v61  ;;  %v1397_v49 = vld [vmem:[#allocation11 + $0x490] sm:$0xff]  ;;  %v1270_v50 = vld [vmem:[#allocation11 + $0x98] sm:$0xff] }
 0x254   :  { %3009 = vmatprep.subr.bf16.mxu0 %v4134_v0  ;;  %v4204_v0 = vcombine.high %v1444_v56, %v1448_v57  ;;  %v1401_v45 = vld [vmem:[#allocation11 + $0x4b0] sm:$0xff]  ;;  %v1274_v51 = vld [vmem:[#allocation11 + $0xb8] sm:$0xff] }
 0x256   :  { %2969 = vmatpush2.bf16.msra.mxu1 %v4259_v9  ;;  %v1314_v9 = vld [vmem:[#allocation11 + $0x1f8] sm:$0xff] }
 0x257   :  { %3010 = vmatpush2.bf16.msra.mxu0 %v4133_v11  ;;  %2970 = vmatprep.subr.bf16.mxu1 %v4252_v12  ;;  %v4203_v11 = vcombine.low %v1444_v56, %v1448_v57  ;;  %v4077_v12 = vcombine.low %v1317_v58, %v1321_v61  ;;  %v4072_v17 = vcombine.high %v1310_v8, %v1314_v9  ;;  %v1389_v56 = vld [vmem:[#allocation11 + $0x450] sm:$0xff]  ;;  %v1262_v58 = vld [vmem:[#allocation11 + $0x58] sm:$0xff] }
 0x258   :  { %3011 = vmatprep.subr.bf16.mxu0 %v4126_v13  ;;  %v4198_v13 = vcombine.high %v1437_v4, %v1441_v7  ;;  %v1393_v57 = vld [vmem:[#allocation11 + $0x470] sm:$0xff]  ;;  %v1266_v61 = vld [vmem:[#allocation11 + $0x78] sm:$0xff] }
 0x259   :  { %v1381_v4 = vld [vmem:[#allocation11 + $0x410] sm:$0xff] }
 0x25a   :  { %2971 = vmatpush2.bf16.msra.mxu1 %v4251_v2  ;;  %v1302_v2 = vld [vmem:[#allocation11 + $0x198] sm:$0xff]  ;;  %v1385_v7 = vld [vmem:[#allocation11 + $0x430] sm:$0xff] }
 0x25b   :  { %3012 = vmatpush2.bf16.msra.mxu0 %v4125_v3  ;;  %2972 = vmatprep.subr.bf16.mxu1 %v4244_v5  ;;  %v1306_v3 = vld [vmem:[#allocation11 + $0x1b8] sm:$0xff]  ;;  %v4071_v5 = vcombine.low %v1310_v8, %v1314_v9 }
 0x25c   :  { %3013 = vmatprep.subr.bf16.mxu0 %v4118_v23  ;;  %v4190_v23 = vcombine.high %v1429_v20, %v1433_v21  ;;  %v4064_v26 = vcombine.high %v1302_v2, %v1306_v3  ;;  %v1254_v8 = vld [vmem:[#allocation11 + $0x18] sm:$0xff] }
 0x25d   :  { %v1258_v9 = vld [vmem:[#allocation11 + $0x38] sm:$0xff] }
 0x25e   :  { %2973 = vmatpush2.bf16.msra.mxu1 %v4243_v28  ;;  %v1298_v28 = vld [vmem:[#allocation11 + $0x178] sm:$0xff] }
 0x25f   :  { %3014 = vmatpush2.bf16.msra.mxu0 %v4117_v29  ;;  %2974 = vmatprep.subr.bf16.mxu1 %v4236_v30  ;;  %v4189_v29 = vcombine.low %v1429_v20, %v1433_v21  ;;  %v4063_v30 = vcombine.low %v1302_v2, %v1306_v3  ;;  %v4056_v34 = vcombine.high %v1294_v27, %v1298_v28  ;;  %v1501_v20 = vld [vmem:[#allocation11 + $0x7d0] sm:$0xff]  ;;  %v1378_v2 = vld [vmem:[#allocation11 + $0x3f8] sm:$0xff] }
 0x260   :  { %3015 = vmatprep.subr.bf16.mxu0 %v4110_v33  ;;  %v4182_v33 = vcombine.high %v1421_v24, %v1425_v25  ;;  %v1505_v21 = vld [vmem:[#allocation11 + $0x7f0] sm:$0xff]  ;;  %v4141_v3 = vcombine.low %v1381_v4, %v1385_v7 }
 0x262   :  { %2975 = vmatpush2.bf16.msra.mxu1 %v4235_v39  ;;  %v1290_v39 = vld [vmem:[#allocation11 + $0x138] sm:$0xff] }
 0x263   :  { %3016 = vmatpush2.bf16.msra.mxu0 %v4109_v40  ;;  %2976 = vmatprep.subr.bf16.mxu1 %v4228_v41  ;;  %v4181_v40 = vcombine.low %v1421_v24, %v1425_v25  ;;  %v4055_v41 = vcombine.low %v1294_v27, %v1298_v28  ;;  %v4048_v43 = vcombine.high %v1286_v37, %v1290_v39  ;;  %v1493_v25 = vld [vmem:[#allocation11 + $0x790] sm:$0xff]  ;;  %v1366_v27 = vld [vmem:[#allocation11 + $0x398] sm:$0xff] }
 0x264   :  { %3017 = vmatprep.subr.bf16.mxu0 %v4102_v42  ;;  %v4174_v42 = vcombine.high %v1413_v35, %v1417_v36  ;;  %v1370_v28 = vld [vmem:[#allocation11 + $0x3b8] sm:$0xff] }
 0x266   :  { %2977 = vmatpush2.bf16.msra.mxu1 %v4227_v48  ;;  %v1282_v48 = vld [vmem:[#allocation11 + $0xf8] sm:$0xff] }
 0x267   :  { %3018 = vmatpush2.bf16.msra.mxu0 %v4101_v6  ;;  %2978 = vmatprep.subr.bf16.mxu1 %v4220_v38  ;;  %v4047_v6 = vcombine.low %v1286_v37, %v1290_v39  ;;  %v4166_v38 = vcombine.high %v1405_v44, %v1409_v46  ;;  %v1358_v37 = vld [vmem:[#allocation11 + $0x358] sm:$0xff] }
 0x268   :  { %3019 = vmatprep.subr.bf16.mxu0 %v4094_v10  ;;  %v4040_v10 = vcombine.high %v1278_v47, %v1282_v48  ;;  %v1362_v39 = vld [vmem:[#allocation11 + $0x378] sm:$0xff] }
 0x26a   :  { %2979 = vmatpush2.bf16.msra.mxu1 %v4219_v52  ;;  %v4165_v52 = vcombine.low %v1405_v44, %v1409_v46  ;;  %v1477_v44 = vld [vmem:[#allocation11 + $0x710] sm:$0xff] }
 0x26b   :  { %3020 = vmatpush2.bf16.msra.mxu0 %v4093_v53  ;;  %2980 = vmatprep.subr.bf16.mxu1 %v4212_v54  ;;  %v4039_v53 = vcombine.low %v1278_v47, %v1282_v48  ;;  %v4158_v54 = vcombine.high %v1397_v49, %v1401_v45  ;;  %v1481_v46 = vld [vmem:[#allocation11 + $0x730] sm:$0xff]  ;;  %v1350_v47 = vld [vmem:[#allocation11 + $0x318] sm:$0xff] }
 0x26c   :  { %3021 = vmatprep.subr.bf16.mxu0 %v4086_v55  ;;  %v4032_v55 = vcombine.high %v1270_v50, %v1274_v51  ;;  %v1354_v48 = vld [vmem:[#allocation11 + $0x338] sm:$0xff] }
 0x26e   :  { %2981 = vmatpush2.bf16.msra.mxu1 %v4211_v62  ;;  %v4157_v62 = vcombine.low %v1397_v49, %v1401_v45  ;;  %v1469_v49 = vld [vmem:[#allocation11 + $0x6d0] sm:$0xff] }
 0x26f   :  { %3022 = vmatpush2.bf16.msra.mxu0 %v4085_v63  ;;  %2982 = vmatprep.subr.bf16.mxu1 %v4204_v0  ;;  %v4031_v63 = vcombine.low %v1270_v50, %v1274_v51  ;;  %v4150_v0 = vcombine.high %v1389_v56, %v1393_v57  ;;  %v1473_v45 = vld [vmem:[#allocation11 + $0x6f0] sm:$0xff]  ;;  %v1342_v50 = vld [vmem:[#allocation11 + $0x2d8] sm:$0xff] }
 0x270   :  { %3023 = vmatprep.subr.bf16.mxu0 %v4078_v1  ;;  %v4024_v1 = vcombine.high %v1262_v58, %v1266_v61  ;;  %v1346_v51 = vld [vmem:[#allocation11 + $0x2f8] sm:$0xff] }
 0x272   :  { %2983 = vmatpush2.bf16.msra.mxu1 %v4203_v11  ;;  %v4149_v11 = vcombine.low %v1389_v56, %v1393_v57  ;;  %v1461_v56 = vld [vmem:[#allocation11 + $0x690] sm:$0xff] }
 0x273   :  { %3024 = vmatpush2.bf16.msra.mxu0 %v4077_v12  ;;  %3034 = vmatprep.subr.bf16.mxu1 %v4198_v13  ;;  %v4023_v12 = vcombine.low %v1262_v58, %v1266_v61  ;;  %v4142_v13 = vcombine.high %v1381_v4, %v1385_v7  ;;  %v1465_v57 = vld [vmem:[#allocation11 + $0x6b0] sm:$0xff]  ;;  %v1334_v58 = vld [vmem:[#allocation11 + $0x298] sm:$0xff] }
 0x274   :  { %3075 = vmatprep.subr.bf16.mxu0 %v4072_v17  ;;  %v4016_v17 = vcombine.high %v1254_v8, %v1258_v9  ;;  %v1338_v61 = vld [vmem:[#allocation11 + $0x2b8] sm:$0xff]  ;;  %v1453_v4 = vld [vmem:[#allocation11 + $0x650] sm:$0xff] }
 0x275   :  { %2985 = vmatmul.mubr.bf16.vlgmr.msra.gmra.mxu1 %v5021_v60  ;;  %v1457_v7 = vld [vmem:[#allocation11 + $0x670] sm:$0xff] }
 0x276   :  { %3026 = vmatmul.mubr.bf16.vlgmr.msra.gmra.mxu0 %v5007_v32  ;;  %3035 = vmatpush1.bf16.msra.mxu1 %v4197_v22  ;;  %v1374_v22 = vld [vmem:[#allocation11 + $0x3d8] sm:$0xff] }
 0x277   :  { %3066 = vmatprep.mubr.bf16.mxu1 %v5019_v59  ;;  %3076 = vmatpush1.bf16.msra.mxu0 %v4071_v5  ;;  %v4015_v5 = vcombine.low %v1254_v8, %v1258_v9  ;;  %v4136_v24 = vcombine.high %v1374_v22, %v1378_v2  ;;  %v1326_v8 = vld [vmem:[#allocation11 + $0x258] sm:$0xff] }
 0x278   :  { %3107 = vmatprep.mubr.bf16.mxu0 %v5005_v31  ;;  %3036 = vmatprep.subr.bf16.mxu1 %v4190_v23  ;;  %v4173_v31 = vcombine.low %v1413_v35, %v1417_v36  ;;  %v4262_v23 = vcombine.high %v1501_v20, %v1505_v21  ;;  %v1485_v35 = vld [vmem:[#allocation11 + $0x750] sm:$0xff]  ;;  %v1330_v9 = vld [vmem:[#allocation11 + $0x278] sm:$0xff] }
 0x279   :  { %3077 = vmatprep.subr.bf16.mxu0 %v4064_v26  ;;  %v1497_v26 = vld [vmem:[#allocation11 + $0x7b0] sm:$0xff] }
 0x27a   :  { %3037 = vmatpush1.bf16.msra.mxu1 %v4189_v29  ;;  %v4261_v29 = vcombine.low %v1501_v20, %v1505_v21  ;;  %v1489_v36 = vld [vmem:[#allocation11 + $0x770] sm:$0xff] }
 0x27b   :  { %3078 = vmatpush1.bf16.msra.mxu0 %v4063_v30  ;;  %3038 = vmatprep.subr.bf16.mxu1 %v4182_v33  ;;  %v4135_v30 = vcombine.low %v1374_v22, %v1378_v2  ;;  %v4254_v33 = vcombine.high %v1493_v25, %v1497_v26  ;;  %v1445_v20 = vld [vmem:[#allocation11 + $0x610] sm:$0xff]  ;;  %v1318_v22 = vld [vmem:[#allocation11 + $0x218] sm:$0xff] }
 0x27c   :  { %3079 = vmatprep.subr.bf16.mxu0 %v4056_v34  ;;  %v4128_v34 = vcombine.high %v1366_v27, %v1370_v28  ;;  %v1449_v21 = vld [vmem:[#allocation11 + $0x630] sm:$0xff]  ;;  %v1322_v2 = vld [vmem:[#allocation11 + $0x238] sm:$0xff] }
 0x27e   :  { %3039 = vmatpush1.bf16.msra.mxu1 %v4181_v40  ;;  %v4253_v40 = vcombine.low %v1493_v25, %v1497_v26  ;;  %v1438_v25 = vld [vmem:[#allocation11 + $0x5d8] sm:$0xff] }
 0x27f   :  { %3080 = vmatpush1.bf16.msra.mxu0 %v4055_v41  ;;  %3040 = vmatprep.subr.bf16.mxu1 %v4174_v42  ;;  %v4127_v41 = vcombine.low %v1366_v27, %v1370_v28  ;;  %v4246_v42 = vcombine.high %v1485_v35, %v1489_v36  ;;  %v1442_v26 = vld [vmem:[#allocation11 + $0x5f8] sm:$0xff]  ;;  %v4205_v27 = vcombine.low %v1445_v20, %v1449_v21 }
 0x280   :  { %3081 = vmatprep.subr.bf16.mxu0 %v4048_v43  ;;  %v4120_v43 = vcombine.high %v1358_v37, %v1362_v39  ;;  %v4079_v28 = vcombine.low %v1318_v22, %v1322_v2 }
 0x282   :  { %3041 = vmatpush1.bf16.msra.mxu1 %v4173_v31  ;;  %v4245_v31 = vcombine.low %v1485_v35, %v1489_v36  ;;  %v4199_v35 = vcombine.low %v1438_v25, %v1442_v26 }
 0x283   :  { %3082 = vmatpush1.bf16.msra.mxu0 %v4047_v6  ;;  %3042 = vmatprep.subr.bf16.mxu1 %v4166_v38  ;;  %v4119_v6 = vcombine.low %v1358_v37, %v1362_v39  ;;  %v4238_v38 = vcombine.high %v1477_v44, %v1481_v46  ;;  %v1422_v37 = vld [vmem:[#allocation11 + $0x558] sm:$0xff] }
 0x284   :  { %3083 = vmatprep.subr.bf16.mxu0 %v4040_v10  ;;  %v4112_v10 = vcombine.high %v1350_v47, %v1354_v48  ;;  %v1426_v39 = vld [vmem:[#allocation11 + $0x578] sm:$0xff] }
 0x286   :  { %3043 = vmatpush1.bf16.msra.mxu1 %v4165_v52  ;;  %v4237_v52 = vcombine.low %v1477_v44, %v1481_v46  ;;  %v4184_v46 = vcombine.high %v1422_v37, %v1426_v39 }
 0x287   :  { %3084 = vmatpush1.bf16.msra.mxu0 %v4039_v53  ;;  %3044 = vmatprep.subr.bf16.mxu1 %v4158_v54  ;;  %v4111_v53 = vcombine.low %v1350_v47, %v1354_v48  ;;  %v4230_v54 = vcombine.high %v1469_v49, %v1473_v45  ;;  %v1414_v47 = vld [vmem:[#allocation11 + $0x518] sm:$0xff] }
 0x288   :  { %3085 = vmatprep.subr.bf16.mxu0 %v4032_v55  ;;  %v4104_v55 = vcombine.high %v1342_v50, %v1346_v51  ;;  %v1418_v48 = vld [vmem:[#allocation11 + $0x538] sm:$0xff] }
 0x28a   :  { %3045 = vmatpush1.bf16.msra.mxu1 %v4157_v62  ;;  %v4229_v62 = vcombine.low %v1469_v49, %v1473_v45  ;;  %v1406_v45 = vld [vmem:[#allocation11 + $0x4d8] sm:$0xff] }
 0x28b   :  { %3086 = vmatpush1.bf16.msra.mxu0 %v4031_v63  ;;  %3046 = vmatprep.subr.bf16.mxu1 %v4150_v0  ;;  %v4103_v63 = vcombine.low %v1342_v50, %v1346_v51  ;;  %v4222_v0 = vcombine.high %v1461_v56, %v1465_v57  ;;  %v1410_v50 = vld [vmem:[#allocation11 + $0x4f8] sm:$0xff]  ;;  %v4643_v51 = vld [vmem:[#allocation13 + $0x60] sm:$0xff]  }
 0x28c   :  { %3087 = vmatprep.subr.bf16.mxu0 %v4024_v1  ;;  %v4096_v1 = vcombine.high %v1334_v58, %v1338_v61 }
 0x28e   :  { %3047 = vmatpush1.bf16.msra.mxu1 %v4149_v11  ;;  %v4221_v11 = vcombine.low %v1461_v56, %v1465_v57  ;;  %v4644_v56 = vld [vmem:[#allocation13 + $0x20] sm:$0xff]   ;;  %v4645_v57 = vld [vmem:[#allocation13 + $0x58] sm:$0xff]  }
 0x28f   :  { %3088 = vmatpush1.bf16.msra.mxu0 %v4023_v12  ;;  %3048 = vmatprep.subr.bf16.mxu1 %v4142_v13  ;;  %v4095_v12 = vcombine.low %v1334_v58, %v1338_v61  ;;  %v4214_v13 = vcombine.high %v1453_v4, %v1457_v7  ;;  %v4167_v58 = vcombine.low %v1406_v45, %v1410_v50 }
 0x290   :  { %3089 = vmatprep.subr.bf16.mxu0 %v4016_v17  ;;  %v4088_v17 = vcombine.high %v1326_v8, %v1330_v9 }
 0x292   :  { %3049 = vmatpush1.bf16.msra.mxu1 %v4141_v3  ;;  %v4213_v3 = vcombine.low %v1453_v4, %v1457_v7 }
 0x293   :  { %3090 = vmatpush1.bf16.msra.mxu0 %v4015_v5  ;;  %3050 = vmatprep.subr.bf16.mxu1 %v4262_v23  ;;  %v4087_v5 = vcombine.low %v1326_v8, %v1330_v9  ;;  %v4206_v23 = vcombine.high %v1445_v20, %v1449_v21  ;;  %v1382_v8 = vld [vmem:[#allocation11 + $0x418] sm:$0xff] }
 0x294   :  { %3091 = vmatprep.subr.bf16.mxu0 %v4136_v24  ;;  %v4080_v24 = vcombine.high %v1318_v22, %v1322_v2  ;;  %v1386_v9 = vld [vmem:[#allocation11 + $0x438] sm:$0xff]  ;;  %v4650_v22 = vld [vmem:[#allocation13 + $0x8] sm:$0xff]   ;;  %v4651_v2 = vld [vmem:[#allocation13 + $0x40] sm:$0xff]  }
 0x295   :  { %v1502_v20 = vld [vmem:[#allocation11 + $0x7d8] sm:$0xff] }
 0x296   :  { %3051 = vmatpush2.bf16.msra.mxu1 %v4261_v29  ;;  %v4200_v29 = vcombine.high %v1438_v25, %v1442_v26  ;;  %v1506_v21 = vld [vmem:[#allocation11 + $0x7f8] sm:$0xff]  ;;  %v4652_v25 = vld [vmem:[#allocation13] sm:$0xff]  }
 0x297   :  { %3092 = vmatpush2.bf16.msra.mxu0 %v4135_v30  ;;  %3052 = vmatprep.subr.bf16.mxu1 %v4254_v33  ;;  %v1430_v30 = vld [vmem:[#allocation11 + $0x598] sm:$0xff] }
 0x298   :  { %3093 = vmatprep.subr.bf16.mxu0 %v4128_v34  ;;  %v1434_v33 = vld [vmem:[#allocation11 + $0x5b8] sm:$0xff] }
 0x299   :  { %v4637_v34 = vld [vmem:[#allocation13 + $0x78] sm:$0xff]   ;;  %v4192_v36 = vcombine.high %v1430_v30, %v1434_v33 }
 0x29a   :  { %3053 = vmatpush2.bf16.msra.mxu1 %v4253_v40  ;;  %v4638_v40 = vld [vmem:[#allocation13 + $0x38] sm:$0xff]  }
 0x29b   :  { %3094 = vmatpush2.bf16.msra.mxu0 %v4127_v41  ;;  %3054 = vmatprep.subr.bf16.mxu1 %v4246_v42  ;;  %v4639_v42 = vld [vmem:[#allocation13 + $0x70] sm:$0xff]   ;;  %v4669_v26 = vld [vmem:[#allocation13 + $0x178] sm:$0xff]  }
 0x29c   :  { %3095 = vmatprep.subr.bf16.mxu0 %v4120_v43  ;;  %v4191_v43 = vcombine.low %v1430_v30, %v1434_v33  ;;  %v1490_v30 = vld [vmem:[#allocation11 + $0x778] sm:$0xff] }
 0x29e   :  { %3055 = vmatpush2.bf16.msra.mxu1 %v4245_v31  ;;  %v4640_v31 = vld [vmem:[#allocation13 + $0x30] sm:$0xff]  }
 0x29f   :  { %3096 = vmatpush2.bf16.msra.mxu0 %v4119_v6  ;;  %3056 = vmatprep.subr.bf16.mxu1 %v4238_v38  ;;  %v4641_v38 = vld [vmem:[#allocation13 + $0x68] sm:$0xff]  }
 0x2a0   :  { %3097 = vmatprep.subr.bf16.mxu0 %v4112_v10  ;;  %v4183_v10 = vcombine.low %v1422_v37, %v1426_v39 }
 0x2a2   :  { %3057 = vmatpush2.bf16.msra.mxu1 %v4237_v52  ;;  %v4175_v52 = vcombine.low %v1414_v47, %v1418_v48 }
 0x2a3   :  { %3098 = vmatpush2.bf16.msra.mxu0 %v4111_v53  ;;  %3058 = vmatprep.subr.bf16.mxu1 %v4230_v54  ;;  %v4168_v53 = vcombine.high %v1406_v45, %v1410_v50  ;;  %v1398_v54 = vld [vmem:[#allocation11 + $0x498] sm:$0xff] }
 0x2a4   :  { %3099 = vmatprep.subr.bf16.mxu0 %v4104_v55  ;;  %v1402_v55 = vld [vmem:[#allocation11 + $0x4b8] sm:$0xff] }
 0x2a5   :  { %v4160_v61 = vcombine.high %v1398_v54, %v1402_v55  ;;  %v4159_v4 = vcombine.low %v1398_v54, %v1402_v55  ;;  %v1446_v45 = vld [vmem:[#allocation11 + $0x618] sm:$0xff] }
 0x2a6   :  { %3059 = vmatpush2.bf16.msra.mxu1 %v4229_v62  ;;  %v1390_v62 = vld [vmem:[#allocation11 + $0x458] sm:$0xff] }
 0x2a7   :  { %3100 = vmatpush2.bf16.msra.mxu0 %v4103_v63  ;;  %3060 = vmatprep.subr.bf16.mxu1 %v4222_v0  ;;  %v1394_v63 = vld [vmem:[#allocation11 + $0x478] sm:$0xff] }
 0x2a8   :  { %3101 = vmatprep.subr.bf16.mxu0 %v4096_v1  ;;  %v4646_v0 = vld [vmem:[#allocation13 + $0x18] sm:$0xff]   ;;  %v4647_v1 = vld [vmem:[#allocation13 + $0x50] sm:$0xff]   ;;  %v4152_v7 = vcombine.high %v1390_v62, %v1394_v63 }
 0x2a9   :  { %v1450_v50 = vld [vmem:[#allocation11 + $0x638] sm:$0xff] }
 0x2aa   :  { %3061 = vmatpush2.bf16.msra.mxu1 %v4221_v11  ;;  %v4648_v11 = vld [vmem:[#allocation13 + $0x10] sm:$0xff]   ;;  %v4653_v54 = vld [vmem:[#allocation13 + $0xf8] sm:$0xff]  }
 0x2ab   :  { %3102 = vmatpush2.bf16.msra.mxu0 %v4095_v12  ;;  %3062 = vmatprep.subr.bf16.mxu1 %v4214_v13  ;;  %v4649_v12 = vld [vmem:[#allocation13 + $0x48] sm:$0xff]   ;;  %v4151_v13 = vcombine.low %v1390_v62, %v1394_v63 }
 0x2ac   :  { %3103 = vmatprep.subr.bf16.mxu0 %v4088_v17  ;;  %v4144_v17 = vcombine.high %v1382_v8, %v1386_v9 }
 0x2ae   :  { %3063 = vmatpush2.bf16.msra.mxu1 %v4213_v3  ;;  %v4143_v3 = vcombine.low %v1382_v8, %v1386_v9 }
 0x2af   :  { %3104 = vmatpush2.bf16.msra.mxu0 %v4087_v5  ;;  %3064 = vmatprep.subr.bf16.mxu1 %v4206_v23  ;;  %v4264_v5 = vcombine.high %v1502_v20, %v1506_v21  ;;  %v1494_v23 = vld [vmem:[#allocation11 + $0x798] sm:$0xff] }
 0x2b0   :  { %3105 = vmatprep.subr.bf16.mxu0 %v4080_v24  ;;  %v1498_v24 = vld [vmem:[#allocation11 + $0x7b8] sm:$0xff] }
 0x2b1   :  { %v4255_v33 = vcombine.low %v1494_v23, %v1498_v24 }
 0x2b2   :  { %3065 = vmatpush2.bf16.msra.mxu1 %v4205_v27  ;;  %v4263_v27 = vcombine.low %v1502_v20, %v1506_v21  ;;  %v4659_v20 = vld [vmem:[#allocation13 + $0xe0] sm:$0xff]   ;;  %v4670_v21 = vld [vmem:[#allocation13 + $0x138] sm:$0xff]  }
 0x2b3   :  { %3106 = vmatpush2.bf16.msra.mxu0 %v4079_v28  ;;  %3116 = vmatprep.subr.bf16.mxu1 %v4200_v29  ;;  %v4256_v28 = vcombine.high %v1494_v23, %v1498_v24  ;;  %v1486_v29 = vld [vmem:[#allocation11 + $0x758] sm:$0xff]  ;;  %v4672_v23 = vld [vmem:[#allocation13 + $0x130] sm:$0xff]   ;;  %v4673_v24 = vld [vmem:[#allocation13 + $0x168] sm:$0xff]  }
 0x2b4   :  { %4330 = vmatprep.subr.bf16.mxu0 %v4637_v34  ;;  %v4248_v34 = vcombine.high %v1486_v29, %v1490_v30  ;;  %v4247_v37 = vcombine.low %v1486_v29, %v1490_v30  ;;  %v4664_v29 = vld [vmem:[#allocation13 + $0x90] sm:$0xff]   ;;  %v4665_v30 = vld [vmem:[#allocation13 + $0xc8] sm:$0xff]  }
 0x2b5   :  { %3067 = vmatmul.mubr.bf16.vlgmr.msra.gmra.mxu1 %v5021_v60  ;;  %v5036_v41 = vpop.f32.mrf.mxu0 }
 0x2b6   :  { %3108 = vmatmul.mubr.bf16.vlgmr.msra.gmra.mxu0 %v5007_v32  ;;  %3117 = vmatpush1.bf16.msra.mxu1 %v4199_v35  ;;  %v4176_v32 = vcombine.high %v1414_v47, %v1418_v48  ;;  %v1478_v35 = vld [vmem:[#allocation11 + $0x718] sm:$0xff] }
 0x2b7   :  { %3148 = vmatprep.mubr.bf16.mxu1 %v5019_v59  ;;  %v5040_v44 = vpop.f32.mrf.mxu0  ;;  %3118 = vmatprep.subr.bf16.mxu1 %v4192_v36  ;;  %v4642_v59 = vld [vmem:[#allocation13 + $0x28] sm:$0xff]   ;;  %v1482_v36 = vld [vmem:[#allocation11 + $0x738] sm:$0xff] }
 0x2b8   :  { %4331 = vmatpush3.bf16.msra.mxu0 %v4638_v40  ;;  %v4240_v39 = vcombine.high %v1478_v35, %v1482_v36  ;;  %v1470_v40 = vld [vmem:[#allocation11 + $0x6d8] sm:$0xff] }
 0x2b9   :  { %v2867_v6 = vpop.f32.mrf.mxu0  ;;  %4332 = vmatprep.subr.bf16.mxu0 %v4639_v42  ;;  %v1474_v42 = vld [vmem:[#allocation11 + $0x6f8] sm:$0xff] }
 0x2ba   :  { %3119 = vmatpush1.bf16.msra.mxu1 %v4191_v43  ;;  %v4239_v43 = vcombine.low %v1478_v35, %v1482_v36  ;;  %v1462_v47 = vld [vmem:[#allocation11 + $0x698] sm:$0xff]  ;;  %v4666_v35 = vld [vmem:[#allocation13 + $0x88] sm:$0xff]   ;;  %v4667_v36 = vld [vmem:[#allocation13 + $0xc0] sm:$0xff]  }
 0x2bb   :  { %v2868_v49 = vpop.f32.mrf.mxu0  ;;  %3120 = vmatprep.subr.bf16.mxu1 %v4184_v46  ;;  %v4232_v46 = vcombine.high %v1470_v40, %v1474_v42  ;;  %v1466_v48 = vld [vmem:[#allocation11 + $0x6b8] sm:$0xff] }
 0x2bc   :  { %4333 = vmatpush3.bf16.msra.mxu0 %v4640_v31  ;;  %v4231_v31 = vcombine.low %v1470_v40, %v1474_v42  ;;  %v4224_v6 = vcombine.high %v1462_v47, %v1466_v48  ;;  %v4223_v49 = vcombine.low %v1462_v47, %v1466_v48  ;;  %v4668_v40 = vld [vmem:[#allocation13 + $0x80] sm:$0xff]   ;;  %v4685_v42 = vld [vmem:[#allocation13 + $0x1f8] sm:$0xff]   ;;  %v4682_v47 = vld [vmem:[#allocation13 + $0x108] sm:$0xff]  }
 0x2bd   :  { %4334 = vmatprep.subr.bf16.mxu0 %v4641_v38  ;;  %v1454_v38 = vld [vmem:[#allocation11 + $0x658] sm:$0xff]  ;;  %v4683_v48 = vld [vmem:[#allocation13 + $0x140] sm:$0xff]  }
 0x2be   :  { %3121 = vmatpush1.bf16.msra.mxu1 %v4183_v10  ;;  %v1458_v10 = vld [vmem:[#allocation11 + $0x678] sm:$0xff] }
 0x2bf   :  { %3122 = vmatprep.subr.bf16.mxu1 %v4176_v32  ;;  %v4216_v32 = vcombine.high %v1454_v38, %v1458_v10 }
 0x2c0   :  { %4335 = vmatpush3.bf16.msra.mxu0 %v4642_v59  ;;  %v4215_v59 = vcombine.low %v1454_v38, %v1458_v10 }
 0x2c1   :  { %4336 = vmatprep.subr.bf16.mxu0 %v4643_v51  ;;  %v4208_v51 = vcombine.high %v1446_v45, %v1450_v50 }
 0x2c2   :  { %3123 = vmatpush1.bf16.msra.mxu1 %v4175_v52  ;;  %v5045_v52 = vld [vmem:[%s5084_s6] sm:$0xff] }
 0x2c3   :  { %3124 = vmatprep.subr.bf16.mxu1 %v4168_v53  ;;  %v4207_v53 = vcombine.low %v1446_v45, %v1450_v50  ;;  %v1512_v55 = vrot.slane %v5045_v52, %v4960_v15  ;;  %v1524_v38 = vrot.slane %v5045_v52, %v4969_v19  ;;  %v4687_v19 = vld [vmem:[#allocation13 + $0x1f0] sm:$0xff]  }
 0x2c4   :  { %4337 = vmatpush3.bf16.msra.mxu0 %v4644_v56  ;;  %v1516_v56 = vrot.slane %v5045_v52, %v4966_v18  ;;  %v4657_v18 = vld [vmem:[#allocation13 + $0xe8] sm:$0xff]  }
 0x2c5   :  { %4338 = vmatprep.subr.bf16.mxu0 %v4645_v57  ;;  %v4654_v57 = vld [vmem:[#allocation13 + $0xb8] sm:$0xff]  }
 0x2c6   :  { %3125 = vmatpush1.bf16.msra.mxu1 %v4167_v58  ;;  %v4655_v58 = vld [vmem:[#allocation13 + $0xf0] sm:$0xff]  }
 0x2c7   :  { %3126 = vmatprep.subr.bf16.mxu1 %v4160_v61  ;;  %v2864_v61 = vadd.f32 %v5036_v41, %v1512_v55 }
 0x2c8   :  { %4339 = vmatpush3.bf16.msra.mxu0 %v4646_v0  ;;  %v2866_v0 = vadd.f32 %v5040_v44, %v1516_v56 }
 0x2c9   :  { %4340 = vmatprep.subr.bf16.mxu0 %v4647_v1 }
 0x2ca   :  { %3127 = vmatpush1.bf16.msra.mxu1 %v4159_v4  ;;  %v4656_v4 = vld [vmem:[#allocation13 + $0xb0] sm:$0xff]  }
 0x2cb   :  { %3128 = vmatprep.subr.bf16.mxu1 %v4152_v7 }
 0x2cc   :  { %4341 = vmatpush3.bf16.msra.mxu0 %v4648_v11 }
 0x2cd   :  { %4342 = vmatprep.subr.bf16.mxu0 %v4649_v12 }
 0x2ce   :  { %3129 = vmatpush1.bf16.msra.mxu1 %v4151_v13 }
 0x2cf   :  { %3130 = vmatprep.subr.bf16.mxu1 %v4144_v17 }
 0x2d0   :  { %4343 = vmatpush3.bf16.msra.mxu0 %v4650_v22 }
 0x2d1   :  { %4344 = vmatprep.subr.bf16.mxu0 %v4651_v2  ;;  %v4671_v2 = vld [vmem:[#allocation13 + $0x170] sm:$0xff]  }
 0x2d2   :  { %3131 = vmatpush1.bf16.msra.mxu1 %v4143_v3  ;;  %v4660_v3 = vld [vmem:[#allocation13 + $0xa0] sm:$0xff]  }
 0x2d3   :  { %3132 = vmatprep.subr.bf16.mxu1 %v4264_v5  ;;  %v4661_v5 = vld [vmem:[#allocation13 + $0xd8] sm:$0xff]  }
 0x2d4   :  { %4345 = vmatpush3.bf16.msra.mxu0 %v4652_v25  ;;  %v4662_v25 = vld [vmem:[#allocation13 + $0x98] sm:$0xff]  }
 0x2d5   :  { %4374 = vmatprep.subr.bf16.mxu0 %v4669_v26  ;;  %v4663_v26 = vld [vmem:[#allocation13 + $0xd0] sm:$0xff]  }
 0x2d6   :  { %3133 = vmatpush2.bf16.msra.mxu1 %v4263_v27  ;;  %v4674_v27 = vld [vmem:[#allocation13 + $0x128] sm:$0xff]  }
 0x2d7   :  { %3134 = vmatprep.subr.bf16.mxu1 %v4256_v28  ;;  %v4675_v28 = vld [vmem:[#allocation13 + $0x160] sm:$0xff]  }
 0x2da   :  { %3135 = vmatpush2.bf16.msra.mxu1 %v4255_v33  ;;  %v4676_v33 = vld [vmem:[#allocation13 + $0x120] sm:$0xff]  }
 0x2db   :  { %3136 = vmatprep.subr.bf16.mxu1 %v4248_v34  ;;  %v4677_v34 = vld [vmem:[#allocation13 + $0x158] sm:$0xff]  }
 0x2de   :  { %3137 = vmatpush2.bf16.msra.mxu1 %v4247_v37  ;;  %v4678_v37 = vld [vmem:[#allocation13 + $0x118] sm:$0xff]  }
 0x2df   :  { %3138 = vmatprep.subr.bf16.mxu1 %v4240_v39  ;;  %v4679_v39 = vld [vmem:[#allocation13 + $0x150] sm:$0xff]  }
 0x2e2   :  { %3139 = vmatpush2.bf16.msra.mxu1 %v4239_v43  ;;  %v4680_v43 = vld [vmem:[#allocation13 + $0x110] sm:$0xff]  }
 0x2e3   :  { %3140 = vmatprep.subr.bf16.mxu1 %v4232_v46  ;;  %v4681_v46 = vld [vmem:[#allocation13 + $0x148] sm:$0xff]  }
 0x2e6   :  { %3141 = vmatpush2.bf16.msra.mxu1 %v4231_v31  ;;  %v4684_v31 = vld [vmem:[#allocation13 + $0x100] sm:$0xff]  }
 0x2e7   :  { %3142 = vmatprep.subr.bf16.mxu1 %v4224_v6  ;;  %v1520_v6 = vrot.slane %v5045_v52, %v4963_v16 }
 0x2ea   :  { %3143 = vmatpush2.bf16.msra.mxu1 %v4223_v49 }
 0x2eb   :  { %3144 = vmatprep.subr.bf16.mxu1 %v4216_v32 }
 0x2ee   :  { %3145 = vmatpush2.bf16.msra.mxu1 %v4215_v59 }
 0x2ef   :  { %3146 = vmatprep.subr.bf16.mxu1 %v4208_v51 }
 0x2f2   :  { %3147 = vmatpush2.bf16.msra.mxu1 %v4207_v53 }
 0x2f3   :  { %4352 = vmatprep.subr.bf16.mxu1 %v4653_v54 }
 0x2f5   :  { %3149 = vmatmul.mubr.bf16.vlgmr.msra.gmra.mxu1 %v5021_v60  ;;  %v2904_v62 = vpop.f32.mrf.mxu1  ;;  %v5053_v63 = vpop.f32.mrf.mxu0  ;;  %v4658_v60 = vld [vmem:[#allocation13 + $0xa8] sm:$0xff]  }
 0x2f6   :  { %v2905_v1 = vadd.f32 %v2904_v62, %v2864_v61  ;;  %4353 = vmatpush3.bf16.msra.mxu1 %v4654_v57  ;;  %v2946_v10 = vadd.f32 %v5053_v63, %v1520_v6  ;;  %v4686_v62 = vld [vmem:[#allocation13 + $0x1b8] sm:$0xff]   ;;  %v4688_v63 = vld [vmem:[#allocation13 + $0x1b0] sm:$0xff]  }
 0x2f7   :  { %v2906_v15 = vpop.f32.mrf.mxu1  ;;  %v5056_v7 = vpop.f32.mrf.mxu0  ;;  %4354 = vmatprep.subr.bf16.mxu1 %v4655_v58 }
 0x2f8   :  { %v2907_v8 = vadd.f32 %v2906_v15, %v2866_v0  ;;  %v3157_v9 = vmax.f32 %v2905_v1, 0.0  ;;  %v2948_v32 = vadd.f32 %v5056_v7, %v1524_v38  ;;  %v4689_v1 = vld [vmem:[#allocation13 + $0x1e8] sm:$0xff]   ;;  %v4691_v15 = vld [vmem:[#allocation13 + $0x1e0] sm:$0xff]  }
 0x2f9   :  { %v2908_v11 = vpop.f32.mrf.mxu1  ;;  %v2949_v12 = vpop.f32.mrf.mxu0  ;;  %v4692_v7 = vld [vmem:[#allocation13 + $0x1a0] sm:$0xff]  }
 0x2fa   :  { %v3158_v41 = vmax.f32 %v2907_v8, 0.0  ;;  %4355 = vmatpush3.bf16.msra.mxu1 %v4656_v4  ;;  %v3165_v22 = vpack.c.bf16 %v3157_v9, %v3157_v9  ;;  %v4690_v4 = vld [vmem:[#allocation13 + $0x1a8] sm:$0xff]   ;;  %v4694_v8 = vld [vmem:[#allocation13 + $0x198] sm:$0xff]   ;;  %v4695_v9 = vld [vmem:[#allocation13 + $0x1d0] sm:$0xff]  }
 0x2fb   :  { %v2909_v13 = vpop.f32.mrf.mxu1  ;;  %v2950_v17 = vpop.f32.mrf.mxu0  ;;  %4356 = vmatprep.subr.bf16.mxu1 %v4657_v18  ;;  %v4693_v18 = vld [vmem:[#allocation13 + $0x1d8] sm:$0xff]   ;;  %v4696_v11 = vld [vmem:[#allocation13 + $0x190] sm:$0xff]   ;;  %v4697_v12 = vld [vmem:[#allocation13 + $0x1c8] sm:$0xff]  }
 0x2fc   :  { %v3166_v44 = vpack.c.bf16 %v3158_v41, %v3158_v41  ;;  %v4698_v41 = vld [vmem:[#allocation13 + $0x188] sm:$0xff]   ;;  %v4700_v13 = vld [vmem:[#allocation13 + $0x180] sm:$0xff]   ;;  %v1527_v17 = vsub.s32 4, %v4957_v14 }
 0x2fe   :  { %3724 = vmatprep.mubr.bf16.mxu0 %v3166_v44  ;;  %4357 = vmatpush3.bf16.msra.mxu1 %v4658_v60  ;;  %v4699_v60 = vld [vmem:[#allocation13 + $0x1c0] sm:$0xff]   ;;  %v1528_v44 = vrot.slane %v5045_v52, %v1527_v17 }
 0x2ff   :  { %3725 = vmatmul.mubr.bf16.vlgmr.msra.gmra.mxu0 %v3165_v22  ;;  %4358 = vmatprep.subr.bf16.mxu1 %v4659_v20  ;;  %v1531_v20 = vsub.s32 5, %v4957_v14 }
 0x300   :  { %4375 = vmatpush3.bf16.msra.mxu0 %v4670_v21 }
 0x301   :  { %4376 = vmatprep.subr.bf16.mxu0 %v4671_v2  ;;  %v1532_v21 = vrot.slane %v5045_v52, %v1531_v20 }
 0x302   :  { %4359 = vmatpush3.bf16.msra.mxu1 %v4660_v3 }
 0x303   :  { %4360 = vmatprep.subr.bf16.mxu1 %v4661_v5 }
 0x304   :  { %4377 = vmatpush3.bf16.msra.mxu0 %v4672_v23 }
 0x305   :  { %4378 = vmatprep.subr.bf16.mxu0 %v4673_v24 }
 0x306   :  { %4361 = vmatpush3.bf16.msra.mxu1 %v4662_v25 }
 0x307   :  { %4362 = vmatprep.subr.bf16.mxu1 %v4663_v26 }
 0x308   :  { %4379 = vmatpush3.bf16.msra.mxu0 %v4674_v27 }
 0x309   :  { %4380 = vmatprep.subr.bf16.mxu0 %v4675_v28 }
 0x30a   :  { %4363 = vmatpush3.bf16.msra.mxu1 %v4664_v29 }
 0x30b   :  { %4364 = vmatprep.subr.bf16.mxu1 %v4665_v30 }
 0x30c   :  { %4381 = vmatpush3.bf16.msra.mxu0 %v4676_v33 }
 0x30d   :  { %4382 = vmatprep.subr.bf16.mxu0 %v4677_v34 }
 0x30e   :  { %4365 = vmatpush3.bf16.msra.mxu1 %v4666_v35 }
 0x30f   :  { %4366 = vmatprep.subr.bf16.mxu1 %v4667_v36 }
 0x310   :  { %4383 = vmatpush3.bf16.msra.mxu0 %v4678_v37  ;;  %v1535_v37 = vsub.s32 6, %v4957_v14 }
 0x311   :  { %4384 = vmatprep.subr.bf16.mxu0 %v4679_v39  ;;  %v1539_v39 = vsub.s32 7, %v4957_v14 }
 0x312   :  { %4367 = vmatpush3.bf16.msra.mxu1 %v4668_v40  ;;  %v1536_v40 = vrot.slane %v5045_v52, %v1535_v37 }
 0x313   :  { %4396 = vmatprep.subr.bf16.mxu1 %v4685_v42  ;;  %v1540_v42 = vrot.slane %v5045_v52, %v1539_v39  ;;  %v4265_v52 = vld [vmem:[%s5086_s8] ss:$0 sm:$0xff]  ;;  %s4841_s8 = scalar_lea.vmem %s3860_s25, 128 }
 0x314   :  { %4385 = vmatpush3.bf16.msra.mxu0 %v4680_v43  ;;  %p4842_p7 = scmp.ne.s32.totalorder %s3860_s25, %s4841_s8  ;;  %p4847_p9 = scmp.lt.s32.totalorder %s4841_s8, %s4841_s8 }
 0x315   :  { %4386 = vmatprep.subr.bf16.mxu0 %v4681_v46 }
 0x316   :  { %p4848_p10 = por %p4847_p9, %p4846_p8 }
 0x318   :  { %4387 = vmatpush3.bf16.msra.mxu0 %v4682_v47  ;;  %p4849_p11 = pnand %p4848_p10, %p4842_p7 }
 0x319   :  { %4388 = vmatprep.subr.bf16.mxu0 %v4683_v48 }
 0x31c   :  { %4389 = vmatpush3.bf16.msra.mxu0 %v4684_v31 }
 0x335   :  { %v2986_v49 = vpop.f32.mrf.mxu1 }
 0x336   :  { %v2987_v45 = vadd.f32 %v2986_v49, %v2946_v10  ;;  %v3027_v50 = vpop.f32.mrf.mxu0 }
 0x337   :  { %v2988_v59 = vpop.f32.mrf.mxu1  ;;  %v3028_v22 = vadd.f32 %v3027_v50, %v1528_v44 }
 0x338   :  { %v2989_v51 = vadd.f32 %v2988_v59, %v2948_v32  ;;  %v3029_v53 = vpop.f32.mrf.mxu0  ;;  %v3159_v54 = vmax.f32 %v2987_v45, 0.0 }
 0x339   :  { %v2990_v55 = vpop.f32.mrf.mxu1  ;;  %v3030_v3 = vadd.f32 %v3029_v53, %v1532_v21 }
 0x33a   :  { %v3160_v56 = vmax.f32 %v2989_v51, 0.0  ;;  %v3031_v57 = vpop.f32.mrf.mxu0  ;;  %v3167_v0 = vpack.c.bf16 %v3159_v54, %v3159_v54 }
 0x33b   :  { %v2991_v58 = vpop.f32.mrf.mxu1 }
 0x33c   :  { %v3168_v61 = vpack.c.bf16 %v3160_v56, %v3160_v56  ;;  %v3032_v16 = vpop.f32.mrf.mxu0 }
 0x33e   :  { %3764 = vmatprep.mubr.bf16.mxu1 %v3168_v61 }
 0x33f   :  { %3765 = vmatmul.mubr.bf16.vlgmr.msra.gmra.mxu1 %v3167_v0 }
 0x340   :  { %4397 = vmatpush3.bf16.msra.mxu1 %v4686_v62 }
 0x341   :  { %4398 = vmatprep.subr.bf16.mxu1 %v4687_v19 }
 0x344   :  { %4399 = vmatpush3.bf16.msra.mxu1 %v4688_v63 }
 0x345   :  { %4400 = vmatprep.subr.bf16.mxu1 %v4689_v1 }
 0x348   :  { %4401 = vmatpush3.bf16.msra.mxu1 %v4690_v4 }
 0x349   :  { %4402 = vmatprep.subr.bf16.mxu1 %v4691_v15 }
 0x34c   :  { %4403 = vmatpush3.bf16.msra.mxu1 %v4692_v7 }
 0x34d   :  { %4404 = vmatprep.subr.bf16.mxu1 %v4693_v18 }
 0x350   :  { %4405 = vmatpush3.bf16.msra.mxu1 %v4694_v8 }
 0x351   :  { %4406 = vmatprep.subr.bf16.mxu1 %v4695_v9 }
 0x354   :  { %4407 = vmatpush3.bf16.msra.mxu1 %v4696_v11 }
 0x355   :  { %4408 = vmatprep.subr.bf16.mxu1 %v4697_v12 }
 0x358   :  { %4409 = vmatpush3.bf16.msra.mxu1 %v4698_v41 }
 0x359   :  { %4410 = vmatprep.subr.bf16.mxu1 %v4699_v60 }
 0x35c   :  { %4411 = vmatpush3.bf16.msra.mxu1 %v4700_v13 }
 0x375   :  { %v3068_v2 = vpop.f32.mrf.mxu1 }
 0x376   :  { %v3069_v5 = vadd.f32 %v3068_v2, %v3028_v22  ;;  %v3109_v23 = vpop.f32.mrf.mxu0 }
 0x377   :  { %v3070_v24 = vpop.f32.mrf.mxu1  ;;  %v3110_v43 = vadd.f32 %v3109_v23, %v1536_v40 }
 0x378   :  { %v3071_v25 = vadd.f32 %v3070_v24, %v3030_v3  ;;  %v3111_v26 = vpop.f32.mrf.mxu0  ;;  %v3161_v27 = vmax.f32 %v3069_v5, 0.0 }
 0x379   :  { %v3072_v28 = vpop.f32.mrf.mxu1  ;;  %v3112_v47 = vadd.f32 %v3111_v26, %v1540_v42 }
 0x37a   :  { %v3162_v29 = vmax.f32 %v3071_v25, 0.0  ;;  %v3113_v30 = vpop.f32.mrf.mxu0  ;;  %v3169_v36 = vpack.c.bf16 %v3161_v27, %v3161_v27 }
 0x37b   :  { %v3073_v33 = vpop.f32.mrf.mxu1 }
 0x37c   :  { %v3170_v34 = vpack.c.bf16 %v3162_v29, %v3162_v29  ;;  %v3114_v35 = vpop.f32.mrf.mxu0 }
 0x37e   :  { %3804 = vmatprep.mubr.bf16.mxu0 %v3170_v34 }
 0x37f   :  { %3805 = vmatmul.mubr.bf16.vlgmr.msra.gmra.mxu0 %v3169_v36 }
 0x3b5   :  { %v3150_v46 = vpop.f32.mrf.mxu1 }
 0x3b6   :  { %v3151_v48 = vadd.f32 %v3150_v46, %v3110_v43 }
 0x3b7   :  { %v3152_v31 = vpop.f32.mrf.mxu1 }
 0x3b8   :  { %v3153_v6 = vadd.f32 %v3152_v31, %v3112_v47  ;;  %v3163_v38 = vmax.f32 %v3151_v48, 0.0 }
 0x3b9   :  { %v3154_v10 = vpop.f32.mrf.mxu1 }
 0x3ba   :  { %v3164_v49 = vmax.f32 %v3153_v6, 0.0  ;;  %v3171_v50 = vpack.c.bf16 %v3163_v38, %v3163_v38 }
 0x3bb   :  { %v3155_v32 = vpop.f32.mrf.mxu1 }
 0x3bc   :  { %v3172_v45 = vpack.c.bf16 %v3164_v49, %v3164_v49 }
 0x3be   :  { %3844 = vmatprep.mubr.bf16.mxu1 %v3172_v45 }
 0x3bf   :  { %3845 = vmatmul.mubr.bf16.vlgmr.msra.gmra.mxu1 %v3171_v50  ;;  %v4346_v59 = vpop.f32.mrf.mxu0 }
 0x3c1   :  { %v4347_v14 = vpop.f32.mrf.mxu0 }
 0x3c2   :  { %v4348_v51 = vadd.f32 %v4347_v14, %v4346_v59 }
 0x3c3   :  { %v4349_v53 = vpop.f32.mrf.mxu0 }
 0x3c4   :  { %v3727_v57 = vadd.f32 %v4348_v51, %v4265_v52 }
 0x3c5   :  { %v4350_v54 = vpop.f32.mrf.mxu0 }
 0x3ff   :  { %v4368_v55 = vpop.f32.mrf.mxu1 }
 0x401   :  { %v4369_v56 = vpop.f32.mrf.mxu1 }
 0x402   :  { %v4370_v58 = vadd.f32 %v4369_v56, %v4368_v55 }
 0x403   :  { %v4371_v61 = vpop.f32.mrf.mxu1 }
 0x404   :  { %v3767_v16 = vadd.f32 %v4370_v58, %v3727_v57 }
 0x405   :  { %v4372_v62 = vpop.f32.mrf.mxu1 }
 0x43f   :  { %v4390_v0 = vpop.f32.mrf.mxu0 }
 0x441   :  { %v4391_v19 = vpop.f32.mrf.mxu0 }
 0x442   :  { %v4392_v63 = vadd.f32 %v4391_v19, %v4390_v0 }
 0x443   :  { %v4393_v1 = vpop.f32.mrf.mxu0 }
 0x444   :  { %v3807_v4 = vadd.f32 %v4392_v63, %v3767_v16 }
 0x445   :  { %v4394_v15 = vpop.f32.mrf.mxu0 }
 0x47f   :  { %v4412_v7 = vpop.f32.mrf.mxu1 }
 0x481   :  { %v4413_v18 = vpop.f32.mrf.mxu1 }
 0x482   :  { %v4414_v8 = vadd.f32 %v4413_v18, %v4412_v7 }
 0x483   :  { %v4415_v9 = vpop.f32.mrf.mxu1 }
 0x484   :  { %v3847_v11 = vadd.f32 %v4414_v8, %v3807_v4 }
 0x485   :  { %v4416_v12 = vpop.f32.mrf.mxu1 }
 0x486   :  { %3852 = vst [vmem:[#allocation14] sm:$0xff] %v3847_v11 }
 0x487   :  { %4852 = shalt.err (!%p4849_p11)
}
 0x488   :  { %3862 = dma.vmem_to_hbm [thread:$0]  %s3860_s25, 128, %s5087_s9, [#allocation4]  }
 0x489   :  { %4869 = dma.done.wait [#allocation4], 128  }
 0x48a   :  { %4870 = vsyncadd [#allocation4], 4294967168 }
 0x48b   :  { %3866 = vsyncpa [#allocation3], 1 }
 0x48c   :  { %3867 = vsyncpa [#allocation6], 1 }
 0x48d   :  { %3868 = vsyncpa [#allocation9], 1 }
 0x48e   :  { %3869 = vsyncpa [#allocation12], 1 }
 0x48f   :  { %3870 = vsyncpa [#allocation4], 1 }

</bundles_post_ra>
